<compile_context>
chip_gen: v7x
topology: tpu7x:2x2x1
jax: 0.10.0
libtpu: 0.0.40
codegen_flags: <defaults>
</compile_context>

<pallas_src>
import functools
from types import SimpleNamespace

import jax
import jax.numpy as jnp
from jax.experimental import pallas as pl
from jax.experimental.pallas import tpu as pltpu


# ----------------------------------------------------------------------------
# Fused renderer kernel: one grid step = one (batch, ray-tile) pair.
# All tensors inside are (channels, TILE_N): channels on sublanes, rays on
# lanes (lane-dense).
# ----------------------------------------------------------------------------
def _renderer_kernel(center_ref, ray_ref,
                     w1_ref, b1_ref, w2_ref, b2_ref, w3_ref, b3_ref,
                     whead_ref, bhead_ref,
                     wgate_ref, bgate_ref, wpred_ref, bpred_ref,
                     rgb_ref, depth_ref, level_ref, mask_ref,
                     level_all_ref, soft_mask_ref,
                     *, srn_steps, bisection_steps, init_depth, rgb_temp,
                     lstm_dim):
    f32 = jnp.float32
    bf16 = jnp.bfloat16
    L = lstm_dim

    center = center_ref[...]                       # (3, TILE_N)
    ray = ray_ref[...]                             # (3, TILE_N)
    tile_n = center.shape[-1]

    # Weights loaded once per tile; MXU operands in bf16, accumulation f32.
    w1 = w1_ref[...].astype(bf16)                  # (D, 3)
    w2 = w2_ref[...].astype(bf16)                  # (D, D)
    w3 = w3_ref[...].astype(bf16)                  # (D, D)
    whead = whead_ref[...].astype(bf16)            # (4, D)   rows: [level|rgb]
    wgate = wgate_ref[...].astype(bf16)            # (4L, D+L) fused [w_ih^T|w_hh^T]
    wpred = wpred_ref[...]                         # (L, 1)   f32 (reduce path)
    # Bias columns (C, 1): kept un-broadcast — the implicit broadcast in the
    # add is cheap, whereas hoisting (C, TILE_N) broadcasts would pin dozens
    # of vregs across the march loop.
    b1 = b1_ref[...]
    b2 = b2_ref[...]
    b3 = b3_ref[...]
    bhead = bhead_ref[...]
    bgate = bgate_ref[...]                         # b_ih + b_hh, (4L, 1)
    bpred = bpred_ref[...]                         # (1, 1)
    D = w1.shape[0]
    del D  # (shape documented; not otherwise needed)

    def sigmoid(x):
        # Exact identity sigmoid(x) = 0.5*tanh(x/2)+0.5: one EUP tanh push
        # instead of exp + reciprocal.
        return 0.5 * jnp.tanh(0.5 * x) + 0.5

    def impl(pts):
        """pts (3,N) f32 -> level (1,N), rgb_raw (3,N), feat (D,N); all f32."""
        h1 = jnp.maximum(jnp.dot(w1, pts.astype(bf16),
                                 preferred_element_type=f32) + b1, 0.0)
        h2 = jnp.maximum(jnp.dot(w2, h1.astype(bf16),
                                 preferred_element_type=f32) + b2, 0.0)
        feat = jnp.maximum(jnp.dot(w3, h2.astype(bf16),
                                   preferred_element_type=f32) + b3, 0.0)
        head = jnp.dot(whead, feat.astype(bf16),
                       preferred_element_type=f32) + bhead
        return head[0:1, :], head[1:4, :], feat

    # --- SRN ray march with LSTM step predictor --------------------------------
    row_ids = jax.lax.broadcasted_iota(jnp.int32, (srn_steps + 1, tile_n), 0)

    def march_step(step, carry):
        depth, h, c, min_level, lvl_all, _, _ = carry
        points = center + ray * depth
        level, _, feat = impl(points)
        lvl_all = jnp.where(row_ids == step, level, lvl_all)
        min_level = jnp.minimum(min_level, level)
        # LSTMCell (PyTorch gate order i,f,g,o); single fused K=D+L gate matmul.
        xh = jnp.concatenate([feat, h], axis=0).astype(bf16)   # (D+L, TILE_N)
        gates = jnp.dot(wgate, xh, preferred_element_type=f32) + bgate
        i_g = sigmoid(gates[0 * L:1 * L, :])
        f_g = sigmoid(gates[1 * L:2 * L, :])
        g_g = jnp.tanh(gates[2 * L:3 * L, :])
        o_g = sigmoid(gates[3 * L:4 * L, :])
        c = f_g * c + i_g * g_g
        h = o_g * jnp.tanh(c)
        # lstm_pred as a sublane (XLU) reduce instead of an M=1 MXU push.
        delta = jnp.abs(jnp.sum(h * wpred, axis=0, keepdims=True) + bpred)
        return depth + delta, h, c, min_level, lvl_all, points, level

    carry0 = (jnp.full((1, tile_n), init_depth, f32),           # depth
              jnp.zeros((L, tile_n), f32),                      # h
              jnp.zeros((L, tile_n), f32),                      # c
              jnp.full((1, tile_n), jnp.inf, f32),              # min level
              jnp.zeros((srn_steps + 1, tile_n), f32),          # level_all acc
              jnp.zeros((3, tile_n), f32),                      # points (prev)
              jnp.zeros((1, tile_n), f32))                      # level (prev)
    (depth, _, _, min_level, lvl_all,
     points_2ndlast, level_2ndlast) = jax.lax.fori_loop(
        0, srn_steps, march_step, carry0, unroll=(srn_steps <= 8))

    # Extra level evaluation at the final marched depth.
    points = center + ray * depth
    level, _, _ = impl(points)
    lvl_all = jnp.where(row_ids == srn_steps, level, lvl_all)
    min_level = jnp.minimum(min_level, level)

    # Batched, lane-dense output writes (one full-lane store each).
    level_all_ref[...] = lvl_all
    mask_ref[...] = (min_level <= 0.0).astype(f32)
    soft_mask_ref[...] = sigmoid(-rgb_temp * min_level)

    # --- Bisection refinement ---------------------------------------------------
    def bisect_step(_, carry):
        x0, x1, y0 = carry
        x2 = (x0 + x1) * 0.5
        y2, _, _ = impl(x2)
        # Same comparison operators as the reference: (y0 < 0) ^ (y2 > 0).
        side = jnp.logical_xor(y0 < 0.0, y2 > 0.0).astype(f32)
        nside = 1.0 - side
        return (x2 * side + x0 * nside,
                x1 * side + x2 * nside,
                y2 * side + y0 * nside)

    x0, x1, _ = jax.lax.fori_loop(
        0, bisection_steps, bisect_step,
        (points_2ndlast, points, level_2ndlast),
        unroll=(bisection_steps <= 8))
    points_iso0 = (x0 + x1) * 0.5

    # --- Final level/rgb heads and depth from the iso-surface point -------------
    level_f, rgb_raw, _ = impl(points_iso0)
    level_ref[...] = level_f
    rgb_ref[...] = jnp.tanh(rgb_raw)
    diff = points_iso0 - center
    num = jnp.sqrt(jnp.sum(diff * diff, axis=0, keepdims=True))   # XLU reduce
    den = jnp.sqrt(jnp.sum(ray * ray, axis=0, keepdims=True))
    depth_ref[...] = num / den


def _choose_ray_tile(n, max_tile=256):
    """Lane-axis ray tile: multiple of 128, capped at max_tile.

    Returns (tile, n_padded).  N is always padded up to a multiple of the
    tile — no full-N fallback that could blow the v7x 64 MiB VMEM budget.
    """
    tile = min(max_tile, pl.cdiv(n, 128) * 128)
    n_pad = pl.cdiv(n, tile) * tile
    return tile, n_pad


# ----------------------------------------------------------------------------
# Camera glue (plain JAX) — util_cam equivalents, producing [B, 3, N].
# pose is [B, 3, 4] camera-to-world (R | t); intr is [B, 3, 3].
# ----------------------------------------------------------------------------
def get_center_and_ray(opt, pose, intr):
    H, W = opt.H, opt.W
    y, x = jnp.meshgrid(jnp.arange(H, dtype=jnp.float32) + 0.5,
                        jnp.arange(W, dtype=jnp.float32) + 0.5, indexing="ij")
    xy_hom = jnp.stack([x.ravel(), y.ravel(),
                        jnp.ones(H * W, jnp.float32)], axis=0)      # [3, N]
    inv_intr = jnp.linalg.inv(intr)                                  # [B,3,3]
    grid_cam = jnp.einsum("bij,jn->bin", inv_intr, xy_hom)           # [B,3,N]
    R, t = pose[:, :, :3], pose[:, :, 3]
    grid_world = jnp.einsum("bij,bjn->bin", R, grid_cam) + t[:, :, None]
    center = jnp.broadcast_to(t[:, :, None], grid_world.shape)
    ray = grid_world - center
    return center, ray


# ----------------------------------------------------------------------------
# Renderer forward (mirrors the PyTorch module) — one fused pallas_call.
# ----------------------------------------------------------------------------
def renderer_forward(opt, impl_weights, lstm_params, pose, intr):
    S = opt.impl.srn_steps
    assert S >= 1, "srn_steps must be >= 1"

    B = pose.shape[0]
    N = opt.H * opt.W
    D = impl_weights["w1"].shape[-1]
    L = opt.arch.lstm_dim

    center, ray = get_center_and_ray(opt, pose, intr)                # [B,3,N]

    # Lane-axis tiling: pad N up to a multiple of the tile, slice off later.
    tile_n, n_pad = _choose_ray_tile(N)
    if n_pad != N:
        pad = n_pad - N
        center = jnp.pad(center, ((0, 0), (0, 0), (0, pad)))
        # pad rays with a non-zero vector so padded lanes stay finite
        ray = jnp.pad(ray, ((0, 0), (0, 0), (0, pad)), constant_values=1.0)
    num_tiles = n_pad // tile_n

    # Host-side operand prep: transpose weights to (out, in) for W @ X with
    # rays on the lane axis; fuse level+rgb heads, fuse LSTM gate weights,
    # pre-add the two LSTM biases.
    tr = lambda a: jnp.swapaxes(a, -1, -2)
    w1t, b1t = tr(impl_weights["w1"]), tr(impl_weights["b1"])        # (B,D,3),(B,D,1)
    w2t, b2t = tr(impl_weights["w2"]), tr(impl_weights["b2"])        # (B,D,D),(B,D,1)
    w3t, b3t = tr(impl_weights["w3"]), tr(impl_weights["b3"])        # (B,D,D),(B,D,1)
    wheadt = tr(jnp.concatenate([impl_weights["w4"],
                                 impl_weights["wrgb"]], axis=-1))    # (B,4,D)
    bheadt = tr(jnp.concatenate([impl_weights["b4"],
                                 impl_weights["brgb"]], axis=-1))    # (B,4,1)
    wgate = jnp.concatenate([lstm_params["w_ih"].T,
                             lstm_params["w_hh"].T], axis=-1)        # (4L, D+L)
    bgate = (lstm_params["b_ih"] + lstm_params["b_hh"]).T            # (4L, 1)
    wpred = lstm_params["w_pred"]                                    # (L, 1)
    bpred = lstm_params["b_pred"]                                    # (1, 1)

    kern = functools.partial(
        _renderer_kernel,
        srn_steps=S,
        bisection_steps=opt.impl.bisection_steps,
        init_depth=float(opt.impl.init_depth),
        rgb_temp=float(opt.impl.rgb_temp),
        lstm_dim=L)

    def ray_spec(ch):
        return pl.BlockSpec((None, ch, tile_n), lambda b, t: (b, 0, t))

    def batch_param_spec(shape):
        return pl.BlockSpec((None,) + shape,
                            lambda b, t: (b,) + (0,) * len(shape))

    def shared_spec(shape):
        return pl.BlockSpec(shape, lambda b, t: (0,) * len(shape))

    in_specs = [
        ray_spec(3), ray_spec(3),                                    # center, ray
        batch_param_spec((D, 3)), batch_param_spec((D, 1)),          # w1^T, b1
        batch_param_spec((D, D)), batch_param_spec((D, 1)),          # w2^T, b2
        batch_param_spec((D, D)), batch_param_spec((D, 1)),          # w3^T, b3
        batch_param_spec((4, D)), batch_param_spec((4, 1)),          # whead^T, bhead
        shared_spec((4 * L, D + L)), shared_spec((4 * L, 1)),        # wgate, bgate
        shared_spec((L, 1)), shared_spec((1, 1)),                    # w_pred, b_pred
    ]
    out_specs = (ray_spec(3), ray_spec(1), ray_spec(1), ray_spec(1),
                 ray_spec(S + 1), ray_spec(1))
    out_shape = (
        jax.ShapeDtypeStruct((B, 3, n_pad), jnp.float32),            # rgb
        jax.ShapeDtypeStruct((B, 1, n_pad), jnp.float32),            # depth
        jax.ShapeDtypeStruct((B, 1, n_pad), jnp.float32),            # level
        jax.ShapeDtypeStruct((B, 1, n_pad), jnp.float32),            # mask
        jax.ShapeDtypeStruct((B, S + 1, n_pad), jnp.float32),        # level_all
        jax.ShapeDtypeStruct((B, 1, n_pad), jnp.float32),            # soft_mask
    )

    outs = pl.pallas_call(
        kern,
        grid=(B, num_tiles),                 # batch outermost: weights stay resident
        in_specs=in_specs,
        out_specs=out_specs,
        out_shape=out_shape,
        compiler_params=pltpu.CompilerParams(
            dimension_semantics=("parallel", "parallel"),
            vmem_limit_bytes=32 * 1024 * 1024),
    )(center, ray,
      w1t, b1t, w2t, b2t, w3t, b3t, wheadt, bheadt,
      wgate, bgate, wpred, bpred)

    # Back to the reference [B, N, C] layout (tiny host-side transpose).
    def to_bnc(a):
        return jnp.swapaxes(a[:, :, :N], 1, 2)
    rgb, depth, level, mask, level_all, soft_mask = (to_bnc(o) for o in outs)
    return rgb, depth, level, mask, level_all, soft_mask


# ----------------------------------------------------------------------------
# Deterministic parameter construction.
# ----------------------------------------------------------------------------
def init_params(key, opt, batch_size):
    D = opt.arch.layers_level[-2 - opt.impl.render_layer]   # feat_dim
    L = opt.arch.lstm_dim
    B = batch_size
    ks = jax.random.split(key, 16)

    def w(k, shape, fan_in):
        return (jax.random.normal(k, shape, jnp.float32)
                / jnp.sqrt(fan_in)).astype(jnp.float32)

    impl_weights = {
        "w1": w(ks[0], (B, 3, D), 3.0),  "b1": 0.01 * jax.random.normal(ks[1], (B, 1, D)),
        "w2": w(ks[2], (B, D, D), D),    "b2": 0.01 * jax.random.normal(ks[3], (B, 1, D)),
        "w3": w(ks[4], (B, D, D), D),    "b3": 0.01 * jax.random.normal(ks[5], (B, 1, D)),
        "w4": w(ks[6], (B, D, 1), D),    "b4": 0.01 * jax.random.normal(ks[7], (B, 1, 1)),
        "wrgb": w(ks[8], (B, D, 3), D),  "brgb": 0.01 * jax.random.normal(ks[9], (B, 1, 3)),
    }

    kval = 1.0 / jnp.sqrt(jnp.float32(L))
    b_ih = jax.random.uniform(ks[12], (1, 4 * L), minval=-kval, maxval=kval)
    b_hh = jax.random.uniform(ks[13], (1, 4 * L), minval=-kval, maxval=kval)
    # forget-gate bias init: param[n//4:n//2].fill_(1.0)  (gate order i,f,g,o)
    b_ih = b_ih.at[:, L:2 * L].set(1.0)
    b_hh = b_hh.at[:, L:2 * L].set(1.0)
    lstm_params = {
        "w_ih": jax.random.uniform(ks[10], (D, 4 * L), minval=-kval, maxval=kval),
        "w_hh": jax.random.uniform(ks[11], (L, 4 * L), minval=-kval, maxval=kval),
        "b_ih": b_ih,
        "b_hh": b_hh,
        "w_pred": jax.random.uniform(ks[14], (L, 1), minval=-kval, maxval=kval),
        "b_pred": jax.random.uniform(ks[15], (1, 1), minval=-kval, maxval=kval),
    }
    return impl_weights, lstm_params


if __name__ == "__main__":
    opt = SimpleNamespace(
        H=8, W=8,
        arch=SimpleNamespace(layers_level=[3, 32, 32, 32, 1], lstm_dim=32),
        impl=SimpleNamespace(render_layer=0, init_depth=0.5, srn_steps=3,
                             bisection_steps=4, rgb_temp=1.0),
    )
    B = 2
    key = jax.random.PRNGKey(0)
    k_param, k_pose = jax.random.split(key)

    impl_weights, lstm_params = init_params(k_param, opt, B)

    # camera-to-world pose: identity rotation + small per-batch translation
    R = jnp.eye(3, dtype=jnp.float32)
    t = 0.1 * jax.random.normal(k_pose, (B, 3), jnp.float32)
    pose = jnp.concatenate(
        [jnp.broadcast_to(R, (B, 3, 3)), t[:, :, None]], axis=-1)   # [B,3,4]

    f = float(opt.W)
    intr = jnp.broadcast_to(
        jnp.array([[f, 0.0, opt.W / 2.0],
                   [0.0, f, opt.H / 2.0],
                   [0.0, 0.0, 1.0]], jnp.float32), (B, 3, 3))

    outs = renderer_forward(opt, impl_weights, lstm_params, pose, intr)
    outs = jax.block_until_ready(outs)

    rgb, depth, level, mask, level_all, soft_mask = outs
    N = opt.H * opt.W
    assert rgb.shape == (B, N, 3)
    assert depth.shape == (B, N, 1)
    assert level.shape == (B, N, 1)
    assert mask.shape == (B, N, 1)
    assert level_all.shape == (B, N, opt.impl.srn_steps + 1)
    assert soft_mask.shape == (B, N, 1)
    assert all(bool(jnp.all(jnp.isfinite(o))) for o in outs)
    print("KERNEL_OK")
</pallas_src>

<mosaic_0001>
module attributes {stable_mosaic.version = 11 : i64} {
  func.func @_renderer_kernel(%arg0: i32, %arg1: i32, %arg2: memref<1x3x128xf32, #tpu.memory_space<vmem>>, %arg3: memref<1x3x128xf32, #tpu.memory_space<vmem>>, %arg4: memref<1x32x3xf32, #tpu.memory_space<vmem>>, %arg5: memref<1x32x1xf32, #tpu.memory_space<vmem>>, %arg6: memref<1x32x32xf32, #tpu.memory_space<vmem>>, %arg7: memref<1x32x1xf32, #tpu.memory_space<vmem>>, %arg8: memref<1x32x32xf32, #tpu.memory_space<vmem>>, %arg9: memref<1x32x1xf32, #tpu.memory_space<vmem>>, %arg10: memref<1x4x32xf32, #tpu.memory_space<vmem>>, %arg11: memref<1x4x1xf32, #tpu.memory_space<vmem>>, %arg12: memref<128x64xf32, #tpu.memory_space<vmem>>, %arg13: memref<128x1xf32, #tpu.memory_space<vmem>>, %arg14: memref<32x1xf32, #tpu.memory_space<vmem>>, %arg15: memref<1x1xf32, #tpu.memory_space<vmem>>, %arg16: memref<1x3x128xf32, #tpu.memory_space<vmem>>, %arg17: memref<1x1x128xf32, #tpu.memory_space<vmem>>, %arg18: memref<1x1x128xf32, #tpu.memory_space<vmem>>, %arg19: memref<1x1x128xf32, #tpu.memory_space<vmem>>, %arg20: memref<1x4x128xf32, #tpu.memory_space<vmem>>, %arg21: memref<1x1x128xf32, #tpu.memory_space<vmem>>) attributes {dimension_semantics = [#tpu.dimension_semantics<parallel>, #tpu.dimension_semantics<parallel>], iteration_bounds = array<i64: 2, 1>, scalar_prefetch = 0 : i64, scratch_operands = 0 : i64, tpu.core_type = #tpu.core_type<tc>, window_params = [{transform_indices = @transform_0, window_bounds = array<i64: 1, 3, 128>}, {transform_indices = @transform_1, window_bounds = array<i64: 1, 3, 128>}, {transform_indices = @transform_2, window_bounds = array<i64: 1, 32, 3>}, {transform_indices = @transform_3, window_bounds = array<i64: 1, 32, 1>}, {transform_indices = @transform_4, window_bounds = array<i64: 1, 32, 32>}, {transform_indices = @transform_5, window_bounds = array<i64: 1, 32, 1>}, {transform_indices = @transform_6, window_bounds = array<i64: 1, 32, 32>}, {transform_indices = @transform_7, window_bounds = array<i64: 1, 32, 1>}, {transform_indices = @transform_8, window_bounds = array<i64: 1, 4, 32>}, {transform_indices = @transform_9, window_bounds = array<i64: 1, 4, 1>}, {pipeline_mode = #tpu.pipeline_mode<synchronous>, transform_indices = @transform_10, window_bounds = array<i64: 128, 64>}, {pipeline_mode = #tpu.pipeline_mode<synchronous>, transform_indices = @transform_11, window_bounds = array<i64: 128, 1>}, {pipeline_mode = #tpu.pipeline_mode<synchronous>, transform_indices = @transform_12, window_bounds = array<i64: 32, 1>}, {pipeline_mode = #tpu.pipeline_mode<synchronous>, transform_indices = @transform_13, window_bounds = array<i64: 1, 1>}, {transform_indices = @transform_14, window_bounds = array<i64: 1, 3, 128>}, {transform_indices = @transform_15, window_bounds = array<i64: 1, 1, 128>}, {transform_indices = @transform_16, window_bounds = array<i64: 1, 1, 128>}, {transform_indices = @transform_17, window_bounds = array<i64: 1, 1, 128>}, {transform_indices = @transform_18, window_bounds = array<i64: 1, 4, 128>}, {transform_indices = @transform_19, window_bounds = array<i64: 1, 1, 128>}]} {
    %c0 = arith.constant 0 : index
    %c0_0 = arith.constant 0 : index
    %c0_1 = arith.constant 0 : index
    %0 = vector.load %arg2[%c0, %c0_0, %c0_1] : memref<1x3x128xf32, #tpu.memory_space<vmem>>, vector<1x3x128xf32>
    %1 = vector.shape_cast %0 : vector<1x3x128xf32> to vector<3x128xf32>
    %c0_2 = arith.constant 0 : index
    %c0_3 = arith.constant 0 : index
    %c0_4 = arith.constant 0 : index
    %2 = vector.load %arg3[%c0_2, %c0_3, %c0_4] : memref<1x3x128xf32, #tpu.memory_space<vmem>>, vector<1x3x128xf32>
    %3 = vector.shape_cast %2 : vector<1x3x128xf32> to vector<3x128xf32>
    %c0_5 = arith.constant 0 : index
    %c0_6 = arith.constant 0 : index
    %c0_7 = arith.constant 0 : index
    %4 = vector.load %arg4[%c0_5, %c0_6, %c0_7] : memref<1x32x3xf32, #tpu.memory_space<vmem>>, vector<1x32x3xf32>
    %5 = vector.shape_cast %4 : vector<1x32x3xf32> to vector<32x3xf32>
    %6 = arith.truncf %5 : vector<32x3xf32> to vector<32x3xbf16>
    %c0_8 = arith.constant 0 : index
    %c0_9 = arith.constant 0 : index
    %c0_10 = arith.constant 0 : index
    %7 = vector.load %arg6[%c0_8, %c0_9, %c0_10] : memref<1x32x32xf32, #tpu.memory_space<vmem>>, vector<1x32x32xf32>
    %8 = vector.shape_cast %7 : vector<1x32x32xf32> to vector<32x32xf32>
    %9 = arith.truncf %8 : vector<32x32xf32> to vector<32x32xbf16>
    %c0_11 = arith.constant 0 : index
    %c0_12 = arith.constant 0 : index
    %c0_13 = arith.constant 0 : index
    %10 = vector.load %arg8[%c0_11, %c0_12, %c0_13] : memref<1x32x32xf32, #tpu.memory_space<vmem>>, vector<1x32x32xf32>
    %11 = vector.shape_cast %10 : vector<1x32x32xf32> to vector<32x32xf32>
    %12 = arith.truncf %11 : vector<32x32xf32> to vector<32x32xbf16>
    %c0_14 = arith.constant 0 : index
    %c0_15 = arith.constant 0 : index
    %c0_16 = arith.constant 0 : index
    %13 = vector.load %arg10[%c0_14, %c0_15, %c0_16] : memref<1x4x32xf32, #tpu.memory_space<vmem>>, vector<1x4x32xf32>
    %14 = vector.shape_cast %13 : vector<1x4x32xf32> to vector<4x32xf32>
    %15 = arith.truncf %14 : vector<4x32xf32> to vector<4x32xbf16>
    %c0_17 = arith.constant 0 : index
    %c0_18 = arith.constant 0 : index
    %16 = vector.load %arg12[%c0_17, %c0_18] : memref<128x64xf32, #tpu.memory_space<vmem>>, vector<128x64xf32>
    %17 = arith.truncf %16 : vector<128x64xf32> to vector<128x64xbf16>
    %c0_19 = arith.constant 0 : index
    %c0_20 = arith.constant 0 : index
    %18 = vector.load %arg14[%c0_19, %c0_20] : memref<32x1xf32, #tpu.memory_space<vmem>>, vector<32x1xf32>
    %c0_21 = arith.constant 0 : index
    %c0_22 = arith.constant 0 : index
    %c0_23 = arith.constant 0 : index
    %19 = vector.load %arg5[%c0_21, %c0_22, %c0_23] : memref<1x32x1xf32, #tpu.memory_space<vmem>>, vector<1x32x1xf32>
    %20 = vector.shape_cast %19 : vector<1x32x1xf32> to vector<32x1xf32>
    %c0_24 = arith.constant 0 : index
    %c0_25 = arith.constant 0 : index
    %c0_26 = arith.constant 0 : index
    %21 = vector.load %arg7[%c0_24, %c0_25, %c0_26] : memref<1x32x1xf32, #tpu.memory_space<vmem>>, vector<1x32x1xf32>
    %22 = vector.shape_cast %21 : vector<1x32x1xf32> to vector<32x1xf32>
    %c0_27 = arith.constant 0 : index
    %c0_28 = arith.constant 0 : index
    %c0_29 = arith.constant 0 : index
    %23 = vector.load %arg9[%c0_27, %c0_28, %c0_29] : memref<1x32x1xf32, #tpu.memory_space<vmem>>, vector<1x32x1xf32>
    %24 = vector.shape_cast %23 : vector<1x32x1xf32> to vector<32x1xf32>
    %c0_30 = arith.constant 0 : index
    %c0_31 = arith.constant 0 : index
    %c0_32 = arith.constant 0 : index
    %25 = vector.load %arg11[%c0_30, %c0_31, %c0_32] : memref<1x4x1xf32, #tpu.memory_space<vmem>>, vector<1x4x1xf32>
    %26 = vector.shape_cast %25 : vector<1x4x1xf32> to vector<4x1xf32>
    %c0_33 = arith.constant 0 : index
    %c0_34 = arith.constant 0 : index
    %27 = vector.load %arg13[%c0_33, %c0_34] : memref<128x1xf32, #tpu.memory_space<vmem>>, vector<128x1xf32>
    %c0_35 = arith.constant 0 : index
    %c0_36 = arith.constant 0 : index
    %28 = vector.load %arg15[%c0_35, %c0_36] : memref<1x1xf32, #tpu.memory_space<vmem>>, vector<1x1xf32>
    %29 = tpu.iota {dimensions = array<i32: 0>} : vector<4x128xi32>
    %cst = arith.constant 5.000000e-01 : f32
    %30 = vector.broadcast %cst : f32 to vector<1x128xf32>
    %cst_37 = arith.constant 0.000000e+00 : f32
    %31 = vector.broadcast %cst_37 : f32 to vector<32x128xf32>
    %cst_38 = arith.constant 0.000000e+00 : f32
    %32 = vector.broadcast %cst_38 : f32 to vector<32x128xf32>
    %cst_39 = arith.constant 0x7F800000 : f32
    %33 = vector.broadcast %cst_39 : f32 to vector<1x128xf32>
    %cst_40 = arith.constant 0.000000e+00 : f32
    %34 = vector.broadcast %cst_40 : f32 to vector<4x128xf32>
    %cst_41 = arith.constant 0.000000e+00 : f32
    %35 = vector.broadcast %cst_41 : f32 to vector<3x128xf32>
    %cst_42 = arith.constant 0.000000e+00 : f32
    %36 = vector.broadcast %cst_42 : f32 to vector<1x128xf32>
    %c0_i32 = arith.constant 0 : i32
    %37 = vector.broadcast %30 : vector<1x128xf32> to vector<3x128xf32>
    %38 = arith.mulf %3, %37 : vector<3x128xf32>
    %39 = arith.addf %1, %38 : vector<3x128xf32>
    %40 = arith.truncf %39 : vector<3x128xf32> to vector<3x128xbf16>
    %cst_43 = arith.constant dense<0.000000e+00> : vector<32x128xf32>
    %41 = tpu.matmul %6, %40, %cst_43 {dimension_numbers = #tpu.dot_dimension_numbers<[1], [0], [0], [1], [0, 0, 1, 1], [], []>} : vector<32x3xbf16>, vector<3x128xbf16>, vector<32x128xf32> -> vector<32x128xf32>
    %42 = vector.broadcast %20 : vector<32x1xf32> to vector<32x128xf32>
    %43 = arith.addf %41, %42 : vector<32x128xf32>
    %cst_44 = arith.constant 0.000000e+00 : f32
    %44 = vector.broadcast %cst_44 : f32 to vector<32x128xf32>
    %45 = arith.maximumf %43, %44 : vector<32x128xf32>
    %46 = arith.truncf %45 : vector<32x128xf32> to vector<32x128xbf16>
    %cst_45 = arith.constant dense<0.000000e+00> : vector<32x128xf32>
    %47 = tpu.matmul %9, %46, %cst_45 {dimension_numbers = #tpu.dot_dimension_numbers<[1], [0], [0], [1], [0, 0, 1, 1], [], []>} : vector<32x32xbf16>, vector<32x128xbf16>, vector<32x128xf32> -> vector<32x128xf32>
    %48 = vector.broadcast %22 : vector<32x1xf32> to vector<32x128xf32>
    %49 = arith.addf %47, %48 : vector<32x128xf32>
    %cst_46 = arith.constant 0.000000e+00 : f32
    %50 = vector.broadcast %cst_46 : f32 to vector<32x128xf32>
    %51 = arith.maximumf %49, %50 : vector<32x128xf32>
    %52 = arith.truncf %51 : vector<32x128xf32> to vector<32x128xbf16>
    %cst_47 = arith.constant dense<0.000000e+00> : vector<32x128xf32>
    %53 = tpu.matmul %12, %52, %cst_47 {dimension_numbers = #tpu.dot_dimension_numbers<[1], [0], [0], [1], [0, 0, 1, 1], [], []>} : vector<32x32xbf16>, vector<32x128xbf16>, vector<32x128xf32> -> vector<32x128xf32>
    %54 = vector.broadcast %24 : vector<32x1xf32> to vector<32x128xf32>
    %55 = arith.addf %53, %54 : vector<32x128xf32>
    %cst_48 = arith.constant 0.000000e+00 : f32
    %56 = vector.broadcast %cst_48 : f32 to vector<32x128xf32>
    %57 = arith.maximumf %55, %56 : vector<32x128xf32>
    %58 = arith.truncf %57 : vector<32x128xf32> to vector<32x128xbf16>
    %cst_49 = arith.constant dense<0.000000e+00> : vector<4x128xf32>
    %59 = tpu.matmul %15, %58, %cst_49 {dimension_numbers = #tpu.dot_dimension_numbers<[1], [0], [0], [1], [0, 0, 1, 1], [], []>} : vector<4x32xbf16>, vector<32x128xbf16>, vector<4x128xf32> -> vector<4x128xf32>
    %60 = vector.broadcast %26 : vector<4x1xf32> to vector<4x128xf32>
    %61 = arith.addf %59, %60 : vector<4x128xf32>
    %62 = vector.extract_strided_slice %61 {offsets = [0, 0], sizes = [1, 128], strides = [1, 1]} : vector<4x128xf32> to vector<1x128xf32>
    %63 = vector.broadcast %c0_i32 : i32 to vector<4x128xi32>
    %64 = arith.cmpi eq, %29, %63 : vector<4x128xi32>
    %65 = vector.shape_cast %62 : vector<1x128xf32> to vector<1x128xf32>
    %66 = vector.broadcast %65 : vector<1x128xf32> to vector<4x128xf32>
    %67 = arith.select %64, %66, %34 : vector<4x128xi1>, vector<4x128xf32>
    %68 = arith.minimumf %33, %62 : vector<1x128xf32>
    %69 = tpu.concatenate %57, %31 in 0 : vector<32x128xf32>, vector<32x128xf32> -> vector<64x128xf32>
    %70 = arith.truncf %69 : vector<64x128xf32> to vector<64x128xbf16>
    %cst_50 = arith.constant dense<0.000000e+00> : vector<128x128xf32>
    %71 = tpu.matmul %17, %70, %cst_50 {dimension_numbers = #tpu.dot_dimension_numbers<[1], [0], [0], [1], [0, 0, 1, 1], [], []>} : vector<128x64xbf16>, vector<64x128xbf16>, vector<128x128xf32> -> vector<128x128xf32>
    %72 = vector.broadcast %27 : vector<128x1xf32> to vector<128x128xf32>
    %73 = arith.addf %71, %72 : vector<128x128xf32>
    %74 = vector.extract_strided_slice %73 {offsets = [0, 0], sizes = [32, 128], strides = [1, 1]} : vector<128x128xf32> to vector<32x128xf32>
    %cst_51 = arith.constant 5.000000e-01 : f32
    %75 = vector.broadcast %cst_51 : f32 to vector<32x128xf32>
    %76 = arith.mulf %75, %74 : vector<32x128xf32>
    %77 = math.tanh %76 : vector<32x128xf32>
    %cst_52 = arith.constant 5.000000e-01 : f32
    %78 = vector.broadcast %cst_52 : f32 to vector<32x128xf32>
    %79 = arith.mulf %78, %77 : vector<32x128xf32>
    %cst_53 = arith.constant 5.000000e-01 : f32
    %80 = vector.broadcast %cst_53 : f32 to vector<32x128xf32>
    %81 = arith.addf %79, %80 : vector<32x128xf32>
    %82 = vector.extract_strided_slice %73 {offsets = [32, 0], sizes = [32, 128], strides = [1, 1]} : vector<128x128xf32> to vector<32x128xf32>
    %cst_54 = arith.constant 5.000000e-01 : f32
    %83 = vector.broadcast %cst_54 : f32 to vector<32x128xf32>
    %84 = arith.mulf %83, %82 : vector<32x128xf32>
    %85 = math.tanh %84 : vector<32x128xf32>
    %cst_55 = arith.constant 5.000000e-01 : f32
    %86 = vector.broadcast %cst_55 : f32 to vector<32x128xf32>
    %87 = arith.mulf %86, %85 : vector<32x128xf32>
    %cst_56 = arith.constant 5.000000e-01 : f32
    %88 = vector.broadcast %cst_56 : f32 to vector<32x128xf32>
    %89 = arith.addf %87, %88 : vector<32x128xf32>
    %90 = vector.extract_strided_slice %73 {offsets = [64, 0], sizes = [32, 128], strides = [1, 1]} : vector<128x128xf32> to vector<32x128xf32>
    %91 = math.tanh %90 : vector<32x128xf32>
    %92 = vector.extract_strided_slice %73 {offsets = [96, 0], sizes = [32, 128], strides = [1, 1]} : vector<128x128xf32> to vector<32x128xf32>
    %cst_57 = arith.constant 5.000000e-01 : f32
    %93 = vector.broadcast %cst_57 : f32 to vector<32x128xf32>
    %94 = arith.mulf %93, %92 : vector<32x128xf32>
    %95 = math.tanh %94 : vector<32x128xf32>
    %cst_58 = arith.constant 5.000000e-01 : f32
    %96 = vector.broadcast %cst_58 : f32 to vector<32x128xf32>
    %97 = arith.mulf %96, %95 : vector<32x128xf32>
    %cst_59 = arith.constant 5.000000e-01 : f32
    %98 = vector.broadcast %cst_59 : f32 to vector<32x128xf32>
    %99 = arith.addf %97, %98 : vector<32x128xf32>
    %100 = arith.mulf %89, %32 : vector<32x128xf32>
    %101 = arith.mulf %81, %91 : vector<32x128xf32>
    %102 = arith.addf %100, %101 : vector<32x128xf32>
    %103 = math.tanh %102 : vector<32x128xf32>
    %104 = arith.mulf %99, %103 : vector<32x128xf32>
    %105 = vector.broadcast %18 : vector<32x1xf32> to vector<32x128xf32>
    %106 = arith.mulf %104, %105 : vector<32x128xf32>
    %cst_60 = arith.constant dense<0.000000e+00> : vector<128xf32>
    %107 = vector.multi_reduction <add>, %106, %cst_60 [0] : vector<32x128xf32> to vector<128xf32>
    %108 = vector.shape_cast %107 : vector<128xf32> to vector<1x128xf32>
    %109 = vector.broadcast %28 : vector<1x1xf32> to vector<1x128xf32>
    %110 = arith.addf %108, %109 : vector<1x128xf32>
    %111 = math.absf %110 : vector<1x128xf32>
    %112 = arith.addf %30, %111 : vector<1x128xf32>
    %c1_i32 = arith.constant 1 : i32
    %113 = vector.broadcast %112 : vector<1x128xf32> to vector<3x128xf32>
    %114 = arith.mulf %3, %113 : vector<3x128xf32>
    %115 = arith.addf %1, %114 : vector<3x128xf32>
    %116 = arith.truncf %115 : vector<3x128xf32> to vector<3x128xbf16>
    %cst_61 = arith.constant dense<0.000000e+00> : vector<32x128xf32>
    %117 = tpu.matmul %6, %116, %cst_61 {dimension_numbers = #tpu.dot_dimension_numbers<[1], [0], [0], [1], [0, 0, 1, 1], [], []>} : vector<32x3xbf16>, vector<3x128xbf16>, vector<32x128xf32> -> vector<32x128xf32>
    %118 = vector.broadcast %20 : vector<32x1xf32> to vector<32x128xf32>
    %119 = arith.addf %117, %118 : vector<32x128xf32>
    %cst_62 = arith.constant 0.000000e+00 : f32
    %120 = vector.broadcast %cst_62 : f32 to vector<32x128xf32>
    %121 = arith.maximumf %119, %120 : vector<32x128xf32>
    %122 = arith.truncf %121 : vector<32x128xf32> to vector<32x128xbf16>
    %cst_63 = arith.constant dense<0.000000e+00> : vector<32x128xf32>
    %123 = tpu.matmul %9, %122, %cst_63 {dimension_numbers = #tpu.dot_dimension_numbers<[1], [0], [0], [1], [0, 0, 1, 1], [], []>} : vector<32x32xbf16>, vector<32x128xbf16>, vector<32x128xf32> -> vector<32x128xf32>
    %124 = vector.broadcast %22 : vector<32x1xf32> to vector<32x128xf32>
    %125 = arith.addf %123, %124 : vector<32x128xf32>
    %cst_64 = arith.constant 0.000000e+00 : f32
    %126 = vector.broadcast %cst_64 : f32 to vector<32x128xf32>
    %127 = arith.maximumf %125, %126 : vector<32x128xf32>
    %128 = arith.truncf %127 : vector<32x128xf32> to vector<32x128xbf16>
    %cst_65 = arith.constant dense<0.000000e+00> : vector<32x128xf32>
    %129 = tpu.matmul %12, %128, %cst_65 {dimension_numbers = #tpu.dot_dimension_numbers<[1], [0], [0], [1], [0, 0, 1, 1], [], []>} : vector<32x32xbf16>, vector<32x128xbf16>, vector<32x128xf32> -> vector<32x128xf32>
    %130 = vector.broadcast %24 : vector<32x1xf32> to vector<32x128xf32>
    %131 = arith.addf %129, %130 : vector<32x128xf32>
    %cst_66 = arith.constant 0.000000e+00 : f32
    %132 = vector.broadcast %cst_66 : f32 to vector<32x128xf32>
    %133 = arith.maximumf %131, %132 : vector<32x128xf32>
    %134 = arith.truncf %133 : vector<32x128xf32> to vector<32x128xbf16>
    %cst_67 = arith.constant dense<0.000000e+00> : vector<4x128xf32>
    %135 = tpu.matmul %15, %134, %cst_67 {dimension_numbers = #tpu.dot_dimension_numbers<[1], [0], [0], [1], [0, 0, 1, 1], [], []>} : vector<4x32xbf16>, vector<32x128xbf16>, vector<4x128xf32> -> vector<4x128xf32>
    %136 = vector.broadcast %26 : vector<4x1xf32> to vector<4x128xf32>
    %137 = arith.addf %135, %136 : vector<4x128xf32>
    %138 = vector.extract_strided_slice %137 {offsets = [0, 0], sizes = [1, 128], strides = [1, 1]} : vector<4x128xf32> to vector<1x128xf32>
    %139 = vector.broadcast %c1_i32 : i32 to vector<4x128xi32>
    %140 = arith.cmpi eq, %29, %139 : vector<4x128xi32>
    %141 = vector.shape_cast %138 : vector<1x128xf32> to vector<1x128xf32>
    %142 = vector.broadcast %141 : vector<1x128xf32> to vector<4x128xf32>
    %143 = arith.select %140, %142, %67 : vector<4x128xi1>, vector<4x128xf32>
    %144 = arith.minimumf %68, %138 : vector<1x128xf32>
    %145 = tpu.concatenate %133, %104 in 0 : vector<32x128xf32>, vector<32x128xf32> -> vector<64x128xf32>
    %146 = arith.truncf %145 : vector<64x128xf32> to vector<64x128xbf16>
    %cst_68 = arith.constant dense<0.000000e+00> : vector<128x128xf32>
    %147 = tpu.matmul %17, %146, %cst_68 {dimension_numbers = #tpu.dot_dimension_numbers<[1], [0], [0], [1], [0, 0, 1, 1], [], []>} : vector<128x64xbf16>, vector<64x128xbf16>, vector<128x128xf32> -> vector<128x128xf32>
    %148 = vector.broadcast %27 : vector<128x1xf32> to vector<128x128xf32>
    %149 = arith.addf %147, %148 : vector<128x128xf32>
    %150 = vector.extract_strided_slice %149 {offsets = [0, 0], sizes = [32, 128], strides = [1, 1]} : vector<128x128xf32> to vector<32x128xf32>
    %cst_69 = arith.constant 5.000000e-01 : f32
    %151 = vector.broadcast %cst_69 : f32 to vector<32x128xf32>
    %152 = arith.mulf %151, %150 : vector<32x128xf32>
    %153 = math.tanh %152 : vector<32x128xf32>
    %cst_70 = arith.constant 5.000000e-01 : f32
    %154 = vector.broadcast %cst_70 : f32 to vector<32x128xf32>
    %155 = arith.mulf %154, %153 : vector<32x128xf32>
    %cst_71 = arith.constant 5.000000e-01 : f32
    %156 = vector.broadcast %cst_71 : f32 to vector<32x128xf32>
    %157 = arith.addf %155, %156 : vector<32x128xf32>
    %158 = vector.extract_strided_slice %149 {offsets = [32, 0], sizes = [32, 128], strides = [1, 1]} : vector<128x128xf32> to vector<32x128xf32>
    %cst_72 = arith.constant 5.000000e-01 : f32
    %159 = vector.broadcast %cst_72 : f32 to vector<32x128xf32>
    %160 = arith.mulf %159, %158 : vector<32x128xf32>
    %161 = math.tanh %160 : vector<32x128xf32>
    %cst_73 = arith.constant 5.000000e-01 : f32
    %162 = vector.broadcast %cst_73 : f32 to vector<32x128xf32>
    %163 = arith.mulf %162, %161 : vector<32x128xf32>
    %cst_74 = arith.constant 5.000000e-01 : f32
    %164 = vector.broadcast %cst_74 : f32 to vector<32x128xf32>
    %165 = arith.addf %163, %164 : vector<32x128xf32>
    %166 = vector.extract_strided_slice %149 {offsets = [64, 0], sizes = [32, 128], strides = [1, 1]} : vector<128x128xf32> to vector<32x128xf32>
    %167 = math.tanh %166 : vector<32x128xf32>
    %168 = vector.extract_strided_slice %149 {offsets = [96, 0], sizes = [32, 128], strides = [1, 1]} : vector<128x128xf32> to vector<32x128xf32>
    %cst_75 = arith.constant 5.000000e-01 : f32
    %169 = vector.broadcast %cst_75 : f32 to vector<32x128xf32>
    %170 = arith.mulf %169, %168 : vector<32x128xf32>
    %171 = math.tanh %170 : vector<32x128xf32>
    %cst_76 = arith.constant 5.000000e-01 : f32
    %172 = vector.broadcast %cst_76 : f32 to vector<32x128xf32>
    %173 = arith.mulf %172, %171 : vector<32x128xf32>
    %cst_77 = arith.constant 5.000000e-01 : f32
    %174 = vector.broadcast %cst_77 : f32 to vector<32x128xf32>
    %175 = arith.addf %173, %174 : vector<32x128xf32>
    %176 = arith.mulf %165, %102 : vector<32x128xf32>
    %177 = arith.mulf %157, %167 : vector<32x128xf32>
    %178 = arith.addf %176, %177 : vector<32x128xf32>
    %179 = math.tanh %178 : vector<32x128xf32>
    %180 = arith.mulf %175, %179 : vector<32x128xf32>
    %181 = vector.broadcast %18 : vector<32x1xf32> to vector<32x128xf32>
    %182 = arith.mulf %180, %181 : vector<32x128xf32>
    %cst_78 = arith.constant dense<0.000000e+00> : vector<128xf32>
    %183 = vector.multi_reduction <add>, %182, %cst_78 [0] : vector<32x128xf32> to vector<128xf32>
    %184 = vector.shape_cast %183 : vector<128xf32> to vector<1x128xf32>
    %185 = vector.broadcast %28 : vector<1x1xf32> to vector<1x128xf32>
    %186 = arith.addf %184, %185 : vector<1x128xf32>
    %187 = math.absf %186 : vector<1x128xf32>
    %188 = arith.addf %112, %187 : vector<1x128xf32>
    %c2_i32 = arith.constant 2 : i32
    %189 = vector.broadcast %188 : vector<1x128xf32> to vector<3x128xf32>
    %190 = arith.mulf %3, %189 : vector<3x128xf32>
    %191 = arith.addf %1, %190 : vector<3x128xf32>
    %192 = arith.truncf %191 : vector<3x128xf32> to vector<3x128xbf16>
    %cst_79 = arith.constant dense<0.000000e+00> : vector<32x128xf32>
    %193 = tpu.matmul %6, %192, %cst_79 {dimension_numbers = #tpu.dot_dimension_numbers<[1], [0], [0], [1], [0, 0, 1, 1], [], []>} : vector<32x3xbf16>, vector<3x128xbf16>, vector<32x128xf32> -> vector<32x128xf32>
    %194 = vector.broadcast %20 : vector<32x1xf32> to vector<32x128xf32>
    %195 = arith.addf %193, %194 : vector<32x128xf32>
    %cst_80 = arith.constant 0.000000e+00 : f32
    %196 = vector.broadcast %cst_80 : f32 to vector<32x128xf32>
    %197 = arith.maximumf %195, %196 : vector<32x128xf32>
    %198 = arith.truncf %197 : vector<32x128xf32> to vector<32x128xbf16>
    %cst_81 = arith.constant dense<0.000000e+00> : vector<32x128xf32>
    %199 = tpu.matmul %9, %198, %cst_81 {dimension_numbers = #tpu.dot_dimension_numbers<[1], [0], [0], [1], [0, 0, 1, 1], [], []>} : vector<32x32xbf16>, vector<32x128xbf16>, vector<32x128xf32> -> vector<32x128xf32>
    %200 = vector.broadcast %22 : vector<32x1xf32> to vector<32x128xf32>
    %201 = arith.addf %199, %200 : vector<32x128xf32>
    %cst_82 = arith.constant 0.000000e+00 : f32
    %202 = vector.broadcast %cst_82 : f32 to vector<32x128xf32>
    %203 = arith.maximumf %201, %202 : vector<32x128xf32>
    %204 = arith.truncf %203 : vector<32x128xf32> to vector<32x128xbf16>
    %cst_83 = arith.constant dense<0.000000e+00> : vector<32x128xf32>
    %205 = tpu.matmul %12, %204, %cst_83 {dimension_numbers = #tpu.dot_dimension_numbers<[1], [0], [0], [1], [0, 0, 1, 1], [], []>} : vector<32x32xbf16>, vector<32x128xbf16>, vector<32x128xf32> -> vector<32x128xf32>
    %206 = vector.broadcast %24 : vector<32x1xf32> to vector<32x128xf32>
    %207 = arith.addf %205, %206 : vector<32x128xf32>
    %cst_84 = arith.constant 0.000000e+00 : f32
    %208 = vector.broadcast %cst_84 : f32 to vector<32x128xf32>
    %209 = arith.maximumf %207, %208 : vector<32x128xf32>
    %210 = arith.truncf %209 : vector<32x128xf32> to vector<32x128xbf16>
    %cst_85 = arith.constant dense<0.000000e+00> : vector<4x128xf32>
    %211 = tpu.matmul %15, %210, %cst_85 {dimension_numbers = #tpu.dot_dimension_numbers<[1], [0], [0], [1], [0, 0, 1, 1], [], []>} : vector<4x32xbf16>, vector<32x128xbf16>, vector<4x128xf32> -> vector<4x128xf32>
    %212 = vector.broadcast %26 : vector<4x1xf32> to vector<4x128xf32>
    %213 = arith.addf %211, %212 : vector<4x128xf32>
    %214 = vector.extract_strided_slice %213 {offsets = [0, 0], sizes = [1, 128], strides = [1, 1]} : vector<4x128xf32> to vector<1x128xf32>
    %215 = vector.broadcast %c2_i32 : i32 to vector<4x128xi32>
    %216 = arith.cmpi eq, %29, %215 : vector<4x128xi32>
    %217 = vector.shape_cast %214 : vector<1x128xf32> to vector<1x128xf32>
    %218 = vector.broadcast %217 : vector<1x128xf32> to vector<4x128xf32>
    %219 = arith.select %216, %218, %143 : vector<4x128xi1>, vector<4x128xf32>
    %220 = arith.minimumf %144, %214 : vector<1x128xf32>
    %221 = tpu.concatenate %209, %180 in 0 : vector<32x128xf32>, vector<32x128xf32> -> vector<64x128xf32>
    %222 = arith.truncf %221 : vector<64x128xf32> to vector<64x128xbf16>
    %cst_86 = arith.constant dense<0.000000e+00> : vector<128x128xf32>
    %223 = tpu.matmul %17, %222, %cst_86 {dimension_numbers = #tpu.dot_dimension_numbers<[1], [0], [0], [1], [0, 0, 1, 1], [], []>} : vector<128x64xbf16>, vector<64x128xbf16>, vector<128x128xf32> -> vector<128x128xf32>
    %224 = vector.broadcast %27 : vector<128x1xf32> to vector<128x128xf32>
    %225 = arith.addf %223, %224 : vector<128x128xf32>
    %226 = vector.extract_strided_slice %225 {offsets = [0, 0], sizes = [32, 128], strides = [1, 1]} : vector<128x128xf32> to vector<32x128xf32>
    %cst_87 = arith.constant 5.000000e-01 : f32
    %227 = vector.broadcast %cst_87 : f32 to vector<32x128xf32>
    %228 = arith.mulf %227, %226 : vector<32x128xf32>
    %229 = math.tanh %228 : vector<32x128xf32>
    %cst_88 = arith.constant 5.000000e-01 : f32
    %230 = vector.broadcast %cst_88 : f32 to vector<32x128xf32>
    %231 = arith.mulf %230, %229 : vector<32x128xf32>
    %cst_89 = arith.constant 5.000000e-01 : f32
    %232 = vector.broadcast %cst_89 : f32 to vector<32x128xf32>
    %233 = arith.addf %231, %232 : vector<32x128xf32>
    %234 = vector.extract_strided_slice %225 {offsets = [32, 0], sizes = [32, 128], strides = [1, 1]} : vector<128x128xf32> to vector<32x128xf32>
    %cst_90 = arith.constant 5.000000e-01 : f32
    %235 = vector.broadcast %cst_90 : f32 to vector<32x128xf32>
    %236 = arith.mulf %235, %234 : vector<32x128xf32>
    %237 = math.tanh %236 : vector<32x128xf32>
    %cst_91 = arith.constant 5.000000e-01 : f32
    %238 = vector.broadcast %cst_91 : f32 to vector<32x128xf32>
    %239 = arith.mulf %238, %237 : vector<32x128xf32>
    %cst_92 = arith.constant 5.000000e-01 : f32
    %240 = vector.broadcast %cst_92 : f32 to vector<32x128xf32>
    %241 = arith.addf %239, %240 : vector<32x128xf32>
    %242 = vector.extract_strided_slice %225 {offsets = [64, 0], sizes = [32, 128], strides = [1, 1]} : vector<128x128xf32> to vector<32x128xf32>
    %243 = math.tanh %242 : vector<32x128xf32>
    %244 = vector.extract_strided_slice %225 {offsets = [96, 0], sizes = [32, 128], strides = [1, 1]} : vector<128x128xf32> to vector<32x128xf32>
    %cst_93 = arith.constant 5.000000e-01 : f32
    %245 = vector.broadcast %cst_93 : f32 to vector<32x128xf32>
    %246 = arith.mulf %245, %244 : vector<32x128xf32>
    %247 = math.tanh %246 : vector<32x128xf32>
    %cst_94 = arith.constant 5.000000e-01 : f32
    %248 = vector.broadcast %cst_94 : f32 to vector<32x128xf32>
    %249 = arith.mulf %248, %247 : vector<32x128xf32>
    %cst_95 = arith.constant 5.000000e-01 : f32
    %250 = vector.broadcast %cst_95 : f32 to vector<32x128xf32>
    %251 = arith.addf %249, %250 : vector<32x128xf32>
    %252 = arith.mulf %241, %178 : vector<32x128xf32>
    %253 = arith.mulf %233, %243 : vector<32x128xf32>
    %254 = arith.addf %252, %253 : vector<32x128xf32>
    %255 = math.tanh %254 : vector<32x128xf32>
    %256 = arith.mulf %251, %255 : vector<32x128xf32>
    %257 = vector.broadcast %18 : vector<32x1xf32> to vector<32x128xf32>
    %258 = arith.mulf %256, %257 : vector<32x128xf32>
    %cst_96 = arith.constant dense<0.000000e+00> : vector<128xf32>
    %259 = vector.multi_reduction <add>, %258, %cst_96 [0] : vector<32x128xf32> to vector<128xf32>
    %260 = vector.shape_cast %259 : vector<128xf32> to vector<1x128xf32>
    %261 = vector.broadcast %28 : vector<1x1xf32> to vector<1x128xf32>
    %262 = arith.addf %260, %261 : vector<1x128xf32>
    %263 = math.absf %262 : vector<1x128xf32>
    %264 = arith.addf %188, %263 : vector<1x128xf32>
    %c3_i32 = arith.constant 3 : i32
    %265 = vector.broadcast %264 : vector<1x128xf32> to vector<3x128xf32>
    %266 = arith.mulf %3, %265 : vector<3x128xf32>
    %267 = arith.addf %1, %266 : vector<3x128xf32>
    %268 = arith.truncf %267 : vector<3x128xf32> to vector<3x128xbf16>
    %cst_97 = arith.constant dense<0.000000e+00> : vector<32x128xf32>
    %269 = tpu.matmul %6, %268, %cst_97 {dimension_numbers = #tpu.dot_dimension_numbers<[1], [0], [0], [1], [0, 0, 1, 1], [], []>} : vector<32x3xbf16>, vector<3x128xbf16>, vector<32x128xf32> -> vector<32x128xf32>
    %270 = vector.broadcast %20 : vector<32x1xf32> to vector<32x128xf32>
    %271 = arith.addf %269, %270 : vector<32x128xf32>
    %cst_98 = arith.constant 0.000000e+00 : f32
    %272 = vector.broadcast %cst_98 : f32 to vector<32x128xf32>
    %273 = arith.maximumf %271, %272 : vector<32x128xf32>
    %274 = arith.truncf %273 : vector<32x128xf32> to vector<32x128xbf16>
    %cst_99 = arith.constant dense<0.000000e+00> : vector<32x128xf32>
    %275 = tpu.matmul %9, %274, %cst_99 {dimension_numbers = #tpu.dot_dimension_numbers<[1], [0], [0], [1], [0, 0, 1, 1], [], []>} : vector<32x32xbf16>, vector<32x128xbf16>, vector<32x128xf32> -> vector<32x128xf32>
    %276 = vector.broadcast %22 : vector<32x1xf32> to vector<32x128xf32>
    %277 = arith.addf %275, %276 : vector<32x128xf32>
    %cst_100 = arith.constant 0.000000e+00 : f32
    %278 = vector.broadcast %cst_100 : f32 to vector<32x128xf32>
    %279 = arith.maximumf %277, %278 : vector<32x128xf32>
    %280 = arith.truncf %279 : vector<32x128xf32> to vector<32x128xbf16>
    %cst_101 = arith.constant dense<0.000000e+00> : vector<32x128xf32>
    %281 = tpu.matmul %12, %280, %cst_101 {dimension_numbers = #tpu.dot_dimension_numbers<[1], [0], [0], [1], [0, 0, 1, 1], [], []>} : vector<32x32xbf16>, vector<32x128xbf16>, vector<32x128xf32> -> vector<32x128xf32>
    %282 = vector.broadcast %24 : vector<32x1xf32> to vector<32x128xf32>
    %283 = arith.addf %281, %282 : vector<32x128xf32>
    %cst_102 = arith.constant 0.000000e+00 : f32
    %284 = vector.broadcast %cst_102 : f32 to vector<32x128xf32>
    %285 = arith.maximumf %283, %284 : vector<32x128xf32>
    %286 = arith.truncf %285 : vector<32x128xf32> to vector<32x128xbf16>
    %cst_103 = arith.constant dense<0.000000e+00> : vector<4x128xf32>
    %287 = tpu.matmul %15, %286, %cst_103 {dimension_numbers = #tpu.dot_dimension_numbers<[1], [0], [0], [1], [0, 0, 1, 1], [], []>} : vector<4x32xbf16>, vector<32x128xbf16>, vector<4x128xf32> -> vector<4x128xf32>
    %288 = vector.broadcast %26 : vector<4x1xf32> to vector<4x128xf32>
    %289 = arith.addf %287, %288 : vector<4x128xf32>
    %290 = vector.extract_strided_slice %289 {offsets = [0, 0], sizes = [1, 128], strides = [1, 1]} : vector<4x128xf32> to vector<1x128xf32>
    %c3_i32_104 = arith.constant 3 : i32
    %291 = vector.broadcast %c3_i32_104 : i32 to vector<4x128xi32>
    %292 = arith.cmpi eq, %29, %291 : vector<4x128xi32>
    %293 = vector.shape_cast %290 : vector<1x128xf32> to vector<1x128xf32>
    %294 = vector.broadcast %293 : vector<1x128xf32> to vector<4x128xf32>
    %295 = arith.select %292, %294, %219 : vector<4x128xi1>, vector<4x128xf32>
    %296 = arith.minimumf %220, %290 : vector<1x128xf32>
    %c0_105 = arith.constant 0 : index
    %c0_106 = arith.constant 0 : index
    %c0_107 = arith.constant 0 : index
    %297 = vector.load %arg20[%c0_105, %c0_106, %c0_107] : memref<1x4x128xf32, #tpu.memory_space<vmem>>, vector<1x4x128xf32>
    %298 = vector.shape_cast %297 : vector<1x4x128xf32> to vector<4x128xf32>
    %299 = vector.shape_cast %295 : vector<4x128xf32> to vector<1x4x128xf32>
    tpu.vector_store %arg20[%c0_105, %c0_106, %c0_107], %299 {strides = array<i32>} : memref<1x4x128xf32, #tpu.memory_space<vmem>>, vector<1x4x128xf32>,
    %cst_108 = arith.constant 0.000000e+00 : f32
    %300 = vector.broadcast %cst_108 : f32 to vector<1x128xf32>
    %301 = arith.cmpf ole, %296, %300 : vector<1x128xf32>
    %302 = arith.extui %301 : vector<1x128xi1> to vector<1x128xi32>
    %303 = arith.sitofp %302 : vector<1x128xi32> to vector<1x128xf32>
    %c0_109 = arith.constant 0 : index
    %c0_110 = arith.constant 0 : index
    %c0_111 = arith.constant 0 : index
    %304 = vector.load %arg19[%c0_109, %c0_110, %c0_111] : memref<1x1x128xf32, #tpu.memory_space<vmem>>, vector<1x1x128xf32>
    %305 = vector.shape_cast %304 : vector<1x1x128xf32> to vector<1x128xf32>
    %306 = vector.shape_cast %303 : vector<1x128xf32> to vector<1x1x128xf32>
    tpu.vector_store %arg19[%c0_109, %c0_110, %c0_111], %306 {strides = array<i32>} : memref<1x1x128xf32, #tpu.memory_space<vmem>>, vector<1x1x128xf32>,
    %cst_112 = arith.constant -1.000000e+00 : f32
    %307 = vector.broadcast %cst_112 : f32 to vector<1x128xf32>
    %308 = arith.mulf %307, %296 : vector<1x128xf32>
    %cst_113 = arith.constant 5.000000e-01 : f32
    %309 = vector.broadcast %cst_113 : f32 to vector<1x128xf32>
    %310 = arith.mulf %309, %308 : vector<1x128xf32>
    %311 = math.tanh %310 : vector<1x128xf32>
    %cst_114 = arith.constant 5.000000e-01 : f32
    %312 = vector.broadcast %cst_114 : f32 to vector<1x128xf32>
    %313 = arith.mulf %312, %311 : vector<1x128xf32>
    %cst_115 = arith.constant 5.000000e-01 : f32
    %314 = vector.broadcast %cst_115 : f32 to vector<1x128xf32>
    %315 = arith.addf %313, %314 : vector<1x128xf32>
    %c0_116 = arith.constant 0 : index
    %c0_117 = arith.constant 0 : index
    %c0_118 = arith.constant 0 : index
    %316 = vector.load %arg21[%c0_116, %c0_117, %c0_118] : memref<1x1x128xf32, #tpu.memory_space<vmem>>, vector<1x1x128xf32>
    %317 = vector.shape_cast %316 : vector<1x1x128xf32> to vector<1x128xf32>
    %318 = vector.shape_cast %315 : vector<1x128xf32> to vector<1x1x128xf32>
    tpu.vector_store %arg21[%c0_116, %c0_117, %c0_118], %318 {strides = array<i32>} : memref<1x1x128xf32, #tpu.memory_space<vmem>>, vector<1x1x128xf32>,
    %c0_i32_119 = arith.constant 0 : i32
    %319 = arith.addf %191, %267 : vector<3x128xf32>
    %cst_120 = arith.constant 5.000000e-01 : f32
    %320 = vector.broadcast %cst_120 : f32 to vector<3x128xf32>
    %321 = arith.mulf %319, %320 : vector<3x128xf32>
    %322 = arith.truncf %321 : vector<3x128xf32> to vector<3x128xbf16>
    %cst_121 = arith.constant dense<0.000000e+00> : vector<32x128xf32>
    %323 = tpu.matmul %6, %322, %cst_121 {dimension_numbers = #tpu.dot_dimension_numbers<[1], [0], [0], [1], [0, 0, 1, 1], [], []>} : vector<32x3xbf16>, vector<3x128xbf16>, vector<32x128xf32> -> vector<32x128xf32>
    %324 = vector.broadcast %20 : vector<32x1xf32> to vector<32x128xf32>
    %325 = arith.addf %323, %324 : vector<32x128xf32>
    %cst_122 = arith.constant 0.000000e+00 : f32
    %326 = vector.broadcast %cst_122 : f32 to vector<32x128xf32>
    %327 = arith.maximumf %325, %326 : vector<32x128xf32>
    %328 = arith.truncf %327 : vector<32x128xf32> to vector<32x128xbf16>
    %cst_123 = arith.constant dense<0.000000e+00> : vector<32x128xf32>
    %329 = tpu.matmul %9, %328, %cst_123 {dimension_numbers = #tpu.dot_dimension_numbers<[1], [0], [0], [1], [0, 0, 1, 1], [], []>} : vector<32x32xbf16>, vector<32x128xbf16>, vector<32x128xf32> -> vector<32x128xf32>
    %330 = vector.broadcast %22 : vector<32x1xf32> to vector<32x128xf32>
    %331 = arith.addf %329, %330 : vector<32x128xf32>
    %cst_124 = arith.constant 0.000000e+00 : f32
    %332 = vector.broadcast %cst_124 : f32 to vector<32x128xf32>
    %333 = arith.maximumf %331, %332 : vector<32x128xf32>
    %334 = arith.truncf %333 : vector<32x128xf32> to vector<32x128xbf16>
    %cst_125 = arith.constant dense<0.000000e+00> : vector<32x128xf32>
    %335 = tpu.matmul %12, %334, %cst_125 {dimension_numbers = #tpu.dot_dimension_numbers<[1], [0], [0], [1], [0, 0, 1, 1], [], []>} : vector<32x32xbf16>, vector<32x128xbf16>, vector<32x128xf32> -> vector<32x128xf32>
    %336 = vector.broadcast %24 : vector<32x1xf32> to vector<32x128xf32>
    %337 = arith.addf %335, %336 : vector<32x128xf32>
    %cst_126 = arith.constant 0.000000e+00 : f32
    %338 = vector.broadcast %cst_126 : f32 to vector<32x128xf32>
    %339 = arith.maximumf %337, %338 : vector<32x128xf32>
    %340 = arith.truncf %339 : vector<32x128xf32> to vector<32x128xbf16>
    %cst_127 = arith.constant dense<0.000000e+00> : vector<4x128xf32>
    %341 = tpu.matmul %15, %340, %cst_127 {dimension_numbers = #tpu.dot_dimension_numbers<[1], [0], [0], [1], [0, 0, 1, 1], [], []>} : vector<4x32xbf16>, vector<32x128xbf16>, vector<4x128xf32> -> vector<4x128xf32>
    %342 = vector.broadcast %26 : vector<4x1xf32> to vector<4x128xf32>
    %343 = arith.addf %341, %342 : vector<4x128xf32>
    %344 = vector.extract_strided_slice %343 {offsets = [0, 0], sizes = [1, 128], strides = [1, 1]} : vector<4x128xf32> to vector<1x128xf32>
    %cst_128 = arith.constant 0.000000e+00 : f32
    %345 = vector.broadcast %cst_128 : f32 to vector<1x128xf32>
    %346 = arith.cmpf olt, %214, %345 : vector<1x128xf32>
    %cst_129 = arith.constant 0.000000e+00 : f32
    %347 = vector.broadcast %cst_129 : f32 to vector<1x128xf32>
    %348 = arith.cmpf ogt, %344, %347 : vector<1x128xf32>
    %349 = arith.xori %346, %348 : vector<1x128xi1>
    %350 = arith.extui %349 : vector<1x128xi1> to vector<1x128xi32>
    %351 = arith.sitofp %350 : vector<1x128xi32> to vector<1x128xf32>
    %cst_130 = arith.constant 1.000000e+00 : f32
    %352 = vector.broadcast %cst_130 : f32 to vector<1x128xf32>
    %353 = arith.subf %352, %351 : vector<1x128xf32>
    %354 = vector.broadcast %351 : vector<1x128xf32> to vector<3x128xf32>
    %355 = arith.mulf %321, %354 : vector<3x128xf32>
    %356 = vector.broadcast %353 : vector<1x128xf32> to vector<3x128xf32>
    %357 = arith.mulf %191, %356 : vector<3x128xf32>
    %358 = arith.addf %355, %357 : vector<3x128xf32>
    %359 = vector.broadcast %351 : vector<1x128xf32> to vector<3x128xf32>
    %360 = arith.mulf %267, %359 : vector<3x128xf32>
    %361 = vector.broadcast %353 : vector<1x128xf32> to vector<3x128xf32>
    %362 = arith.mulf %321, %361 : vector<3x128xf32>
    %363 = arith.addf %360, %362 : vector<3x128xf32>
    %364 = arith.mulf %344, %351 : vector<1x128xf32>
    %365 = arith.mulf %214, %353 : vector<1x128xf32>
    %366 = arith.addf %364, %365 : vector<1x128xf32>
    %c1_i32_131 = arith.constant 1 : i32
    %367 = arith.addf %358, %363 : vector<3x128xf32>
    %cst_132 = arith.constant 5.000000e-01 : f32
    %368 = vector.broadcast %cst_132 : f32 to vector<3x128xf32>
    %369 = arith.mulf %367, %368 : vector<3x128xf32>
    %370 = arith.truncf %369 : vector<3x128xf32> to vector<3x128xbf16>
    %cst_133 = arith.constant dense<0.000000e+00> : vector<32x128xf32>
    %371 = tpu.matmul %6, %370, %cst_133 {dimension_numbers = #tpu.dot_dimension_numbers<[1], [0], [0], [1], [0, 0, 1, 1], [], []>} : vector<32x3xbf16>, vector<3x128xbf16>, vector<32x128xf32> -> vector<32x128xf32>
    %372 = vector.broadcast %20 : vector<32x1xf32> to vector<32x128xf32>
    %373 = arith.addf %371, %372 : vector<32x128xf32>
    %cst_134 = arith.constant 0.000000e+00 : f32
    %374 = vector.broadcast %cst_134 : f32 to vector<32x128xf32>
    %375 = arith.maximumf %373, %374 : vector<32x128xf32>
    %376 = arith.truncf %375 : vector<32x128xf32> to vector<32x128xbf16>
    %cst_135 = arith.constant dense<0.000000e+00> : vector<32x128xf32>
    %377 = tpu.matmul %9, %376, %cst_135 {dimension_numbers = #tpu.dot_dimension_numbers<[1], [0], [0], [1], [0, 0, 1, 1], [], []>} : vector<32x32xbf16>, vector<32x128xbf16>, vector<32x128xf32> -> vector<32x128xf32>
    %378 = vector.broadcast %22 : vector<32x1xf32> to vector<32x128xf32>
    %379 = arith.addf %377, %378 : vector<32x128xf32>
    %cst_136 = arith.constant 0.000000e+00 : f32
    %380 = vector.broadcast %cst_136 : f32 to vector<32x128xf32>
    %381 = arith.maximumf %379, %380 : vector<32x128xf32>
    %382 = arith.truncf %381 : vector<32x128xf32> to vector<32x128xbf16>
    %cst_137 = arith.constant dense<0.000000e+00> : vector<32x128xf32>
    %383 = tpu.matmul %12, %382, %cst_137 {dimension_numbers = #tpu.dot_dimension_numbers<[1], [0], [0], [1], [0, 0, 1, 1], [], []>} : vector<32x32xbf16>, vector<32x128xbf16>, vector<32x128xf32> -> vector<32x128xf32>
    %384 = vector.broadcast %24 : vector<32x1xf32> to vector<32x128xf32>
    %385 = arith.addf %383, %384 : vector<32x128xf32>
    %cst_138 = arith.constant 0.000000e+00 : f32
    %386 = vector.broadcast %cst_138 : f32 to vector<32x128xf32>
    %387 = arith.maximumf %385, %386 : vector<32x128xf32>
    %388 = arith.truncf %387 : vector<32x128xf32> to vector<32x128xbf16>
    %cst_139 = arith.constant dense<0.000000e+00> : vector<4x128xf32>
    %389 = tpu.matmul %15, %388, %cst_139 {dimension_numbers = #tpu.dot_dimension_numbers<[1], [0], [0], [1], [0, 0, 1, 1], [], []>} : vector<4x32xbf16>, vector<32x128xbf16>, vector<4x128xf32> -> vector<4x128xf32>
    %390 = vector.broadcast %26 : vector<4x1xf32> to vector<4x128xf32>
    %391 = arith.addf %389, %390 : vector<4x128xf32>
    %392 = vector.extract_strided_slice %391 {offsets = [0, 0], sizes = [1, 128], strides = [1, 1]} : vector<4x128xf32> to vector<1x128xf32>
    %cst_140 = arith.constant 0.000000e+00 : f32
    %393 = vector.broadcast %cst_140 : f32 to vector<1x128xf32>
    %394 = arith.cmpf olt, %366, %393 : vector<1x128xf32>
    %cst_141 = arith.constant 0.000000e+00 : f32
    %395 = vector.broadcast %cst_141 : f32 to vector<1x128xf32>
    %396 = arith.cmpf ogt, %392, %395 : vector<1x128xf32>
    %397 = arith.xori %394, %396 : vector<1x128xi1>
    %398 = arith.extui %397 : vector<1x128xi1> to vector<1x128xi32>
    %399 = arith.sitofp %398 : vector<1x128xi32> to vector<1x128xf32>
    %cst_142 = arith.constant 1.000000e+00 : f32
    %400 = vector.broadcast %cst_142 : f32 to vector<1x128xf32>
    %401 = arith.subf %400, %399 : vector<1x128xf32>
    %402 = vector.broadcast %399 : vector<1x128xf32> to vector<3x128xf32>
    %403 = arith.mulf %369, %402 : vector<3x128xf32>
    %404 = vector.broadcast %401 : vector<1x128xf32> to vector<3x128xf32>
    %405 = arith.mulf %358, %404 : vector<3x128xf32>
    %406 = arith.addf %403, %405 : vector<3x128xf32>
    %407 = vector.broadcast %399 : vector<1x128xf32> to vector<3x128xf32>
    %408 = arith.mulf %363, %407 : vector<3x128xf32>
    %409 = vector.broadcast %401 : vector<1x128xf32> to vector<3x128xf32>
    %410 = arith.mulf %369, %409 : vector<3x128xf32>
    %411 = arith.addf %408, %410 : vector<3x128xf32>
    %412 = arith.mulf %392, %399 : vector<1x128xf32>
    %413 = arith.mulf %366, %401 : vector<1x128xf32>
    %414 = arith.addf %412, %413 : vector<1x128xf32>
    %c2_i32_143 = arith.constant 2 : i32
    %415 = arith.addf %406, %411 : vector<3x128xf32>
    %cst_144 = arith.constant 5.000000e-01 : f32
    %416 = vector.broadcast %cst_144 : f32 to vector<3x128xf32>
    %417 = arith.mulf %415, %416 : vector<3x128xf32>
    %418 = arith.truncf %417 : vector<3x128xf32> to vector<3x128xbf16>
    %cst_145 = arith.constant dense<0.000000e+00> : vector<32x128xf32>
    %419 = tpu.matmul %6, %418, %cst_145 {dimension_numbers = #tpu.dot_dimension_numbers<[1], [0], [0], [1], [0, 0, 1, 1], [], []>} : vector<32x3xbf16>, vector<3x128xbf16>, vector<32x128xf32> -> vector<32x128xf32>
    %420 = vector.broadcast %20 : vector<32x1xf32> to vector<32x128xf32>
    %421 = arith.addf %419, %420 : vector<32x128xf32>
    %cst_146 = arith.constant 0.000000e+00 : f32
    %422 = vector.broadcast %cst_146 : f32 to vector<32x128xf32>
    %423 = arith.maximumf %421, %422 : vector<32x128xf32>
    %424 = arith.truncf %423 : vector<32x128xf32> to vector<32x128xbf16>
    %cst_147 = arith.constant dense<0.000000e+00> : vector<32x128xf32>
    %425 = tpu.matmul %9, %424, %cst_147 {dimension_numbers = #tpu.dot_dimension_numbers<[1], [0], [0], [1], [0, 0, 1, 1], [], []>} : vector<32x32xbf16>, vector<32x128xbf16>, vector<32x128xf32> -> vector<32x128xf32>
    %426 = vector.broadcast %22 : vector<32x1xf32> to vector<32x128xf32>
    %427 = arith.addf %425, %426 : vector<32x128xf32>
    %cst_148 = arith.constant 0.000000e+00 : f32
    %428 = vector.broadcast %cst_148 : f32 to vector<32x128xf32>
    %429 = arith.maximumf %427, %428 : vector<32x128xf32>
    %430 = arith.truncf %429 : vector<32x128xf32> to vector<32x128xbf16>
    %cst_149 = arith.constant dense<0.000000e+00> : vector<32x128xf32>
    %431 = tpu.matmul %12, %430, %cst_149 {dimension_numbers = #tpu.dot_dimension_numbers<[1], [0], [0], [1], [0, 0, 1, 1], [], []>} : vector<32x32xbf16>, vector<32x128xbf16>, vector<32x128xf32> -> vector<32x128xf32>
    %432 = vector.broadcast %24 : vector<32x1xf32> to vector<32x128xf32>
    %433 = arith.addf %431, %432 : vector<32x128xf32>
    %cst_150 = arith.constant 0.000000e+00 : f32
    %434 = vector.broadcast %cst_150 : f32 to vector<32x128xf32>
    %435 = arith.maximumf %433, %434 : vector<32x128xf32>
    %436 = arith.truncf %435 : vector<32x128xf32> to vector<32x128xbf16>
    %cst_151 = arith.constant dense<0.000000e+00> : vector<4x128xf32>
    %437 = tpu.matmul %15, %436, %cst_151 {dimension_numbers = #tpu.dot_dimension_numbers<[1], [0], [0], [1], [0, 0, 1, 1], [], []>} : vector<4x32xbf16>, vector<32x128xbf16>, vector<4x128xf32> -> vector<4x128xf32>
    %438 = vector.broadcast %26 : vector<4x1xf32> to vector<4x128xf32>
    %439 = arith.addf %437, %438 : vector<4x128xf32>
    %440 = vector.extract_strided_slice %439 {offsets = [0, 0], sizes = [1, 128], strides = [1, 1]} : vector<4x128xf32> to vector<1x128xf32>
    %cst_152 = arith.constant 0.000000e+00 : f32
    %441 = vector.broadcast %cst_152 : f32 to vector<1x128xf32>
    %442 = arith.cmpf olt, %414, %441 : vector<1x128xf32>
    %cst_153 = arith.constant 0.000000e+00 : f32
    %443 = vector.broadcast %cst_153 : f32 to vector<1x128xf32>
    %444 = arith.cmpf ogt, %440, %443 : vector<1x128xf32>
    %445 = arith.xori %442, %444 : vector<1x128xi1>
    %446 = arith.extui %445 : vector<1x128xi1> to vector<1x128xi32>
    %447 = arith.sitofp %446 : vector<1x128xi32> to vector<1x128xf32>
    %cst_154 = arith.constant 1.000000e+00 : f32
    %448 = vector.broadcast %cst_154 : f32 to vector<1x128xf32>
    %449 = arith.subf %448, %447 : vector<1x128xf32>
    %450 = vector.broadcast %447 : vector<1x128xf32> to vector<3x128xf32>
    %451 = arith.mulf %417, %450 : vector<3x128xf32>
    %452 = vector.broadcast %449 : vector<1x128xf32> to vector<3x128xf32>
    %453 = arith.mulf %406, %452 : vector<3x128xf32>
    %454 = arith.addf %451, %453 : vector<3x128xf32>
    %455 = vector.broadcast %447 : vector<1x128xf32> to vector<3x128xf32>
    %456 = arith.mulf %411, %455 : vector<3x128xf32>
    %457 = vector.broadcast %449 : vector<1x128xf32> to vector<3x128xf32>
    %458 = arith.mulf %417, %457 : vector<3x128xf32>
    %459 = arith.addf %456, %458 : vector<3x128xf32>
    %460 = arith.mulf %440, %447 : vector<1x128xf32>
    %461 = arith.mulf %414, %449 : vector<1x128xf32>
    %462 = arith.addf %460, %461 : vector<1x128xf32>
    %c3_i32_155 = arith.constant 3 : i32
    %463 = arith.addf %454, %459 : vector<3x128xf32>
    %cst_156 = arith.constant 5.000000e-01 : f32
    %464 = vector.broadcast %cst_156 : f32 to vector<3x128xf32>
    %465 = arith.mulf %463, %464 : vector<3x128xf32>
    %466 = arith.truncf %465 : vector<3x128xf32> to vector<3x128xbf16>
    %cst_157 = arith.constant dense<0.000000e+00> : vector<32x128xf32>
    %467 = tpu.matmul %6, %466, %cst_157 {dimension_numbers = #tpu.dot_dimension_numbers<[1], [0], [0], [1], [0, 0, 1, 1], [], []>} : vector<32x3xbf16>, vector<3x128xbf16>, vector<32x128xf32> -> vector<32x128xf32>
    %468 = vector.broadcast %20 : vector<32x1xf32> to vector<32x128xf32>
    %469 = arith.addf %467, %468 : vector<32x128xf32>
    %cst_158 = arith.constant 0.000000e+00 : f32
    %470 = vector.broadcast %cst_158 : f32 to vector<32x128xf32>
    %471 = arith.maximumf %469, %470 : vector<32x128xf32>
    %472 = arith.truncf %471 : vector<32x128xf32> to vector<32x128xbf16>
    %cst_159 = arith.constant dense<0.000000e+00> : vector<32x128xf32>
    %473 = tpu.matmul %9, %472, %cst_159 {dimension_numbers = #tpu.dot_dimension_numbers<[1], [0], [0], [1], [0, 0, 1, 1], [], []>} : vector<32x32xbf16>, vector<32x128xbf16>, vector<32x128xf32> -> vector<32x128xf32>
    %474 = vector.broadcast %22 : vector<32x1xf32> to vector<32x128xf32>
    %475 = arith.addf %473, %474 : vector<32x128xf32>
    %cst_160 = arith.constant 0.000000e+00 : f32
    %476 = vector.broadcast %cst_160 : f32 to vector<32x128xf32>
    %477 = arith.maximumf %475, %476 : vector<32x128xf32>
    %478 = arith.truncf %477 : vector<32x128xf32> to vector<32x128xbf16>
    %cst_161 = arith.constant dense<0.000000e+00> : vector<32x128xf32>
    %479 = tpu.matmul %12, %478, %cst_161 {dimension_numbers = #tpu.dot_dimension_numbers<[1], [0], [0], [1], [0, 0, 1, 1], [], []>} : vector<32x32xbf16>, vector<32x128xbf16>, vector<32x128xf32> -> vector<32x128xf32>
    %480 = vector.broadcast %24 : vector<32x1xf32> to vector<32x128xf32>
    %481 = arith.addf %479, %480 : vector<32x128xf32>
    %cst_162 = arith.constant 0.000000e+00 : f32
    %482 = vector.broadcast %cst_162 : f32 to vector<32x128xf32>
    %483 = arith.maximumf %481, %482 : vector<32x128xf32>
    %484 = arith.truncf %483 : vector<32x128xf32> to vector<32x128xbf16>
    %cst_163 = arith.constant dense<0.000000e+00> : vector<4x128xf32>
    %485 = tpu.matmul %15, %484, %cst_163 {dimension_numbers = #tpu.dot_dimension_numbers<[1], [0], [0], [1], [0, 0, 1, 1], [], []>} : vector<4x32xbf16>, vector<32x128xbf16>, vector<4x128xf32> -> vector<4x128xf32>
    %486 = vector.broadcast %26 : vector<4x1xf32> to vector<4x128xf32>
    %487 = arith.addf %485, %486 : vector<4x128xf32>
    %488 = vector.extract_strided_slice %487 {offsets = [0, 0], sizes = [1, 128], strides = [1, 1]} : vector<4x128xf32> to vector<1x128xf32>
    %cst_164 = arith.constant 0.000000e+00 : f32
    %489 = vector.broadcast %cst_164 : f32 to vector<1x128xf32>
    %490 = arith.cmpf olt, %462, %489 : vector<1x128xf32>
    %cst_165 = arith.constant 0.000000e+00 : f32
    %491 = vector.broadcast %cst_165 : f32 to vector<1x128xf32>
    %492 = arith.cmpf ogt, %488, %491 : vector<1x128xf32>
    %493 = arith.xori %490, %492 : vector<1x128xi1>
    %494 = arith.extui %493 : vector<1x128xi1> to vector<1x128xi32>
    %495 = arith.sitofp %494 : vector<1x128xi32> to vector<1x128xf32>
    %cst_166 = arith.constant 1.000000e+00 : f32
    %496 = vector.broadcast %cst_166 : f32 to vector<1x128xf32>
    %497 = arith.subf %496, %495 : vector<1x128xf32>
    %498 = vector.broadcast %495 : vector<1x128xf32> to vector<3x128xf32>
    %499 = arith.mulf %465, %498 : vector<3x128xf32>
    %500 = vector.broadcast %497 : vector<1x128xf32> to vector<3x128xf32>
    %501 = arith.mulf %454, %500 : vector<3x128xf32>
    %502 = arith.addf %499, %501 : vector<3x128xf32>
    %503 = vector.broadcast %495 : vector<1x128xf32> to vector<3x128xf32>
    %504 = arith.mulf %459, %503 : vector<3x128xf32>
    %505 = vector.broadcast %497 : vector<1x128xf32> to vector<3x128xf32>
    %506 = arith.mulf %465, %505 : vector<3x128xf32>
    %507 = arith.addf %504, %506 : vector<3x128xf32>
    %508 = arith.mulf %488, %495 : vector<1x128xf32>
    %509 = arith.mulf %462, %497 : vector<1x128xf32>
    %510 = arith.addf %508, %509 : vector<1x128xf32>
    %511 = arith.addf %502, %507 : vector<3x128xf32>
    %cst_167 = arith.constant 5.000000e-01 : f32
    %512 = vector.broadcast %cst_167 : f32 to vector<3x128xf32>
    %513 = arith.mulf %511, %512 : vector<3x128xf32>
    %514 = arith.truncf %513 : vector<3x128xf32> to vector<3x128xbf16>
    %cst_168 = arith.constant dense<0.000000e+00> : vector<32x128xf32>
    %515 = tpu.matmul %6, %514, %cst_168 {dimension_numbers = #tpu.dot_dimension_numbers<[1], [0], [0], [1], [0, 0, 1, 1], [], []>} : vector<32x3xbf16>, vector<3x128xbf16>, vector<32x128xf32> -> vector<32x128xf32>
    %516 = vector.broadcast %20 : vector<32x1xf32> to vector<32x128xf32>
    %517 = arith.addf %515, %516 : vector<32x128xf32>
    %cst_169 = arith.constant 0.000000e+00 : f32
    %518 = vector.broadcast %cst_169 : f32 to vector<32x128xf32>
    %519 = arith.maximumf %517, %518 : vector<32x128xf32>
    %520 = arith.truncf %519 : vector<32x128xf32> to vector<32x128xbf16>
    %cst_170 = arith.constant dense<0.000000e+00> : vector<32x128xf32>
    %521 = tpu.matmul %9, %520, %cst_170 {dimension_numbers = #tpu.dot_dimension_numbers<[1], [0], [0], [1], [0, 0, 1, 1], [], []>} : vector<32x32xbf16>, vector<32x128xbf16>, vector<32x128xf32> -> vector<32x128xf32>
    %522 = vector.broadcast %22 : vector<32x1xf32> to vector<32x128xf32>
    %523 = arith.addf %521, %522 : vector<32x128xf32>
    %cst_171 = arith.constant 0.000000e+00 : f32
    %524 = vector.broadcast %cst_171 : f32 to vector<32x128xf32>
    %525 = arith.maximumf %523, %524 : vector<32x128xf32>
    %526 = arith.truncf %525 : vector<32x128xf32> to vector<32x128xbf16>
    %cst_172 = arith.constant dense<0.000000e+00> : vector<32x128xf32>
    %527 = tpu.matmul %12, %526, %cst_172 {dimension_numbers = #tpu.dot_dimension_numbers<[1], [0], [0], [1], [0, 0, 1, 1], [], []>} : vector<32x32xbf16>, vector<32x128xbf16>, vector<32x128xf32> -> vector<32x128xf32>
    %528 = vector.broadcast %24 : vector<32x1xf32> to vector<32x128xf32>
    %529 = arith.addf %527, %528 : vector<32x128xf32>
    %cst_173 = arith.constant 0.000000e+00 : f32
    %530 = vector.broadcast %cst_173 : f32 to vector<32x128xf32>
    %531 = arith.maximumf %529, %530 : vector<32x128xf32>
    %532 = arith.truncf %531 : vector<32x128xf32> to vector<32x128xbf16>
    %cst_174 = arith.constant dense<0.000000e+00> : vector<4x128xf32>
    %533 = tpu.matmul %15, %532, %cst_174 {dimension_numbers = #tpu.dot_dimension_numbers<[1], [0], [0], [1], [0, 0, 1, 1], [], []>} : vector<4x32xbf16>, vector<32x128xbf16>, vector<4x128xf32> -> vector<4x128xf32>
    %534 = vector.broadcast %26 : vector<4x1xf32> to vector<4x128xf32>
    %535 = arith.addf %533, %534 : vector<4x128xf32>
    %536 = vector.extract_strided_slice %535 {offsets = [0, 0], sizes = [1, 128], strides = [1, 1]} : vector<4x128xf32> to vector<1x128xf32>
    %537 = vector.extract_strided_slice %535 {offsets = [1, 0], sizes = [3, 128], strides = [1, 1]} : vector<4x128xf32> to vector<3x128xf32>
    %c0_175 = arith.constant 0 : index
    %c0_176 = arith.constant 0 : index
    %c0_177 = arith.constant 0 : index
    %538 = vector.load %arg18[%c0_175, %c0_176, %c0_177] : memref<1x1x128xf32, #tpu.memory_space<vmem>>, vector<1x1x128xf32>
    %539 = vector.shape_cast %538 : vector<1x1x128xf32> to vector<1x128xf32>
    %540 = vector.shape_cast %536 : vector<1x128xf32> to vector<1x1x128xf32>
    tpu.vector_store %arg18[%c0_175, %c0_176, %c0_177], %540 {strides = array<i32>} : memref<1x1x128xf32, #tpu.memory_space<vmem>>, vector<1x1x128xf32>,
    %541 = math.tanh %537 : vector<3x128xf32>
    %c0_178 = arith.constant 0 : index
    %c0_179 = arith.constant 0 : index
    %c0_180 = arith.constant 0 : index
    %542 = vector.load %arg16[%c0_178, %c0_179, %c0_180] : memref<1x3x128xf32, #tpu.memory_space<vmem>>, vector<1x3x128xf32>
    %543 = vector.shape_cast %542 : vector<1x3x128xf32> to vector<3x128xf32>
    %544 = vector.shape_cast %541 : vector<3x128xf32> to vector<1x3x128xf32>
    tpu.vector_store %arg16[%c0_178, %c0_179, %c0_180], %544 {strides = array<i32>} : memref<1x3x128xf32, #tpu.memory_space<vmem>>, vector<1x3x128xf32>,
    %545 = arith.subf %513, %1 : vector<3x128xf32>
    %546 = arith.mulf %545, %545 : vector<3x128xf32>
    %cst_181 = arith.constant dense<0.000000e+00> : vector<128xf32>
    %547 = vector.multi_reduction <add>, %546, %cst_181 [0] : vector<3x128xf32> to vector<128xf32>
    %548 = vector.shape_cast %547 : vector<128xf32> to vector<1x128xf32>
    %549 = math.sqrt %548 : vector<1x128xf32>
    %550 = arith.mulf %3, %3 : vector<3x128xf32>
    %cst_182 = arith.constant dense<0.000000e+00> : vector<128xf32>
    %551 = vector.multi_reduction <add>, %550, %cst_182 [0] : vector<3x128xf32> to vector<128xf32>
    %552 = vector.shape_cast %551 : vector<128xf32> to vector<1x128xf32>
    %553 = math.sqrt %552 : vector<1x128xf32>
    %554 = arith.divf %549, %553 : vector<1x128xf32>
    %c0_183 = arith.constant 0 : index
    %c0_184 = arith.constant 0 : index
    %c0_185 = arith.constant 0 : index
    %555 = vector.load %arg17[%c0_183, %c0_184, %c0_185] : memref<1x1x128xf32, #tpu.memory_space<vmem>>, vector<1x1x128xf32>
    %556 = vector.shape_cast %555 : vector<1x1x128xf32> to vector<1x128xf32>
    %557 = vector.shape_cast %554 : vector<1x128xf32> to vector<1x1x128xf32>
    tpu.vector_store %arg17[%c0_183, %c0_184, %c0_185], %557 {strides = array<i32>} : memref<1x1x128xf32, #tpu.memory_space<vmem>>, vector<1x1x128xf32>,
    return
  }
  func.func @transform_0(%arg0: i32, %arg1: i32) -> (i32, i32, i32) {
    %c0_i32 = arith.constant 0 : i32
    %c0_i32_0 = arith.constant 0 : i32
    return %arg0, %c0_i32, %arg1 : i32, i32, i32
  }
  func.func @transform_1(%arg0: i32, %arg1: i32) -> (i32, i32, i32) {
    %c0_i32 = arith.constant 0 : i32
    %c0_i32_0 = arith.constant 0 : i32
    return %arg0, %c0_i32, %arg1 : i32, i32, i32
  }
  func.func @transform_2(%arg0: i32, %arg1: i32) -> (i32, i32, i32) {
    %c0_i32 = arith.constant 0 : i32
    %c0_i32_0 = arith.constant 0 : i32
    %c0_i32_1 = arith.constant 0 : i32
    return %arg0, %c0_i32, %c0_i32_0 : i32, i32, i32
  }
  func.func @transform_3(%arg0: i32, %arg1: i32) -> (i32, i32, i32) {
    %c0_i32 = arith.constant 0 : i32
    %c0_i32_0 = arith.constant 0 : i32
    %c0_i32_1 = arith.constant 0 : i32
    return %arg0, %c0_i32, %c0_i32_0 : i32, i32, i32
  }
  func.func @transform_4(%arg0: i32, %arg1: i32) -> (i32, i32, i32) {
    %c0_i32 = arith.constant 0 : i32
    %c0_i32_0 = arith.constant 0 : i32
    %c0_i32_1 = arith.constant 0 : i32
    return %arg0, %c0_i32, %c0_i32_0 : i32, i32, i32
  }
  func.func @transform_5(%arg0: i32, %arg1: i32) -> (i32, i32, i32) {
    %c0_i32 = arith.constant 0 : i32
    %c0_i32_0 = arith.constant 0 : i32
    %c0_i32_1 = arith.constant 0 : i32
    return %arg0, %c0_i32, %c0_i32_0 : i32, i32, i32
  }
  func.func @transform_6(%arg0: i32, %arg1: i32) -> (i32, i32, i32) {
    %c0_i32 = arith.constant 0 : i32
    %c0_i32_0 = arith.constant 0 : i32
    %c0_i32_1 = arith.constant 0 : i32
    return %arg0, %c0_i32, %c0_i32_0 : i32, i32, i32
  }
  func.func @transform_7(%arg0: i32, %arg1: i32) -> (i32, i32, i32) {
    %c0_i32 = arith.constant 0 : i32
    %c0_i32_0 = arith.constant 0 : i32
    %c0_i32_1 = arith.constant 0 : i32
    return %arg0, %c0_i32, %c0_i32_0 : i32, i32, i32
  }
  func.func @transform_8(%arg0: i32, %arg1: i32) -> (i32, i32, i32) {
    %c0_i32 = arith.constant 0 : i32
    %c0_i32_0 = arith.constant 0 : i32
    %c0_i32_1 = arith.constant 0 : i32
    return %arg0, %c0_i32, %c0_i32_0 : i32, i32, i32
  }
  func.func @transform_9(%arg0: i32, %arg1: i32) -> (i32, i32, i32) {
    %c0_i32 = arith.constant 0 : i32
    %c0_i32_0 = arith.constant 0 : i32
    %c0_i32_1 = arith.constant 0 : i32
    return %arg0, %c0_i32, %c0_i32_0 : i32, i32, i32
  }
  func.func @transform_10(%arg0: i32, %arg1: i32) -> (i32, i32) {
    %c0_i32 = arith.constant 0 : i32
    %c0_i32_0 = arith.constant 0 : i32
    %c0_i32_1 = arith.constant 0 : i32
    return %c0_i32, %c0_i32_0 : i32, i32
  }
  func.func @transform_11(%arg0: i32, %arg1: i32) -> (i32, i32) {
    %c0_i32 = arith.constant 0 : i32
    %c0_i32_0 = arith.constant 0 : i32
    %c0_i32_1 = arith.constant 0 : i32
    return %c0_i32, %c0_i32_0 : i32, i32
  }
  func.func @transform_12(%arg0: i32, %arg1: i32) -> (i32, i32) {
    %c0_i32 = arith.constant 0 : i32
    %c0_i32_0 = arith.constant 0 : i32
    %c0_i32_1 = arith.constant 0 : i32
    return %c0_i32, %c0_i32_0 : i32, i32
  }
  func.func @transform_13(%arg0: i32, %arg1: i32) -> (i32, i32) {
    %c0_i32 = arith.constant 0 : i32
    %c0_i32_0 = arith.constant 0 : i32
    %c0_i32_1 = arith.constant 0 : i32
    return %c0_i32, %c0_i32_0 : i32, i32
  }
  func.func @transform_14(%arg0: i32, %arg1: i32) -> (i32, i32, i32) {
    %c0_i32 = arith.constant 0 : i32
    %c0_i32_0 = arith.constant 0 : i32
    return %arg0, %c0_i32, %arg1 : i32, i32, i32
  }
  func.func @transform_15(%arg0: i32, %arg1: i32) -> (i32, i32, i32) {
    %c0_i32 = arith.constant 0 : i32
    %c0_i32_0 = arith.constant 0 : i32
    return %arg0, %c0_i32, %arg1 : i32, i32, i32
  }
  func.func @transform_16(%arg0: i32, %arg1: i32) -> (i32, i32, i32) {
    %c0_i32 = arith.constant 0 : i32
    %c0_i32_0 = arith.constant 0 : i32
    return %arg0, %c0_i32, %arg1 : i32, i32, i32
  }
  func.func @transform_17(%arg0: i32, %arg1: i32) -> (i32, i32, i32) {
    %c0_i32 = arith.constant 0 : i32
    %c0_i32_0 = arith.constant 0 : i32
    return %arg0, %c0_i32, %arg1 : i32, i32, i32
  }
  func.func @transform_18(%arg0: i32, %arg1: i32) -> (i32, i32, i32) {
    %c0_i32 = arith.constant 0 : i32
    %c0_i32_0 = arith.constant 0 : i32
    return %arg0, %c0_i32, %arg1 : i32, i32, i32
  }
  func.func @transform_19(%arg0: i32, %arg1: i32) -> (i32, i32, i32) {
    %c0_i32 = arith.constant 0 : i32
    %c0_i32_0 = arith.constant 0 : i32
    return %arg0, %c0_i32, %arg1 : i32, i32, i32
  }
}

</mosaic_0001>

<bundles_post_ra>
// kernel: tpu_custom_call.1
= control target key start
LH: loop header
LB: loop body
LE: loop exit
PB: predicated region body
PF: predicated region fallthrough
CT: control target
= control target key end

     0   :  { %s6500_s0 = inlined_call_operand.vmem [shape: f32[2,3,128], index: 0, kind: input, shape index: {}]   ;;  %s6501_s1 = inlined_call_operand.vmem [shape: f32[2,3,128], index: 1, kind: input, shape index: {}]   ;;  %s6502_s2 = inlined_call_operand.vmem [shape: f32[2,32,3], index: 2, kind: input, shape index: {}]   ;;  %s6503_s3 = inlined_call_operand.vmem [shape: f32[2,32,1], index: 3, kind: input, shape index: {}]   ;;  %s6504_s4 = inlined_call_operand.vmem [shape: f32[2,32,32], index: 4, kind: input, shape index: {}]   ;;  %s6505_s5 = inlined_call_operand.vmem [shape: f32[2,32,1], index: 5, kind: input, shape index: {}]   ;;  %s6506_s6 = inlined_call_operand.vmem [shape: f32[2,32,32], index: 6, kind: input, shape index: {}]   ;;  %s6507_s7 = inlined_call_operand.vmem [shape: f32[2,32,1], index: 7, kind: input, shape index: {}]   ;;  %s6508_s8 = inlined_call_operand.vmem [shape: f32[2,4,32], index: 8, kind: input, shape index: {}]   ;;  %s6509_s9 = inlined_call_operand.vmem [shape: f32[2,4,1], index: 9, kind: input, shape index: {}]   ;;  %s6510_s10 = inlined_call_operand.vmem [shape: f32[128,64], index: 10, kind: input, shape index: {}]   ;;  %s6511_s11 = inlined_call_operand.vmem [shape: f32[128,1], index: 11, kind: input, shape index: {}]   ;;  %s6512_s12 = inlined_call_operand.vmem [shape: f32[32,1], index: 12, kind: input, shape index: {}]   ;;  %s6513_s13 = inlined_call_operand.<no memory space> [shape: f32[1,1], index: 13, kind: input, shape index: {}]   ;;  %s6514_s14 = inlined_call_operand.vmem [shape: f32[2,3,128], index: 14, kind: output, shape index: {0}]   ;;  %s6515_s15 = inlined_call_operand.hbm [shape: f32[2,1,128], index: 15, kind: output, shape index: {1}]   ;;  %s6516_s16 = inlined_call_operand.hbm [shape: f32[2,1,128], index: 16, kind: output, shape index: {2}]   ;;  %s6517_s17 = inlined_call_operand.hbm [shape: f32[2,1,128], index: 17, kind: output, shape index: {3}]   ;;  %s6518_s18 = inlined_call_operand.hbm [shape: f32[2,4,128], index: 18, kind: output, shape index: {4}]   ;;  %s6519_s19 = inlined_call_operand.hbm [shape: f32[2,1,128], index: 19, kind: output, shape index: {5}]  }
   0x1   :  { %6572 = sst [smem:[#allocation45_spill]] %s6500_s0  ;;  %v25_v0 = vstv %s6513_s13 }
   0x2   :  { %6573 = sst [smem:[#allocation46_spill]] %s6501_s1  ;;  %26 = vst [vmem:[#allocation2] sm:$0x1] %v25_v0 }
   0x3   :  { %6574 = sst [smem:[#allocation47_spill]] %s6502_s2 }
   0x4   :  { %6575 = sst [smem:[#allocation48_spill]] %s6503_s3 }
   0x5   :  { %6576 = sst [smem:[#allocation49_spill]] %s6504_s4 }
   0x6   :  { %6577 = sst [smem:[#allocation50_spill]] %s6505_s5 }
   0x7   :  { %6578 = sst [smem:[#allocation51_spill]] %s6514_s14 }
   0x8   :  { %6579 = sst [smem:[#allocation52_spill]] %s6517_s17 }
   0x9   :  { %27 = vsyncpa [#allocation4], 0 }
   0xa   :  { %29 = vsyncpa [#allocation4 + $0x1], 0 }
   0xb   :  { %30 = vsyncpa [#allocation6], 0 }
   0xc   :  { %32 = vsyncpa [#allocation6 + $0x1], 0 }
   0xd   :  { %33 = vsyncpa [#allocation9], 0 }
   0xe   :  { %35 = vsyncpa [#allocation9 + $0x1], 0  ;;  %s5371_s20 = smov 0   ;;  %s5373_s21 = smov 0  }
   0xf   :  { %s5375_s1 = smov 0   ;;  %s5377_s22 = smov 0  }
  0x10   :  { %s5379_s2 = smov 0   ;;  %s5381_s23 = smov 0  }
  0x11 LB: > { %6580 = sst [smem:[#allocation14_spill]] %s5237_s20  ;;  %s6521_s13 = sadd.s32 4294967295, %s5257_s23   ;;  %s5257_s23 = sphi %s5381_s23, %s41_s23   ;;  %s5253_s2 = sphi %s5379_s2, %s6668_s2   ;;  %s5249_s22 = sphi %s5377_s22, %s6667_s22   ;;  %s5245_s1 = sphi %s5375_s1, %s6666_s1   ;;  %s5241_s21 = sphi %s5373_s21, %s6670_s21   ;;  %s5237_s20 = sphi %s5371_s20, %s6669_s20  }
  0x12   : > { %6581 = sst [smem:[#allocation15_spill]] %s5245_s1  ;;  %s6520_s24 = sadd.s32 4294967294, %s5257_s23  }
  0x13   : > { %6582 = sst [smem:[#allocation16_spill]] %s5253_s2  ;;  %s53_s25 = sadd.s32 1, %s5253_s2 }
  0x14   : > { %s438_s3 = sadd.s32 1, %s5245_s1  ;;  %p55_p0 = scmp.ge.s32.totalorder %s53_s25, 2 }
  0x15   : > { %p448_p1 = scmp.ne.s32.totalorder %s5245_s1, %s5241_s21  ;;  %p449_p2 = scmp.eq.s32.totalorder %s6521_s13, 1 }
  0x16   : > { %p454_p3 = scmp.ne.s32.totalorder %s5241_s21, %s5237_s20  ;;  %s6672_s25 = smov (%p55_p0, %s53_s25), 0 }
  0x17   : > { %6583 = sst [smem:[#allocation17_spill]] %s6672_s25  ;;  %p5413_p4 = por %p449_p2, %p448_p1 }
  0x18   : > { %p455_p5 = scmp.eq.s32.totalorder %s6520_s24, 1  ;;  %s433_s27 = ssub.s32 %s5253_s2, %s6672_s25 }
  0x19   : > { %p4221_p6 = scmp.ge.s32.totalorder %s5257_s23, 1  ;;  %p436_p7 = scmp.eq.s32.totalorder %s433_s27, 0 }
  0x1a   : > { %p5422_p8 = por %p455_p5, %p454_p3  ;;  %p679_p9 = scmp.lt.s32.totalorder %s5257_s23, 3 }
  0x1b   : > { %s5428_s29 = scalar_select %p436_p7, %s5245_s1, %s438_s3  }
  0x1c   : > { %s6585_s28 = scalar_select %p5422_p8, 1, 0 }
  0x1d   : > { %6587 = sst [smem:[#allocation19_spill]] %s5428_s29  ;;  %p680_p10 = pnand %p4221_p6, %p679_p9 }
  0x1e   : > { %6586 = sst [smem:[#allocation18_spill]] %s6585_s28 }
  0x1f   : > { %683 = sbr.rel (%p680_p10) target bundleno = 8134 (0x1fc6), region = 76 }
  0x26   : > { %p805_p11 = scmp.lt.s32.totalorder %s5249_s22, 1  ;;  %v5259_v1 = vmov 0   ;;  %vm977_vm0 = vcmask 1040384   ;;  %s6588_s13 = sld [smem:[#allocation45_spill]]  ;;  %vm978_vm1 = vcmask 1041408   ;;  %v5260_v7 = vmov 65535  }
  0x27   : > { %4923 = vset.pattern.permute.xlu0 %v5259_v1  ;;  %4924 = vset.pattern.permute.xlu1 %v5259_v1  ;;  %s6589_s1 = sld [smem:[#allocation46_spill]]  ;;  %s6590_s17 = sld [smem:[#allocation47_spill]]  ;;  %v979_v8 = vsel %vm977_vm0, 4294967295, %v5260_v7  ;;  %vm970_vm2 = vcmask 23552   ;;  %v928_v29 = vld [vmem:[%s6511_s11] sm:$0xff]  ;;  %v929_v30 = vld [vmem:[%s6511_s11 + $0x8] sm:$0xff] }
  0x28   : > { %s806_s0 = scalar_select %p805_p11, %s5249_s22, 1  ;;  %v5466_v11 = vsel %vm978_vm1, %v979_v8, 0  ;;  %v932_v31 = vld [vmem:[%s6511_s11 + $0x20] sm:$0xff]  ;;  %v933_v32 = vld [vmem:[%s6511_s11 + $0x28] sm:$0xff]  ;;  %v930_v33 = vld [vmem:[%s6511_s11 + $0x10] sm:$0xff]  ;;  %vm1059_vm3 = vcmask 261120  }
  0x29   : > { %s6592_s14 = sld [smem:[#allocation48_spill]]  ;;  %s6593_s5 = sld [smem:[#allocation50_spill]]  ;;  %v934_v34 = vld [vmem:[%s6511_s11 + $0x30] sm:$0xff]  ;;  %v931_v35 = vld [vmem:[%s6511_s11 + $0x18] sm:$0xff]  ;;  %v936_v37 = vld [vmem:[%s6511_s11 + $0x40] sm:$0xff]  ;;  %vm5262_vm4 = vmmov 0  }
  0x2a   : > { %s5432_s30 = sshll.u32 %s806_s0, 2  ;;  %s5434_s27 = sshll.u32 %s806_s0, 5  ;;  %v935_v36 = vld [vmem:[%s6511_s11 + $0x38] sm:$0xff]  ;;  %v937_v38 = vld [vmem:[%s6511_s11 + $0x48] sm:$0xff]  ;;  %v938_v39 = vld [vmem:[%s6511_s11 + $0x50] sm:$0xff]  ;;  %vm1337_vm5 = vcmask 523264  }
  0x2b   : > { %v939_v40 = vld [vmem:[%s6511_s11 + $0x58] sm:$0xff]  ;;  %v940_v41 = vld [vmem:[%s6511_s11 + $0x60] sm:$0xff]  ;;  %v941_v42 = vld [vmem:[%s6511_s11 + $0x68] sm:$0xff]  ;;  %s6594_s4 = sld [smem:[#allocation49_spill]]  ;;  %s5557_s29 = scalar_lea.vmem %s6506_s6, %s5434_s27 }
  0x2c   : > { %s5440_s25 = scalar_lea.vmem %s6588_s13, %s5432_s30  ;;  %v942_v43 = vld [vmem:[%s6511_s11 + $0x70] sm:$0xff]  ;;  %v943_v44 = vld [vmem:[%s6511_s11 + $0x78] sm:$0xff]  ;;  %v911_v45 = vld [vmem:[%s6512_s12] sm:$0xff]  ;;  %s6323_s2 = sshll.u32 %s5249_s22, 4 }
  0x2d   : > { %s5446_s28 = scalar_lea.vmem %s6589_s1, %s5432_s30  ;;  %s823_s0 = scalar_lea.vmem %s6590_s17, %s5434_s27  ;;  %v5453_v2 = vld [vmem:[%s5440_s25] sm:$0x7]  ;;  %v912_v46 = vld [vmem:[%s6512_s12 + $0x8] sm:$0xff]  ;;  %v913_v47 = vld [vmem:[%s6512_s12 + $0x10] sm:$0xff] }
  0x2e   : > { %v5456_v3 = vld [vmem:[%s5446_s28] sm:$0x7]  ;;  %v868_v5 = vld [vmem:[%s823_s0 + $0x8] sm:$0xff]  ;;  %v869_v15 = vld [vmem:[%s823_s0 + $0x10] sm:$0xff] }
  0x2f   : > { %v867_v4 = vld [vmem:[%s823_s0] sm:$0xff]  ;;  %v947_v6 = vmul.f32 0.5, %v5456_v3  ;;  %s828_s20 = scalar_lea.vmem %s6592_s14, %s5434_s27  ;;  %v870_v16 = vld [vmem:[%s823_s0 + $0x18] sm:$0xff]  ;;  %s838_s24 = scalar_lea.vmem %s6593_s5, %s5434_s27  ;;  %v880_v54 = vld [vmem:[%s5557_s29 + $0x8] sm:$0xff] }
  0x30   : > { %v5459_v9 = vpack.c.bf16 %v868_v5, %v867_v4  ;;  %v915_v13 = vld [vmem:[%s828_s20] sm:$0xff]  ;;  %v917_v14 = vld [vmem:[%s828_s20 + $0x10] sm:$0xff]  ;;  %v916_v18 = vld [vmem:[%s828_s20 + $0x8] sm:$0xff]  ;;  %v5475_v20 = vpack.c.bf16 %v870_v16, %v869_v15  ;;  %s848_s0 = scalar_lea.vmem %s6507_s7, %s5434_s27  ;;  %s856_s5 = scalar_lea.vmem %s6509_s9, %s5432_s30 }
  0x31   : > { %v948_v10 = vadd.f32 %v947_v6, %v5453_v2  ;;  %952 = vperm.xlu0 %4923, %v915_v13   ;;  %962 = vperm.xlu1 %4924, %v917_v14   ;;  %v918_v19 = vld [vmem:[%s828_s20 + $0x18] sm:$0xff]  ;;  %v919_v21 = vld [vmem:[%s838_s24] sm:$0xff]  ;;  %v920_v22 = vld [vmem:[%s838_s24 + $0x8] sm:$0xff]  ;;  %s5551_s17 = scalar_lea.vmem %s6594_s4, %s5434_s27  ;;  %s852_s14 = scalar_lea.vmem %s6508_s8, %s5432_s30 }
  0x32   : > { %6591 = vst [vmem:[#allocation20_spill] sm:$0xff] %v5459_v9  ;;  %4508 = vmatprep.mubr.msk.bf16.mxu0 %vm970_vm2, %v5459_v9  ;;  %v921_v23 = vld [vmem:[%s838_s24 + $0x10] sm:$0xff]  ;;  %v922_v24 = vld [vmem:[%s838_s24 + $0x18] sm:$0xff]  ;;  %v923_v25 = vld [vmem:[%s848_s0] sm:$0xff] }
  0x33   : > { %v949_v12 = vpack.c.bf16 %v948_v10, %v948_v10  ;;  %v924_v26 = vld [vmem:[%s848_s0 + $0x8] sm:$0xff]  ;;  %v925_v27 = vld [vmem:[%s848_s0 + $0x10] sm:$0xff]  ;;  %v926_v28 = vld [vmem:[%s848_s0 + $0x18] sm:$0xff] }
  0x34   : > { %v914_v48 = vld [vmem:[%s6512_s12 + $0x18] sm:$0xff]  ;;  %v944_v49 = vld [vmem:[#allocation2] sm:$0x1]  ;;  %v874_v52 = vld [vmem:[%s5551_s17 + $0x8] sm:$0xff] }
  0x35   : > { %v982_v17 = vand.u32 %v5466_v11, %v949_v12  ;;  %957 = vperm.xlu0 %4923, %v916_v18   ;;  %967 = vperm.xlu1 %4924, %v918_v19   ;;  %v927_v50 = vld [vmem:[%s856_s5] sm:$0xf]  ;;  %v875_v15 = vld [vmem:[%s5551_s17 + $0x10] sm:$0xff]  ;;  %v876_v16 = vld [vmem:[%s5551_s17 + $0x18] sm:$0xff] }
  0x36   : > { %v873_v51 = vld [vmem:[%s5551_s17] sm:$0xff] }
  0x37   : > { %4506 = vmatprep.subr.bf16.mxu0 %v982_v17  ;;  %v879_v53 = vld [vmem:[%s5557_s29] sm:$0xff]  ;;  %v5563_v55 = vpack.c.bf16 %v874_v52, %v873_v51 }
  0x38   : > { %4507 = vmatpush3.bf16.msra.mxu0 %v982_v17  ;;  %v5565_v56 = vpack.c.bf16 %v880_v54, %v879_v53  ;;  %v5585_v17 = vpack.c.bf16 %v876_v16, %v875_v15  ;;  %v893_v16 = vld [vmem:[%s6510_s10 + $0x30] sm:$0xff] }
  0x39   : > { %1041 = vperm.xlu0 %4923, %v919_v21   ;;  %1046 = vperm.xlu1 %4924, %v920_v22  }
  0x3a   : > { %4516 = vmatprep.mubr.msk.bf16.mxu1 %vm1059_vm3, %v5563_v55 }
  0x3b   : > { %4509 = vmatmul.mubr.msk.bf16.vlgmr.msra.gmra.mrb[0].mxu0 %vm970_vm2, %v5475_v20 }
  0x3c   : > { %4524 = vmatprep.mubr.msk.bf16.mxu0 %vm1059_vm3, %v5565_v56 }
  0x3d   : > { %1051 = vperm.xlu0 %4923, %v921_v23   ;;  %1056 = vperm.xlu1 %4924, %v922_v24  }
  0x41   : > { %1123 = vperm.xlu0 %4923, %v923_v25   ;;  %1128 = vperm.xlu1 %4924, %v924_v26  }
  0x45   : > { %1133 = vperm.xlu0 %4923, %v925_v27   ;;  %1138 = vperm.xlu1 %4924, %v926_v28  }
  0x49   : > { %1259 = vperm.xlu0 %4923, %v928_v29   ;;  %1264 = vperm.xlu1 %4924, %v929_v30  }
  0x4d   : > { %1279 = vperm.xlu0 %4923, %v932_v31   ;;  %1284 = vperm.xlu1 %4924, %v933_v32  }
  0x51   : > { %1269 = vperm.xlu0 %4923, %v930_v33   ;;  %1289 = vperm.xlu1 %4924, %v934_v34  }
  0x55   : > { %1274 = vperm.xlu0 %4923, %v931_v35   ;;  %1294 = vperm.xlu1 %4924, %v935_v36  }
  0x59   : > { %1299 = vperm.xlu0 %4923, %v936_v37   ;;  %1304 = vperm.xlu1 %4924, %v937_v38   ;;  %v881_v37 = vld [vmem:[%s5557_s29 + $0x10] sm:$0xff]  ;;  %v882_v38 = vld [vmem:[%s5557_s29 + $0x18] sm:$0xff]  ;;  %s6075_s29 = sand.u32 1, %s5241_s21  }
  0x5a   : > { %s4222_s5 = sshll.u32 %s6075_s29, 2  ;;  %s6569_s3 = scalar_lea.vmem [#allocation7], %s6075_s29 }
  0x5b   : > { %s6090_s27 = scalar_lea.vmem [#allocation8], %s4222_s5  ;;  %s6570_s0 = scalar_lea.vmem [#allocation10], %s6075_s29 }
  0x5c   : > { %s3880_s24 = sshll.u32 %s6090_s27, 4  ;;  %s3881_s24 = int_to_ptr.vmem [resolvable:$true] %s3880_s24 }
  0x5d   : > { %1309 = vperm.xlu0 %4923, %v938_v39   ;;  %1314 = vperm.xlu1 %4924, %v939_v40   ;;  %v5603_v39 = vpack.c.bf16 %v882_v38, %v881_v37  ;;  %v6528_v40 = vmov 0.0  }
  0x61   : > { %1319 = vperm.xlu0 %4923, %v940_v41   ;;  %1324 = vperm.xlu1 %4924, %v941_v42   ;;  %v887_v41 = vld [vmem:[%s6510_s10] sm:$0xff]  ;;  %v888_v42 = vld [vmem:[%s6510_s10 + $0x8] sm:$0xff] }
  0x65   : > { %1329 = vperm.xlu0 %4923, %v942_v43   ;;  %1334 = vperm.xlu1 %4924, %v943_v44   ;;  %v5614_v43 = vpack.c.bf16 %v888_v42, %v887_v41 }
  0x69   : > { %1533 = vperm.xlu0 %4923, %v911_v45   ;;  %1538 = vperm.xlu1 %4924, %v912_v46  }
  0x6d   : > { %1543 = vperm.xlu0 %4923, %v913_v47   ;;  %1548 = vperm.xlu1 %4924, %v914_v48  }
  0x71   : > { %1566 = vperm.xlu0 %4923, %v944_v49   ;;  %1204 = vperm.xlu1 %4924, %v927_v50  }
  0xb0   : > { %v5571_v57 = vpop.permute.xlu1 %962  ;;  %v5573_v58 = vpop.permute.xlu0 %952 }
  0xb4   : > { %v5576_v62 = vpop.permute.xlu1 %967  ;;  %v5579_v1 = vpop.permute.xlu0 %957 }
  0xb8   : > { %v5589_v18 = vpop.permute.xlu0 %1041  ;;  %v5591_v19 = vpop.permute.xlu1 %1046 }
  0xbc   : > { %v5593_v21 = vpop.permute.xlu0 %1051  ;;  %v5596_v25 = vpop.permute.xlu1 %1056 }
  0xc0   : > { %v5620_v44 = vpop.permute.xlu0 %1123  ;;  %v5622_v45 = vpop.permute.xlu1 %1128 }
  0xc4   : > { %v5624_v46 = vpop.permute.xlu0 %1133  ;;  %v5627_v50 = vpop.permute.xlu1 %1138 }
  0xc8   : > { %v5715_v37 = vpop.permute.xlu0 %1259  ;;  %v5717_v38 = vpop.permute.xlu1 %1264 }
  0xc9   : > { %6599 = vst [vmem:[#allocation25_spill] sm:$0xff] %v5715_v37  ;;  %6600 = vst [vmem:[#allocation26_spill] sm:$0xff] %v5717_v38 }
  0xcc   : > { %v5719_v41 = vpop.permute.xlu0 %1279  ;;  %v5721_v42 = vpop.permute.xlu1 %1284 }
  0xcd   : > { %6601 = vst [vmem:[#allocation27_spill] sm:$0xff] %v5719_v41  ;;  %6602 = vst [vmem:[#allocation28_spill] sm:$0xff] %v5721_v42 }
 0x10e   : > { %v4510_v59 = vpop.f32.mrb[0].mxu0 }
 0x10f   : > { %v1027_v60 = vadd.f32 %v4510_v59, %v5571_v57  ;;  %v1018_v61 = vpop.f32.mrb[1].mxu0 }
 0x110   : > { %v1019_v63 = vadd.f32 %v1018_v61, %v5573_v58  ;;  %v4511_v0 = vpop.f32.mrb[2].mxu0 }
 0x111   : > { %v1030_v4 = vadd.f32 %v4511_v0, %v5576_v62  ;;  %v1021_v5 = vpop.f32.mrb[3].mxu0  ;;  %v1035_v7 = vmax.f32 %v1027_v60, 0.0 }
 0x112   : > { %v1022_v6 = vadd.f32 %v1021_v5, %v5579_v1  ;;  %v1033_v10 = vmax.f32 %v1019_v63, 0.0 }
 0x113   : > { %v1036_v8 = vmax.f32 %v1030_v4, 0.0 }
 0x114   : > { %v1034_v12 = vmax.f32 %v1022_v6, 0.0  ;;  %v885_v6 = vld [vmem:[%s852_s14] sm:$0xf]  ;;  %s4336_s14 = sshll.u32 %s5249_s22, 6 }
 0x115   : > { %v1038_v13 = vpack.c.bf16 %v1036_v8, %v1035_v7  ;;  %v889_v7 = vld [vmem:[%s6510_s10 + $0x10] sm:$0xff]  ;;  %v890_v8 = vld [vmem:[%s6510_s10 + $0x18] sm:$0xff]  ;;  %s6329_s13 = scalar_lea.hbm %s6518_s18, %s4336_s14 }
 0x116   : > { %v1037_v14 = vpack.c.bf16 %v1034_v12, %v1033_v10  ;;  %v891_v10 = vld [vmem:[%s6510_s10 + $0x20] sm:$0xff]  ;;  %v892_v12 = vld [vmem:[%s6510_s10 + $0x28] sm:$0xff] }
 0x117   : > { %v5653_v15 = vpack.c.bf16 %v892_v12, %v891_v10 }
 0x118   : > { %4512 = vmatprep.subr.bf16.mxu1 %v1037_v14 }
 0x119   : > { %4513 = vmatpush3.bf16.msra.mxu1 %v1037_v14  ;;  %v5651_v14 = vpack.c.bf16 %v890_v8, %v889_v7 }
 0x11a   : > { %4514 = vmatprep.subr.bf16.mxu1 %v1038_v13 }
 0x11d   : > { %4515 = vmatpush3.bf16.msra.mxu1 %v1038_v13  ;;  %v5649_v13 = vpack.c.bf16 %v885_v6, %v885_v6 }
 0x11e   : > { %4528 = vmatprep.subr.bf16.mxu1 %v6528_v40 }
 0x120   : > { %4517 = vmatmul.mubr.msk.bf16.vlgmr.msra.gmra.mrb[0].mxu1 %vm1059_vm3, %v5585_v17 }
 0x121   : > { %4532 = vmatprep.mubr.msk.bf16.mxu1 %vm5262_vm4, %v6528_v40 }
 0x1f3   : > { %v4518_v22 = vpop.f32.mrb[0].mxu1 }
 0x1f4   : > { %v1109_v23 = vadd.f32 %v4518_v22, %v5593_v21  ;;  %v1100_v24 = vpop.f32.mrb[1].mxu1  ;;  %v894_v22 = vld [vmem:[%s6510_s10 + $0x38] sm:$0xff] }
 0x1f5   : > { %v1101_v26 = vadd.f32 %v1100_v24, %v5589_v18  ;;  %v4519_v27 = vpop.f32.mrb[2].mxu1  ;;  %v896_v24 = vld [vmem:[%s6510_s10 + $0x48] sm:$0xff] }
 0x1f6   : > { %v1112_v28 = vadd.f32 %v4519_v27, %v5596_v25  ;;  %v1103_v29 = vpop.f32.mrb[3].mxu1  ;;  %v1117_v31 = vmax.f32 %v1109_v23, 0.0  ;;  %v895_v23 = vld [vmem:[%s6510_s10 + $0x40] sm:$0xff] }
 0x1f7   : > { %v1104_v30 = vadd.f32 %v1103_v29, %v5591_v19  ;;  %v1115_v33 = vmax.f32 %v1101_v26, 0.0  ;;  %v5675_v26 = vpack.c.bf16 %v894_v22, %v893_v16  ;;  %v5677_v27 = vpack.c.bf16 %v896_v24, %v895_v23  ;;  %v898_v29 = vld [vmem:[%s6510_s10 + $0x58] sm:$0xff] }
 0x1f8   : > { %v1118_v32 = vmax.f32 %v1112_v28, 0.0  ;;  %v897_v28 = vld [vmem:[%s6510_s10 + $0x50] sm:$0xff] }
 0x1f9   : > { %v1116_v34 = vmax.f32 %v1104_v30, 0.0  ;;  %6595 = vst [vmem:[#allocation21_spill] sm:$0xff] %v5677_v27  ;;  %v899_v30 = vld [vmem:[%s6510_s10 + $0x60] sm:$0xff] }
 0x1fa   : > { %v1120_v35 = vpack.c.bf16 %v1118_v32, %v1117_v31  ;;  %v900_v31 = vld [vmem:[%s6510_s10 + $0x68] sm:$0xff]  ;;  %v5695_v32 = vpack.c.bf16 %v898_v29, %v897_v28 }
 0x1fb   : > { %v1119_v36 = vpack.c.bf16 %v1116_v34, %v1115_v33  ;;  %v5697_v33 = vpack.c.bf16 %v900_v31, %v899_v30  ;;  %v901_v34 = vld [vmem:[%s6510_s10 + $0x70] sm:$0xff] }
 0x1fc   : > { %6596 = vst [vmem:[#allocation22_spill] sm:$0xff] %v5695_v32 }
 0x1fd   : > { %4520 = vmatprep.subr.bf16.mxu0 %v1119_v36  ;;  %6597 = vst [vmem:[#allocation23_spill] sm:$0xff] %v5697_v33 }
 0x1fe   : > { %4521 = vmatpush3.bf16.msra.mxu0 %v1119_v36 }
 0x1ff   : > { %4522 = vmatprep.subr.bf16.mxu0 %v1120_v35 }
 0x202   : > { %4523 = vmatpush3.bf16.msra.mxu0 %v1120_v35  ;;  %v902_v35 = vld [vmem:[%s6510_s10 + $0x78] sm:$0xff] }
 0x203   : > { %v5709_v36 = vpack.c.bf16 %v902_v35, %v901_v34 }
 0x205   : > { %4525 = vmatmul.mubr.msk.bf16.vlgmr.msra.gmra.mrb[4].mxu0 %vm1059_vm3, %v5603_v39  ;;  %6598 = vst [vmem:[#allocation24_spill] sm:$0xff] %v5709_v36 }
 0x206   : > { %4540 = vmatprep.mubr.msk.bf16.mxu0 %vm1337_vm5, %v5614_v43 }
 0x2d8   : > { %v4526_v47 = vpop.f32.mrb[4].mxu0 }
 0x2d9   : > { %v1190_v48 = vadd.f32 %v4526_v47, %v5624_v46  ;;  %v1181_v49 = vpop.f32.mrb[5].mxu0  ;;  %v5723_v47 = vpop.permute.xlu0 %1269 }
 0x2da   : > { %v1182_v51 = vadd.f32 %v1181_v49, %v5620_v44  ;;  %v4527_v52 = vpop.f32.mrb[6].mxu0  ;;  %6603 = vst [vmem:[#allocation29_spill] sm:$0xff] %v5723_v47 }
 0x2db   : > { %v1193_v53 = vadd.f32 %v4527_v52, %v5627_v50  ;;  %v1184_v54 = vpop.f32.mrb[7].mxu0  ;;  %v1198_v60 = vmax.f32 %v1190_v48, 0.0  ;;  %v5725_v48 = vpop.permute.xlu1 %1289 }
 0x2dc   : > { %v1185_v59 = vadd.f32 %v1184_v54, %v5622_v45  ;;  %v1196_v63 = vmax.f32 %v1182_v51, 0.0  ;;  %6604 = vst [vmem:[#allocation30_spill] sm:$0xff] %v5725_v48 }
 0x2dd   : > { %v1199_v61 = vmax.f32 %v1193_v53, 0.0  ;;  %v5727_v49 = vpop.permute.xlu0 %1274 }
 0x2de   : > { %v1197_v0 = vmax.f32 %v1185_v59, 0.0  ;;  %6605 = vst [vmem:[#allocation31_spill] sm:$0xff] %v5727_v49 }
 0x2df   : > { %v1201_v4 = vpack.c.bf16 %v1199_v61, %v1198_v60  ;;  %v5729_v51 = vpop.permute.xlu1 %1294 }
 0x2e0   : > { %v1200_v5 = vpack.c.bf16 %v1197_v0, %v1196_v63  ;;  %6606 = vst [vmem:[#allocation32_spill] sm:$0xff] %v5729_v51 }
 0x2e1   : > { %v5737_v10 = vpop.permute.xlu0 %1299 }
 0x2e2   : > { %4529 = vmatpush3.bf16.msra.mxu1 %v1200_v5  ;;  %4536 = vmatprep.subr.bf16.mxu0 %v1200_v5  ;;  %6607 = vst [vmem:[#allocation33_spill] sm:$0xff] %v5737_v10 }
 0x2e3   : > { %4537 = vmatpush3.bf16.msra.mxu0 %v1200_v5  ;;  %4530 = vmatprep.subr.bf16.mxu1 %v6528_v40  ;;  %v5739_v22 = vpop.permute.xlu1 %1304 }
 0x2e4   : > { %4538 = vmatprep.subr.bf16.mxu0 %v1201_v4  ;;  %6608 = vst [vmem:[#allocation34_spill] sm:$0xff] %v5739_v22 }
 0x2e6   : > { %4531 = vmatpush3.bf16.msra.mxu1 %v1201_v4 }
 0x2e7   : > { %4539 = vmatpush3.bf16.msra.mxu0 %v1201_v4 }
 0x2e9   : > { %4533 = vmatmul.mubr.msk.bf16.vlgmr.msra.gmra.mrb[4].mxu1 %vm1059_vm3, %v5649_v13 }
 0x2ea   : > { %4541 = vmatmul.mubr.msk.bf16.vlgmr.msra.gmra.mrb[8].mxu0 %vm1337_vm5, %v5651_v14  ;;  %4558 = vmatprep.mubr.msk.bf16.mxu1 %vm970_vm2, %v5459_v9 }
 0x2eb   : > { %4544 = vmatprep.mubr.msk.bf16.mxu0 %vm1337_vm5, %v5653_v15 }
 0x2f2   : > { %4545 = vmatmul.mubr.msk.bf16.gmra.mrb[12].mxu0 %vm1337_vm5, %v5675_v26 }
 0x2f3   : > { %4548 = vmatprep.mubr.msk.bf16.mxu0 %vm1337_vm5, %v5677_v27 }
 0x2fa   : > { %4549 = vmatmul.mubr.msk.bf16.gmra.mrb[16].mxu0 %vm1337_vm5, %v5695_v32 }
 0x2fb   : > { %4552 = vmatprep.mubr.msk.bf16.mxu0 %vm1337_vm5, %v5697_v33 }
 0x302   : > { %4553 = vmatmul.mubr.msk.bf16.gmra.mrb[20].mxu0 %vm1337_vm5, %v5709_v36 }
 0x303   : > { %4594 = vmatprep.mubr.msk.bf16.mxu0 %vm1337_vm5, %v5614_v43 }
 0x3bc   : > { %v5731_v52 = vpop.f32.mrb[4].mxu1 }
 0x3bd   : > { %v4542_v53 = vpop.f32.mrb[8].mxu0  ;;  %v4534_v54 = vpop.f32.mrb[5].mxu1 }
 0x3be   : > { %v1405_v59 = vadd.f32 %v4542_v53, %v5723_v47  ;;  %v1396_v60 = vpop.f32.mrb[9].mxu0  ;;  %v1247_v61 = vpop.f32.mrb[6].mxu1 }
 0x3bf   : > { %v1397_v63 = vadd.f32 %v1396_v60, %v5715_v37  ;;  %v4543_v0 = vpop.f32.mrb[10].mxu0  ;;  %v4535_v4 = vpop.f32.mrb[7].mxu1 }
 0x3c0   : > { %v1408_v5 = vadd.f32 %v4543_v0, %v5727_v49  ;;  %v1399_v6 = vpop.f32.mrb[11].mxu0  ;;  %v1461_v7 = vmul.f32 0.5, %v1405_v59  ;;  %v5744_v54 = vpop.permute.xlu0 %1309 }
 0x3c1   : > { %v1400_v8 = vadd.f32 %v1399_v6, %v5717_v38  ;;  %v1459_v12 = vmul.f32 0.5, %v1397_v63  ;;  %6609 = vst [vmem:[#allocation35_spill] sm:$0xff] %v5744_v54  ;;  %v5747_v63 = vpop.permute.xlu1 %1314 }
 0x3c2   : > { %v1462_v16 = vmul.f32 0.5, %v1408_v5  ;;  %4925 = vtanh.f32 %v1461_v7  ;;  %6610 = vst [vmem:[#allocation36_spill] sm:$0xff] %v5747_v63 }
 0x3c3   : > { %v1460_v23 = vmul.f32 0.5, %v1400_v8  ;;  %4927 = vtanh.f32 %v1459_v12 }
 0x3c4   : > { %4929 = vtanh.f32 %v1462_v16  ;;  %v5750_v8 = vpop.permute.xlu0 %1319 }
 0x3c5   : > { %v4546_v24 = vpop.f32.mrb[12].mxu0  ;;  %4931 = vtanh.f32 %v1460_v23  ;;  %6611 = vst [vmem:[#allocation37_spill] sm:$0xff] %v5750_v8 }
 0x3c6   : > { %v1421_v28 = vadd.f32 %v4546_v24, %v5725_v48  ;;  %v1412_v29 = vpop.f32.mrb[13].mxu0 }
 0x3c7   : > { %v1413_v30 = vadd.f32 %v1412_v29, %v5719_v41  ;;  %v4547_v31 = vpop.f32.mrb[14].mxu0  ;;  %v5754_v29 = vpop.permute.xlu1 %1324 }
 0x3c8   : > { %v1477_v34 = vmul.f32 0.5, %v1421_v28  ;;  %v1424_v35 = vadd.f32 %v4547_v31, %v5729_v51  ;;  %v1415_v53 = vpop.f32.mrb[15].mxu0 }
 0x3c9   : > { %v1475_v59 = vmul.f32 0.5, %v1413_v30  ;;  %v1416_v60 = vadd.f32 %v1415_v53, %v5721_v42 }
 0x3ca   : > { %4933 = vtanh.f32 %v1477_v34  ;;  %v1478_v61 = vmul.f32 0.5, %v1424_v35 }
 0x3cb   : > { %4935 = vtanh.f32 %v1475_v59  ;;  %v1476_v0 = vmul.f32 0.5, %v1416_v60  ;;  %v5757_v60 = vpop.permute.xlu0 %1329 }
 0x3cc   : > { %4937 = vtanh.f32 %v1478_v61  ;;  %v4926_v7 = vpop.eup %4925  ;;  %6612 = vst [vmem:[#allocation38_spill] sm:$0xff] %v5757_v60 }
 0x3cd   : > { %4939 = vtanh.f32 %v1476_v0  ;;  %v4550_v4 = vpop.f32.mrb[16].mxu0  ;;  %v4928_v28 = vpop.eup %4927  ;;  %v1469_v34 = vmul.f32 0.5, %v4926_v7 }
 0x3ce   : > { %v1437_v5 = vadd.f32 %v4550_v4, %v5744_v54  ;;  %v1428_v6 = vpop.f32.mrb[17].mxu0  ;;  %v4930_v31 = vpop.eup %4929  ;;  %v1467_v61 = vmul.f32 0.5, %v4928_v28 }
 0x3cf   : > { %v1429_v12 = vadd.f32 %v1428_v6, %v5737_v10  ;;  %v4551_v16 = vpop.f32.mrb[18].mxu0  ;;  %v4932_v35 = vpop.eup %4931  ;;  %v1473_v6 = vadd.f32 0.5, %v1469_v34 }
 0x3d0   : > { %4941 = vtanh.f32 %v1437_v5  ;;  %v1440_v23 = vadd.f32 %v4551_v16, %v5747_v63  ;;  %v1431_v24 = vpop.f32.mrb[19].mxu0  ;;  %v1470_v16 = vmul.f32 0.5, %v4930_v31  ;;  %v1468_v7 = vmul.f32 0.5, %v4932_v35 }
 0x3d1   : > { %4943 = vtanh.f32 %v1429_v12  ;;  %v1432_v30 = vadd.f32 %v1431_v24, %v5739_v22  ;;  %v5760_v22 = vpop.permute.xlu1 %1334  ;;  %v1471_v31 = vadd.f32 0.5, %v1467_v61 }
 0x3d2   : > { %4945 = vtanh.f32 %v1440_v23  ;;  %v1474_v48 = vadd.f32 0.5, %v1470_v16 }
 0x3d3   : > { %4947 = vtanh.f32 %v1432_v30 }
 0x3d4   : > { %v4934_v53 = vpop.eup %4933 }
 0x3d5   : > { %v4936_v59 = vpop.eup %4935  ;;  %v1485_v0 = vmul.f32 0.5, %v4934_v53  ;;  %v4554_v4 = vpop.f32.mrb[20].mxu0 }
 0x3d6   : > { %v4938_v5 = vpop.eup %4937  ;;  %v1483_v40 = vmul.f32 0.5, %v4936_v59  ;;  %v1453_v12 = vadd.f32 %v4554_v4, %v5757_v60  ;;  %v1444_v63 = vpop.f32.mrb[21].mxu0 }
 0x3d7   : > { %v4940_v24 = vpop.eup %4939  ;;  %v1489_v23 = vadd.f32 0.5, %v1485_v0  ;;  %v1486_v30 = vmul.f32 0.5, %v4938_v5  ;;  %v1445_v10 = vadd.f32 %v1444_v63, %v5750_v8  ;;  %v4555_v54 = vpop.f32.mrb[22].mxu0 }
 0x3d8   : > { %v1487_v42 = vadd.f32 0.5, %v1483_v40  ;;  %v1484_v28 = vmul.f32 0.5, %v4940_v24  ;;  %v1497_v53 = vmul.f32 0.5, %v1453_v12  ;;  %v1456_v51 = vadd.f32 %v4555_v54, %v5760_v22  ;;  %v1447_v34 = vpop.f32.mrb[23].mxu0 }
 0x3d9   : > { %v1490_v59 = vadd.f32 0.5, %v1486_v30  ;;  %v1495_v41 = vmul.f32 0.5, %v1445_v10  ;;  %v1448_v4 = vadd.f32 %v1447_v34, %v5754_v29  ;;  %v1513_v5 = vmul.f32 0.0, %v1489_v23 }
 0x3da   : > { %v4942_v60 = vpop.eup %4941  ;;  %v1488_v38 = vadd.f32 0.5, %v1484_v28  ;;  %4949 = vtanh.f32 %v1497_v53  ;;  %v1498_v35 = vmul.f32 0.5, %v1456_v51  ;;  %v1472_v12 = vadd.f32 0.5, %v1468_v7 }
 0x3db   : > { %v4944_v0 = vpop.eup %4943  ;;  %v1517_v63 = vmul.f32 %v4942_v60, %v1473_v6  ;;  %4951 = vtanh.f32 %v1495_v41  ;;  %v1496_v40 = vmul.f32 0.5, %v1448_v4  ;;  %v1511_v8 = vmul.f32 0.0, %v1487_v42 }
 0x3dc   : > { %v4946_v24 = vpop.eup %4945  ;;  %v1515_v54 = vmul.f32 %v4944_v0, %v1471_v31  ;;  %4953 = vtanh.f32 %v1498_v35  ;;  %v1514_v30 = vmul.f32 0.0, %v1490_v59  ;;  %v1512_v16 = vmul.f32 0.0, %v1488_v38 }
 0x3dd   : > { %v4948_v61 = vpop.eup %4947  ;;  %v5765_v10 = vadd.f32 %v1517_v63, %v1513_v5  ;;  %v1518_v34 = vmul.f32 %v4946_v24, %v1474_v48  ;;  %4955 = vtanh.f32 %v1496_v40  ;;  %v5777_v5 = vpop.permute.xlu0 %1533 }
 0x3de   : > { %v5767_v28 = vadd.f32 %v1515_v54, %v1511_v8  ;;  %v1516_v51 = vmul.f32 %v4948_v61, %v1472_v12  ;;  %v5779_v54 = vpop.permute.xlu1 %1538 }
 0x3df   : > { %4957 = vtanh.f32 %v5765_v10  ;;  %v5770_v60 = vadd.f32 %v1518_v34, %v1514_v30 }
 0x3e0   : > { %4959 = vtanh.f32 %v5767_v28  ;;  %v5773_v41 = vadd.f32 %v1516_v51, %v1512_v16 }
 0x3e1   : > { %4961 = vtanh.f32 %v5770_v60 }
 0x3e2   : > { %4963 = vtanh.f32 %v5773_v41 }
 0x3e4   : > { %v4950_v42 = vpop.eup %4949 }
 0x3e5   : > { %v4952_v6 = vpop.eup %4951  ;;  %v1505_v48 = vmul.f32 0.5, %v4950_v42 }
 0x3e6   : > { %v4954_v7 = vpop.eup %4953  ;;  %v1503_v38 = vmul.f32 0.5, %v4952_v6 }
 0x3e7   : > { %v4956_v8 = vpop.eup %4955  ;;  %v1506_v23 = vmul.f32 0.5, %v4954_v7  ;;  %v1509_v53 = vadd.f32 0.5, %v1505_v48  ;;  %v5787_v48 = vpop.permute.xlu0 %1543 }
 0x3e8   : > { %v1507_v31 = vadd.f32 0.5, %v1503_v38  ;;  %v1504_v59 = vmul.f32 0.5, %v4956_v8  ;;  %v5790_v8 = vpop.permute.xlu1 %1548 }
 0x3e9   : > { %v4958_v4 = vpop.eup %4957  ;;  %v1510_v35 = vadd.f32 0.5, %v1506_v23 }
 0x3ea   : > { %v4960_v0 = vpop.eup %4959  ;;  %v1508_v63 = vadd.f32 0.5, %v1504_v59  ;;  %v1529_v61 = vmul.f32 %v4958_v4, %v1509_v53 }
 0x3eb   : > { %v4962_v40 = vpop.eup %4961  ;;  %v1527_v24 = vmul.f32 %v4960_v0, %v1507_v31  ;;  %v945_v31 = vlaneseq }
 0x3ec   : > { %v4964_v12 = vpop.eup %4963  ;;  %v1530_v30 = vmul.f32 %v4962_v40, %v1510_v35  ;;  %v1553_v7 = vmul.f32 %v5787_v48, %v1529_v61 }
 0x3ed   : > { %v1528_v34 = vmul.f32 %v4964_v12, %v1508_v63  ;;  %v1551_v51 = vmul.f32 %v5777_v5, %v1527_v24  ;;  %v5793_v35 = vshrl.u32 %v945_v31, 7  ;;  %v1567_v12 = vpop.permute.xlu0 %1566 }
 0x3ee   : > { %v5781_v16 = vpack.c.bf16 %v1530_v30, %v1529_v61  ;;  %v1554_v23 = vmul.f32 %v5790_v8, %v1530_v30 }
 0x3ef   : > { %v1552_v42 = vmul.f32 %v5779_v54, %v1528_v34  ;;  %v5785_v6 = vpack.c.bf16 %v1528_v34, %v1527_v24  ;;  %6613 = vst [vmem:[#allocation39_spill] sm:$0xff] %v5793_v35  ;;  %v5796_v40 = vsub.s32 0, %v5793_v35  ;;  %vm1250_vm6 = vcmp.eq.s32.totalorder %v5793_v35, 0 }
 0x3f0   : > { %vm1787_vm7 = vcmp.eq.s32.totalorder %v5793_v35, 1 }
 0x3f1   : > { %v1555_v38 = vadd.f32 %v1552_v42, %v1551_v51  ;;  %6614 = vst [vmem:[#allocation40_spill] sm:$0xff] %v5796_v40  ;;  %v5799_v61 = vrot.slane %v1567_v12, %v5796_v40 }
 0x3f3   : > { %v1556_v53 = vadd.f32 %v1555_v38, %v1553_v7 }
 0x3f5   : > { %v1557_v59 = vadd.f32 %v1556_v53, %v1554_v23 }
 0x3f7   : > { %v1558_v4 = vrot.slane %v1557_v59, 4 }
 0x3f9   : > { %v1559_v0 = vadd.f32 %v1558_v4, %v1557_v59 }
 0x3fb   : > { %v1560_v63 = vrot.slane %v1559_v0, 2 }
 0x3fd   : > { %v1561_v24 = vadd.f32 %v1560_v63, %v1559_v0 }
 0x3ff   : > { %v1562_v34 = vrot.slane %v1561_v24, 1 }
 0x401   : > { %v1563_v51 = vadd.f32 %v1562_v34, %v1561_v24 }
 0x403   : > { %v1573_v30 = vadd.f32 %v5799_v61, %v1563_v51 }
 0x405   : > { %v1574_v42 = vand.u32 2147483647, %v1573_v30 }
 0x407   : > { %v5802_v7 = vadd.f32 0.5, %v1574_v42 }
 0x409   : > { %v1576_v38 = vmul.f32 %v5802_v7, %v5456_v3 }
 0x40b   : > { %v1577_v23 = vadd.f32 %v1576_v38, %v5453_v2 }
 0x40d   : > { %v1578_v53 = vpack.c.bf16 %v1577_v23, %v1577_v23 }
 0x40f   : > { %v1580_v31 = vand.u32 %v1578_v53, %v5466_v11 }
 0x411   : > { %4556 = vmatprep.subr.bf16.mxu1 %v1580_v31 }
 0x412   : > { %4557 = vmatpush3.bf16.msra.mxu1 %v1580_v31 }
 0x415   : > { %4559 = vmatmul.mubr.msk.bf16.vlgmr.msra.gmra.mrb[8].mxu1 %vm970_vm2, %v5475_v20 }
 0x416   : > { %4566 = vmatprep.mubr.msk.bf16.mxu1 %vm1059_vm3, %v5563_v55 }
 0x4e8   : > { %v4560_v59 = vpop.f32.mrb[8].mxu1 }
 0x4e9   : > { %v1625_v4 = vadd.f32 %v4560_v59, %v5571_v57  ;;  %v1616_v0 = vpop.f32.mrb[9].mxu1 }
 0x4ea   : > { %v1617_v63 = vadd.f32 %v1616_v0, %v5573_v58  ;;  %v4561_v3 = vpop.f32.mrb[10].mxu1 }
 0x4eb   : > { %v1628_v2 = vadd.f32 %v4561_v3, %v5576_v62  ;;  %v1619_v24 = vpop.f32.mrb[11].mxu1  ;;  %v1633_v34 = vmax.f32 %v1625_v4, 0.0 }
 0x4ec   : > { %v1620_v12 = vadd.f32 %v1619_v24, %v5579_v1  ;;  %v1631_v30 = vmax.f32 %v1617_v63, 0.0 }
 0x4ed   : > { %v1634_v51 = vmax.f32 %v1628_v2, 0.0 }
 0x4ee   : > { %v1632_v42 = vmax.f32 %v1620_v12, 0.0 }
 0x4ef   : > { %v1636_v38 = vpack.c.bf16 %v1634_v51, %v1633_v34 }
 0x4f0   : > { %v1635_v23 = vpack.c.bf16 %v1632_v42, %v1631_v30 }
 0x4f2   : > { %4562 = vmatprep.subr.bf16.mxu1 %v1635_v23 }
 0x4f3   : > { %4563 = vmatpush3.bf16.msra.mxu1 %v1635_v23 }
 0x4f4   : > { %4564 = vmatprep.subr.bf16.mxu1 %v1636_v38 }
 0x4f7   : > { %4565 = vmatpush3.bf16.msra.mxu1 %v1636_v38  ;;  %v6615_v38 = vmov 0.0  }
 0x4fa   : > { %4567 = vmatmul.mubr.msk.bf16.vlgmr.msra.gmra.mrb[12].mxu1 %vm1059_vm3, %v5585_v17 }
 0x4fb   : > { %4574 = vmatprep.mubr.msk.bf16.mxu1 %vm1059_vm3, %v5565_v56 }
 0x5cd   : > { %v4568_v53 = vpop.f32.mrb[12].mxu1 }
 0x5ce   : > { %v1680_v31 = vadd.f32 %v4568_v53, %v5593_v21  ;;  %v1671_v59 = vpop.f32.mrb[13].mxu1 }
 0x5cf   : > { %v1672_v4 = vadd.f32 %v1671_v59, %v5589_v18  ;;  %v4569_v0 = vpop.f32.mrb[14].mxu1 }
 0x5d0   : > { %v1683_v63 = vadd.f32 %v4569_v0, %v5596_v25  ;;  %v1674_v3 = vpop.f32.mrb[15].mxu1  ;;  %v1688_v24 = vmax.f32 %v1680_v31, 0.0 }
 0x5d1   : > { %v1675_v2 = vadd.f32 %v1674_v3, %v5591_v19  ;;  %v1686_v34 = vmax.f32 %v1672_v4, 0.0 }
 0x5d2   : > { %v1689_v12 = vmax.f32 %v1683_v63, 0.0 }
 0x5d3   : > { %v1687_v51 = vmax.f32 %v1675_v2, 0.0 }
 0x5d4   : > { %v1691_v30 = vpack.c.bf16 %v1689_v12, %v1688_v24 }
 0x5d5   : > { %v1690_v42 = vpack.c.bf16 %v1687_v51, %v1686_v34 }
 0x5d7   : > { %4570 = vmatprep.subr.bf16.mxu1 %v1690_v42 }
 0x5d8   : > { %4571 = vmatpush3.bf16.msra.mxu1 %v1690_v42 }
 0x5d9   : > { %4572 = vmatprep.subr.bf16.mxu1 %v1691_v30 }
 0x5dc   : > { %4573 = vmatpush3.bf16.msra.mxu1 %v1691_v30 }
 0x5dd   : > { %4578 = vmatprep.subr.bf16.mxu1 %v6615_v38 }
 0x5df   : > { %4575 = vmatmul.mubr.msk.bf16.vlgmr.msra.gmra.mrb[16].mxu1 %vm1059_vm3, %v5603_v39 }
 0x5e0   : > { %4582 = vmatprep.mubr.msk.bf16.mxu1 %vm5262_vm4, %v6615_v38 }
 0x6b2   : > { %v4576_v23 = vpop.f32.mrb[16].mxu1 }
 0x6b3   : > { %v1735_v53 = vadd.f32 %v4576_v23, %v5624_v46  ;;  %v1726_v31 = vpop.f32.mrb[17].mxu1 }
 0x6b4   : > { %v1727_v59 = vadd.f32 %v1726_v31, %v5620_v44  ;;  %v4577_v4 = vpop.f32.mrb[18].mxu1 }
 0x6b5   : > { %v1738_v0 = vadd.f32 %v4577_v4, %v5627_v50  ;;  %v1729_v63 = vpop.f32.mrb[19].mxu1  ;;  %v1743_v2 = vmax.f32 %v1735_v53, 0.0 }
 0x6b6   : > { %v1730_v3 = vadd.f32 %v1729_v63, %v5622_v45  ;;  %v1741_v12 = vmax.f32 %v1727_v59, 0.0 }
 0x6b7   : > { %v1744_v24 = vmax.f32 %v1738_v0, 0.0 }
 0x6b8   : > { %v1742_v34 = vmax.f32 %v1730_v3, 0.0 }
 0x6b9   : > { %v1746_v51 = vpack.c.bf16 %v1744_v24, %v1743_v2 }
 0x6ba   : > { %v1745_v30 = vpack.c.bf16 %v1742_v34, %v1741_v12 }
 0x6bc   : > { %4579 = vmatpush3.bf16.msra.mxu1 %v1745_v30  ;;  %4586 = vmatprep.subr.bf16.mxu0 %v1745_v30 }
 0x6bd   : > { %4587 = vmatpush3.bf16.msra.mxu0 %v1745_v30  ;;  %4580 = vmatprep.subr.bf16.mxu1 %v6615_v38 }
 0x6be   : > { %4588 = vmatprep.subr.bf16.mxu0 %v1746_v51 }
 0x6c0   : > { %4581 = vmatpush3.bf16.msra.mxu1 %v1746_v51 }
 0x6c1   : > { %4589 = vmatpush3.bf16.msra.mxu0 %v1746_v51 }
 0x6c2   : > { %4590 = vmatprep.subr.bf16.mxu0 %v5785_v6 }
 0x6c3   : > { %4583 = vmatmul.mubr.msk.bf16.vlgmr.msra.gmra.mrb[20].mxu1 %vm1059_vm3, %v5649_v13 }
 0x6c4   : > { %4612 = vmatprep.mubr.msk.bf16.mxu1 %vm970_vm2, %v5459_v9 }
 0x6c5   : > { %4591 = vmatpush3.bf16.msra.mxu0 %v5785_v6 }
 0x6c6   : > { %4592 = vmatprep.subr.bf16.mxu0 %v5781_v16 }
 0x6c9   : > { %4593 = vmatpush3.bf16.msra.mxu0 %v5781_v16  ;;  %v5858_v16 = vpop.permute.xlu1 %1204 }
 0x6ca   : > { %6616 = vst [vmem:[#allocation41_spill] sm:$0xff] %v5858_v16  ;;  %v5862_v6 = vadd.f32 %v5731_v52, %v5858_v16 }
 0x6cc   : > { %4595 = vmatmul.mubr.msk.bf16.vlgmr.msra.gmra.mrb[24].mxu0 %vm1337_vm5, %v5651_v14  ;;  %6617 = vst [vmem:[#allocation42_spill] sm:$0xff] %v5862_v6  ;;  %v1254_v42 = vrot.slane %v5862_v6, %v5796_v40  ;;  %v6623_v6 = vld [vmem:[#allocation32_spill] sm:$0xff] }
 0x6cd   : > { %4598 = vmatprep.mubr.msk.bf16.mxu0 %vm1337_vm5, %v5653_v15 }
 0x6ce   : > { %v1255_v0 = vsel %vm1250_vm6, %v1254_v42, 0.0 }
 0x6d4   : > { %4599 = vmatmul.mubr.msk.bf16.gmra.mrb[28].mxu0 %vm1337_vm5, %v5675_v26 }
 0x6d5   : > { %4602 = vmatprep.mubr.msk.bf16.mxu0 %vm1337_vm5, %v5677_v27 }
 0x6dc   : > { %4603 = vmatmul.mubr.msk.bf16.gmra.mrb[32].mxu0 %vm1337_vm5, %v5695_v32 }
 0x6dd   : > { %4606 = vmatprep.mubr.msk.bf16.mxu0 %vm1337_vm5, %v5697_v33 }
 0x6e4   : > { %4607 = vmatmul.mubr.msk.bf16.gmra.mrb[36].mxu0 %vm1337_vm5, %v5709_v36 }
 0x6e5   : > { %4648 = vmatprep.mubr.msk.bf16.mxu0 %vm1337_vm5, %v5614_v43 }
 0x796   : > { %v1781_v23 = vpop.f32.mrb[20].mxu1 }
 0x797   : > { %v5868_v53 = vadd.f32 %v1781_v23, %v5858_v16  ;;  %v4584_v31 = vpop.f32.mrb[21].mxu1 }
 0x798   : > { %v1784_v59 = vpop.f32.mrb[22].mxu1  ;;  %v6620_v31 = vld [vmem:[#allocation26_spill] sm:$0xff] }
 0x799   : > { %6618 = vst [vmem:[#allocation43_spill] sm:$0xff] %v5868_v53  ;;  %v1791_v43 = vrot.slane %v5868_v53, %v5796_v40  ;;  %v4585_v4 = vpop.f32.mrb[23].mxu1 }
 0x79b   : > { %v5875_v63 = vsel %vm1787_vm7, %v1791_v43, %v1255_v0  ;;  %v6621_v43 = vld [vmem:[#allocation30_spill] sm:$0xff]  ;;  %vm3764_vm7 = vcmask 1042432  }
 0x79c   : > { %6619 = vst [vmem:[#allocation44_spill] sm:$0xff] %v5875_v63 }
 0x79f   : > { %v4596_v3 = vpop.f32.mrb[24].mxu0 }
 0x7a0   : > { %v1839_v2 = vadd.f32 %v4596_v3, %v5723_v47  ;;  %v1830_v24 = vpop.f32.mrb[25].mxu0  ;;  %v6622_v3 = vld [vmem:[#allocation27_spill] sm:$0xff] }
 0x7a1   : > { %v1831_v12 = vadd.f32 %v1830_v24, %v5715_v37  ;;  %v4597_v34 = vpop.f32.mrb[26].mxu0 }
 0x7a2   : > { %v1842_v51 = vadd.f32 %v4597_v34, %v5727_v49  ;;  %v1833_v30 = vpop.f32.mrb[27].mxu0  ;;  %v1895_v23 = vmul.f32 0.5, %v1839_v2 }
 0x7a3   : > { %v1834_v59 = vadd.f32 %v1833_v30, %v6620_v31  ;;  %v1893_v35 = vmul.f32 0.5, %v1831_v12  ;;  %v6624_v30 = vld [vmem:[#allocation28_spill] sm:$0xff] }
 0x7a4   : > { %v1896_v40 = vmul.f32 0.5, %v1842_v51  ;;  %4965 = vtanh.f32 %v1895_v23 }
 0x7a5   : > { %v1894_v4 = vmul.f32 0.5, %v1834_v59  ;;  %4967 = vtanh.f32 %v1893_v35  ;;  %v6625_v35 = vld [vmem:[#allocation35_spill] sm:$0xff] }
 0x7a6   : > { %4969 = vtanh.f32 %v1896_v40  ;;  %v6626_v40 = vld [vmem:[#allocation33_spill] sm:$0xff] }
 0x7a7   : > { %v4600_v42 = vpop.f32.mrb[28].mxu0  ;;  %4971 = vtanh.f32 %v1894_v4 }
 0x7a8   : > { %v1855_v0 = vadd.f32 %v4600_v42, %v6621_v43  ;;  %v1846_v52 = vpop.f32.mrb[29].mxu0 }
 0x7a9   : > { %v1847_v63 = vadd.f32 %v1846_v52, %v6622_v3  ;;  %v4601_v53 = vpop.f32.mrb[30].mxu0 }
 0x7aa   : > { %v1911_v24 = vmul.f32 0.5, %v1855_v0  ;;  %v1858_v34 = vadd.f32 %v4601_v53, %v6623_v6  ;;  %v1849_v16 = vpop.f32.mrb[31].mxu0  ;;  %v6627_v53 = vld [vmem:[#allocation36_spill] sm:$0xff] }
 0x7ab   : > { %v1909_v2 = vmul.f32 0.5, %v1847_v63  ;;  %v1850_v12 = vadd.f32 %v1849_v16, %v6624_v30  ;;  %v6628_v16 = vld [vmem:[#allocation34_spill] sm:$0xff] }
 0x7ac   : > { %4973 = vtanh.f32 %v1911_v24  ;;  %v1912_v51 = vmul.f32 0.5, %v1858_v34 }
 0x7ad   : > { %4975 = vtanh.f32 %v1909_v2  ;;  %v1910_v23 = vmul.f32 0.5, %v1850_v12 }
 0x7ae   : > { %4977 = vtanh.f32 %v1912_v51  ;;  %v4966_v3 = vpop.eup %4965 }
 0x7af   : > { %4979 = vtanh.f32 %v1910_v23  ;;  %v4604_v59 = vpop.f32.mrb[32].mxu0  ;;  %v4968_v6 = vpop.eup %4967  ;;  %v1903_v2 = vmul.f32 0.5, %v4966_v3  ;;  %v6630_v3 = vld [vmem:[#allocation37_spill] sm:$0xff] }
 0x7b0   : > { %v1871_v42 = vadd.f32 %v4604_v59, %v6625_v35  ;;  %v1862_v52 = vpop.f32.mrb[33].mxu0  ;;  %v4970_v34 = vpop.eup %4969  ;;  %v1901_v59 = vmul.f32 0.5, %v4968_v6 }
 0x7b1   : > { %v1863_v0 = vadd.f32 %v1862_v52, %v6626_v40  ;;  %v4605_v43 = vpop.f32.mrb[34].mxu0  ;;  %v4972_v12 = vpop.eup %4971  ;;  %v1907_v40 = vadd.f32 0.5, %v1903_v2 }
 0x7b2   : > { %4981 = vtanh.f32 %v1871_v42  ;;  %v1874_v4 = vadd.f32 %v4605_v43, %v6627_v53  ;;  %v1865_v63 = vpop.f32.mrb[35].mxu0  ;;  %v1904_v42 = vmul.f32 0.5, %v4970_v34  ;;  %v6629_v43 = vld [vmem:[#allocation38_spill] sm:$0xff]  ;;  %v1902_v37 = vmul.f32 0.5, %v4972_v12 }
 0x7b3   : > { %4983 = vtanh.f32 %v1863_v0  ;;  %v1866_v24 = vadd.f32 %v1865_v63, %v6628_v16  ;;  %v1905_v32 = vadd.f32 0.5, %v1901_v59 }
 0x7b4   : > { %4985 = vtanh.f32 %v1874_v4 }
 0x7b5   : > { %4987 = vtanh.f32 %v1866_v24 }
 0x7b6   : > { %v4974_v51 = vpop.eup %4973 }
 0x7b7   : > { %v4976_v23 = vpop.eup %4975  ;;  %v1919_v35 = vmul.f32 0.5, %v4974_v51  ;;  %v4608_v30 = vpop.f32.mrb[36].mxu0 }
 0x7b8   : > { %v4978_v52 = vpop.eup %4977  ;;  %v1917_v31 = vmul.f32 0.5, %v4976_v23  ;;  %v1887_v53 = vadd.f32 %v4608_v30, %v6629_v43  ;;  %v1878_v49 = vpop.f32.mrb[37].mxu0  ;;  %v1908_v43 = vadd.f32 0.5, %v1904_v42 }
 0x7b9   : > { %v4980_v0 = vpop.eup %4979  ;;  %v1923_v63 = vadd.f32 0.5, %v1919_v35  ;;  %v1920_v16 = vmul.f32 0.5, %v4978_v52  ;;  %v1879_v4 = vadd.f32 %v1878_v49, %v6630_v3  ;;  %v4609_v47 = vpop.f32.mrb[38].mxu0 }
 0x7ba   : > { %v1921_v24 = vadd.f32 0.5, %v1917_v31  ;;  %v1918_v36 = vmul.f32 0.5, %v4980_v0  ;;  %v1931_v33 = vmul.f32 0.5, %v1887_v53  ;;  %v1890_v6 = vadd.f32 %v4609_v47, %v5760_v22  ;;  %v1881_v51 = vpop.f32.mrb[39].mxu0 }
 0x7bb   : > { %v1924_v2 = vadd.f32 0.5, %v1920_v16  ;;  %v1929_v34 = vmul.f32 0.5, %v1879_v4  ;;  %v1882_v23 = vadd.f32 %v1881_v51, %v5754_v29  ;;  %v1947_v49 = vmul.f32 %v1923_v63, %v5765_v10 }
 0x7bc   : > { %v4982_v30 = vpop.eup %4981  ;;  %v1922_v27 = vadd.f32 0.5, %v1918_v36  ;;  %4989 = vtanh.f32 %v1931_v33  ;;  %v1932_v35 = vmul.f32 0.5, %v1890_v6  ;;  %v1906_v0 = vadd.f32 0.5, %v1902_v37 }
 0x7bd   : > { %v4984_v12 = vpop.eup %4983  ;;  %v1951_v52 = vmul.f32 %v4982_v30, %v1907_v40  ;;  %4991 = vtanh.f32 %v1929_v34  ;;  %v1930_v31 = vmul.f32 0.5, %v1882_v23  ;;  %v1945_v47 = vmul.f32 %v1921_v24, %v5767_v28 }
 0x7be   : > { %v4986_v53 = vpop.eup %4985  ;;  %v1949_v59 = vmul.f32 %v4984_v12, %v1905_v32  ;;  %4993 = vtanh.f32 %v1932_v35  ;;  %v1948_v4 = vmul.f32 %v1924_v2, %v5770_v60  ;;  %v1946_v33 = vmul.f32 %v1922_v27, %v5773_v41 }
 0x7bf   : > { %v4988_v16 = vpop.eup %4987  ;;  %v5896_v51 = vadd.f32 %v1951_v52, %v1947_v49  ;;  %v1952_v36 = vmul.f32 %v4986_v53, %v1908_v43  ;;  %4995 = vtanh.f32 %v1930_v31 }
 0x7c0   : > { %v5899_v42 = vadd.f32 %v1949_v59, %v1945_v47  ;;  %v1950_v10 = vmul.f32 %v4988_v16, %v1906_v0 }
 0x7c1   : > { %4997 = vtanh.f32 %v5896_v51  ;;  %v5902_v40 = vadd.f32 %v1952_v36, %v1948_v4 }
 0x7c2   : > { %4999 = vtanh.f32 %v5899_v42  ;;  %v5905_v32 = vadd.f32 %v1950_v10, %v1946_v33 }
 0x7c3   : > { %5001 = vtanh.f32 %v5902_v40 }
 0x7c4   : > { %5003 = vtanh.f32 %v5905_v32 }
 0x7c6   : > { %v4990_v37 = vpop.eup %4989 }
 0x7c7   : > { %v4992_v28 = vpop.eup %4991  ;;  %v1939_v60 = vmul.f32 0.5, %v4990_v37 }
 0x7c8   : > { %v4994_v43 = vpop.eup %4993  ;;  %v1937_v27 = vmul.f32 0.5, %v4992_v28 }
 0x7c9   : > { %v4996_v41 = vpop.eup %4995  ;;  %v1940_v63 = vmul.f32 0.5, %v4994_v43  ;;  %v1943_v24 = vadd.f32 0.5, %v1939_v60 }
 0x7ca   : > { %v1941_v6 = vadd.f32 0.5, %v1937_v27  ;;  %v1938_v2 = vmul.f32 0.5, %v4996_v41 }
 0x7cb   : > { %v4998_v34 = vpop.eup %4997  ;;  %v1944_v23 = vadd.f32 0.5, %v1940_v63 }
 0x7cc   : > { %v5000_v30 = vpop.eup %4999  ;;  %v1942_v35 = vadd.f32 0.5, %v1938_v2  ;;  %v1963_v31 = vmul.f32 %v4998_v34, %v1943_v24 }
 0x7cd   : > { %v5002_v12 = vpop.eup %5001  ;;  %v1961_v49 = vmul.f32 %v5000_v30, %v1941_v6 }
 0x7ce   : > { %v5004_v52 = vpop.eup %5003  ;;  %v1964_v53 = vmul.f32 %v5002_v12, %v1944_v23  ;;  %v1967_v36 = vmul.f32 %v1963_v31, %v5787_v48  ;;  %v5922_v23 = vld [vmem:[%s5446_s28] sm:$0x7] }
 0x7cf   : > { %v1962_v0 = vmul.f32 %v5004_v52, %v1942_v35  ;;  %v1965_v59 = vmul.f32 %v1961_v49, %v5777_v5  ;;  %v5927_v35 = vld [vmem:[%s5440_s25] sm:$0x7] }
 0x7d0   : > { %v5909_v47 = vpack.c.bf16 %v1964_v53, %v1963_v31  ;;  %v1968_v10 = vmul.f32 %v1964_v53, %v5790_v8 }
 0x7d1   : > { %v1966_v16 = vmul.f32 %v1962_v0, %v5779_v54  ;;  %v5913_v4 = vpack.c.bf16 %v1962_v0, %v1961_v49 }
 0x7d3   : > { %v1969_v33 = vadd.f32 %v1966_v16, %v1965_v59 }
 0x7d5   : > { %v1970_v37 = vadd.f32 %v1969_v33, %v1967_v36 }
 0x7d7   : > { %v1971_v28 = vadd.f32 %v1970_v37, %v1968_v10 }
 0x7d9   : > { %v1972_v60 = vrot.slane %v1971_v28, 4 }
 0x7db   : > { %v1973_v43 = vadd.f32 %v1972_v60, %v1971_v28 }
 0x7dd   : > { %v1974_v27 = vrot.slane %v1973_v43, 2 }
 0x7df   : > { %v1975_v41 = vadd.f32 %v1974_v27, %v1973_v43 }
 0x7e1   : > { %v1976_v63 = vrot.slane %v1975_v41, 1 }
 0x7e3   : > { %v1977_v24 = vadd.f32 %v1976_v63, %v1975_v41 }
 0x7e5   : > { %v1978_v6 = vadd.f32 %v1977_v24, %v5799_v61 }
 0x7e7   : > { %v1979_v2 = vand.u32 2147483647, %v1978_v6 }
 0x7e9   : > { %v5919_v34 = vadd.f32 %v1979_v2, %v5802_v7 }
 0x7eb   : > { %v1981_v30 = vmul.f32 %v5922_v23, %v5919_v34 }
 0x7ed   : > { %v5930_v12 = vadd.f32 %v5927_v35, %v1981_v30 }
 0x7ef   : > { %v1983_v49 = vpack.c.bf16 %v5930_v12, %v5930_v12 }
 0x7f1   : > { %v1985_v52 = vand.u32 %v1983_v49, %v5466_v11 }
 0x7f3   : > { %4610 = vmatprep.subr.bf16.mxu1 %v1985_v52 }
 0x7f4   : > { %4611 = vmatpush3.bf16.msra.mxu1 %v1985_v52 }
 0x7f7   : > { %4613 = vmatmul.mubr.msk.bf16.vlgmr.msra.gmra.mrb[24].mxu1 %vm970_vm2, %v5475_v20 }
 0x7f8   : > { %4620 = vmatprep.mubr.msk.bf16.mxu1 %vm1059_vm3, %v5563_v55 }
 0x8ca   : > { %v4614_v7 = vpop.f32.mrb[24].mxu1 }
 0x8cb   : > { %v2030_v31 = vadd.f32 %v4614_v7, %v5571_v57  ;;  %v2021_v53 = vpop.f32.mrb[25].mxu1 }
 0x8cc   : > { %v2022_v0 = vadd.f32 %v2021_v53, %v5573_v58  ;;  %v4615_v59 = vpop.f32.mrb[26].mxu1 }
 0x8cd   : > { %v2033_v16 = vadd.f32 %v4615_v59, %v5576_v62  ;;  %v2024_v36 = vpop.f32.mrb[27].mxu1  ;;  %v2038_v10 = vmax.f32 %v2030_v31, 0.0 }
 0x8ce   : > { %v2025_v33 = vadd.f32 %v2024_v36, %v5579_v1  ;;  %v2036_v28 = vmax.f32 %v2022_v0, 0.0 }
 0x8cf   : > { %v2039_v37 = vmax.f32 %v2033_v16, 0.0 }
 0x8d0   : > { %v2037_v60 = vmax.f32 %v2025_v33, 0.0 }
 0x8d1   : > { %v2041_v43 = vpack.c.bf16 %v2039_v37, %v2038_v10 }
 0x8d2   : > { %v2040_v27 = vpack.c.bf16 %v2037_v60, %v2036_v28 }
 0x8d4   : > { %4616 = vmatprep.subr.bf16.mxu1 %v2040_v27 }
 0x8d5   : > { %4617 = vmatpush3.bf16.msra.mxu1 %v2040_v27 }
 0x8d6   : > { %4618 = vmatprep.subr.bf16.mxu1 %v2041_v43 }
 0x8d9   : > { %4619 = vmatpush3.bf16.msra.mxu1 %v2041_v43 }
 0x8dc   : > { %4621 = vmatmul.mubr.msk.bf16.vlgmr.msra.gmra.mrb[28].mxu1 %vm1059_vm3, %v5585_v17 }
 0x8dd   : > { %4628 = vmatprep.mubr.msk.bf16.mxu1 %vm1059_vm3, %v5565_v56 }
 0x9af   : > { %v4622_v41 = vpop.f32.mrb[28].mxu1 }
 0x9b0   : > { %v2085_v63 = vadd.f32 %v4622_v41, %v5593_v21  ;;  %v2076_v24 = vpop.f32.mrb[29].mxu1 }
 0x9b1   : > { %v2077_v6 = vadd.f32 %v2076_v24, %v5589_v18  ;;  %v4623_v2 = vpop.f32.mrb[30].mxu1 }
 0x9b2   : > { %v2088_v30 = vadd.f32 %v4623_v2, %v5596_v25  ;;  %v2079_v49 = vpop.f32.mrb[31].mxu1  ;;  %v2093_v7 = vmax.f32 %v2085_v63, 0.0 }
 0x9b3   : > { %v2080_v52 = vadd.f32 %v2079_v49, %v5591_v19  ;;  %v2091_v53 = vmax.f32 %v2077_v6, 0.0  ;;  %v6631_v49 = vld [vmem:[#allocation21_spill] sm:$0xff] }
 0x9b4   : > { %v2094_v31 = vmax.f32 %v2088_v30, 0.0 }
 0x9b5   : > { %v2092_v0 = vmax.f32 %v2080_v52, 0.0  ;;  %v6632_v52 = vld [vmem:[#allocation22_spill] sm:$0xff] }
 0x9b6   : > { %v2096_v59 = vpack.c.bf16 %v2094_v31, %v2093_v7  ;;  %v6634_v7 = vld [vmem:[#allocation24_spill] sm:$0xff] }
 0x9b7   : > { %v2095_v16 = vpack.c.bf16 %v2092_v0, %v2091_v53  ;;  %v6635_v53 = vld [vmem:[#allocation29_spill] sm:$0xff] }
 0x9b9   : > { %4624 = vmatprep.subr.bf16.mxu1 %v2095_v16 }
 0x9ba   : > { %4625 = vmatpush3.bf16.msra.mxu1 %v2095_v16  ;;  %v6636_v16 = vld [vmem:[#allocation25_spill] sm:$0xff] }
 0x9bb   : > { %4626 = vmatprep.subr.bf16.mxu1 %v2096_v59 }
 0x9be   : > { %4627 = vmatpush3.bf16.msra.mxu1 %v2096_v59 }
 0x9bf   : > { %4632 = vmatprep.subr.bf16.mxu1 %v6615_v38 }
 0x9c1   : > { %4629 = vmatmul.mubr.msk.bf16.vlgmr.msra.gmra.mrb[32].mxu1 %vm1059_vm3, %v5603_v39 }
 0x9c2   : > { %4636 = vmatprep.mubr.msk.bf16.mxu1 %vm5262_vm4, %v6615_v38 }
 0xa94   : > { %v4630_v36 = vpop.f32.mrb[32].mxu1 }
 0xa95   : > { %v2140_v33 = vadd.f32 %v4630_v36, %v5624_v46  ;;  %v2131_v10 = vpop.f32.mrb[33].mxu1 }
 0xa96   : > { %v2132_v37 = vadd.f32 %v2131_v10, %v5620_v44  ;;  %v4631_v28 = vpop.f32.mrb[34].mxu1  ;;  %v6637_v10 = vld [vmem:[#allocation31_spill] sm:$0xff] }
 0xa97   : > { %v2143_v60 = vadd.f32 %v4631_v28, %v5627_v50  ;;  %v2134_v43 = vpop.f32.mrb[35].mxu1  ;;  %v2148_v41 = vmax.f32 %v2140_v33, 0.0 }
 0xa98   : > { %v2135_v27 = vadd.f32 %v2134_v43, %v5622_v45  ;;  %v2146_v24 = vmax.f32 %v2132_v37, 0.0  ;;  %v6638_v43 = vld [vmem:[#allocation26_spill] sm:$0xff] }
 0xa99   : > { %v2149_v63 = vmax.f32 %v2143_v60, 0.0 }
 0xa9a   : > { %v2147_v6 = vmax.f32 %v2135_v27, 0.0 }
 0xa9b   : > { %v2151_v2 = vpack.c.bf16 %v2149_v63, %v2148_v41 }
 0xa9c   : > { %v2150_v30 = vpack.c.bf16 %v2147_v6, %v2146_v24 }
 0xa9e   : > { %4633 = vmatpush3.bf16.msra.mxu1 %v2150_v30  ;;  %4640 = vmatprep.subr.bf16.mxu0 %v2150_v30 }
 0xa9f   : > { %4641 = vmatpush3.bf16.msra.mxu0 %v2150_v30  ;;  %4634 = vmatprep.subr.bf16.mxu1 %v6615_v38 }
 0xaa0   : > { %4642 = vmatprep.subr.bf16.mxu0 %v2151_v2 }
 0xaa2   : > { %4635 = vmatpush3.bf16.msra.mxu1 %v2151_v2 }
 0xaa3   : > { %4643 = vmatpush3.bf16.msra.mxu0 %v2151_v2  ;;  %v6639_v2 = vld [vmem:[#allocation30_spill] sm:$0xff] }
 0xaa4   : > { %4644 = vmatprep.subr.bf16.mxu0 %v5913_v4 }
 0xaa5   : > { %4637 = vmatmul.mubr.msk.bf16.vlgmr.msra.gmra.mrb[36].mxu1 %vm1059_vm3, %v5649_v13 }
 0xaa6   : > { %4666 = vmatprep.mubr.msk.bf16.mxu1 %vm970_vm2, %v5459_v9 }
 0xaa7   : > { %4645 = vmatpush3.bf16.msra.mxu0 %v5913_v4  ;;  %v6633_v4 = vld [vmem:[#allocation23_spill] sm:$0xff] }
 0xaa8   : > { %4646 = vmatprep.subr.bf16.mxu0 %v5909_v47 }
 0xaab   : > { %4647 = vmatpush3.bf16.msra.mxu0 %v5909_v47 }
 0xaae   : > { %4649 = vmatmul.mubr.msk.bf16.vlgmr.msra.gmra.mrb[40].mxu0 %vm1337_vm5, %v5651_v14 }
 0xaaf   : > { %4652 = vmatprep.mubr.msk.bf16.mxu0 %vm1337_vm5, %v5653_v15 }
 0xab6   : > { %4653 = vmatmul.mubr.msk.bf16.gmra.mrb[44].mxu0 %vm1337_vm5, %v5675_v26 }
 0xab7   : > { %4656 = vmatprep.mubr.msk.bf16.mxu0 %vm1337_vm5, %v6631_v49 }
 0xabe   : > { %4657 = vmatmul.mubr.msk.bf16.gmra.mrb[48].mxu0 %vm1337_vm5, %v6632_v52  ;;  %v6640_v52 = vld [vmem:[#allocation27_spill] sm:$0xff] }
 0xabf   : > { %4660 = vmatprep.mubr.msk.bf16.mxu0 %vm1337_vm5, %v6633_v4 }
 0xac6   : > { %4661 = vmatmul.mubr.msk.bf16.gmra.mrb[52].mxu0 %vm1337_vm5, %v6634_v7 }
 0xac7   : > { %4696 = vmatprep.mubr.msk.bf16.mxu0 %vm970_vm2, %v5459_v9 }
 0xb78   : > { %v5985_v14 = vpop.f32.mrb[36].mxu1 }
 0xb79   : > { %v4638_v15 = vpop.f32.mrb[37].mxu1 }
 0xb7a   : > { %v2189_v47 = vpop.f32.mrb[38].mxu1 }
 0xb7b   : > { %v4639_v26 = vpop.f32.mrb[39].mxu1  ;;  %v6641_v47 = vld [vmem:[#allocation32_spill] sm:$0xff] }
 0xb81   : > { %v4650_v31 = vpop.f32.mrb[40].mxu0 }
 0xb82   : > { %v2244_v0 = vadd.f32 %v4650_v31, %v6635_v53  ;;  %v2235_v59 = vpop.f32.mrb[41].mxu0 }
 0xb83   : > { %v2236_v36 = vadd.f32 %v2235_v59, %v6636_v16  ;;  %v4651_v33 = vpop.f32.mrb[42].mxu0 }
 0xb84   : > { %v2247_v37 = vadd.f32 %v4651_v33, %v6637_v10  ;;  %v2238_v28 = vpop.f32.mrb[43].mxu0  ;;  %v2300_v60 = vmul.f32 0.5, %v2244_v0  ;;  %v6642_v0 = vld [vmem:[#allocation28_spill] sm:$0xff]  ;;  %v6643_v10 = vld [vmem:[#allocation35_spill] sm:$0xff] }
 0xb85   : > { %v2239_v27 = vadd.f32 %v2238_v28, %v6638_v43  ;;  %v2298_v41 = vmul.f32 0.5, %v2236_v36  ;;  %v6644_v43 = vld [vmem:[#allocation33_spill] sm:$0xff] }
 0xb86   : > { %v2301_v63 = vmul.f32 0.5, %v2247_v37  ;;  %5005 = vtanh.f32 %v2300_v60 }
 0xb87   : > { %v2299_v24 = vmul.f32 0.5, %v2239_v27  ;;  %5007 = vtanh.f32 %v2298_v41 }
 0xb88   : > { %5009 = vtanh.f32 %v2301_v63  ;;  %v6645_v63 = vld [vmem:[#allocation36_spill] sm:$0xff] }
 0xb89   : > { %v4654_v6 = vpop.f32.mrb[44].mxu0  ;;  %5011 = vtanh.f32 %v2299_v24 }
 0xb8a   : > { %v2260_v30 = vadd.f32 %v4654_v6, %v6639_v2  ;;  %v2251_v49 = vpop.f32.mrb[45].mxu0 }
 0xb8b   : > { %v2252_v4 = vadd.f32 %v2251_v49, %v6640_v52  ;;  %v4655_v7 = vpop.f32.mrb[46].mxu0 }
 0xb8c   : > { %v2316_v15 = vmul.f32 0.5, %v2260_v30  ;;  %v2263_v26 = vadd.f32 %v4655_v7, %v6641_v47  ;;  %v2254_v31 = vpop.f32.mrb[47].mxu0  ;;  %v6646_v30 = vld [vmem:[#allocation34_spill] sm:$0xff] }
 0xb8d   : > { %v2314_v53 = vmul.f32 0.5, %v2252_v4  ;;  %v2255_v59 = vadd.f32 %v2254_v31, %v6642_v0 }
 0xb8e   : > { %5013 = vtanh.f32 %v2316_v15  ;;  %v2317_v16 = vmul.f32 0.5, %v2263_v26 }
 0xb8f   : > { %5015 = vtanh.f32 %v2314_v53  ;;  %v2315_v36 = vmul.f32 0.5, %v2255_v59 }
 0xb90   : > { %5017 = vtanh.f32 %v2317_v16  ;;  %v5006_v60 = vpop.eup %5005 }
 0xb91   : > { %5019 = vtanh.f32 %v2315_v36  ;;  %v4658_v33 = vpop.f32.mrb[48].mxu0  ;;  %v5008_v2 = vpop.eup %5007  ;;  %v2308_v4 = vmul.f32 0.5, %v5006_v60 }
 0xb92   : > { %v2276_v37 = vadd.f32 %v4658_v33, %v6643_v10  ;;  %v2267_v28 = vpop.f32.mrb[49].mxu0  ;;  %v5010_v52 = vpop.eup %5009  ;;  %v2306_v26 = vmul.f32 0.5, %v5008_v2  ;;  %v6647_v33 = vld [vmem:[#allocation38_spill] sm:$0xff] }
 0xb93   : > { %v2268_v27 = vadd.f32 %v2267_v28, %v6644_v43  ;;  %v4659_v41 = vpop.f32.mrb[50].mxu0  ;;  %v5012_v7 = vpop.eup %5011  ;;  %v2312_v59 = vadd.f32 0.5, %v2308_v4  ;;  %v2309_v16 = vmul.f32 0.5, %v5010_v52 }
 0xb94   : > { %5021 = vtanh.f32 %v2276_v37  ;;  %v2279_v24 = vadd.f32 %v4659_v41, %v6645_v63  ;;  %v2270_v6 = vpop.f32.mrb[51].mxu0  ;;  %v2307_v43 = vmul.f32 0.5, %v5012_v7 }
 0xb95   : > { %5023 = vtanh.f32 %v2268_v27  ;;  %v2271_v49 = vadd.f32 %v2270_v6, %v6646_v30 }
 0xb96   : > { %5025 = vtanh.f32 %v2279_v24 }
 0xb97   : > { %5027 = vtanh.f32 %v2271_v49 }
 0xb98   : > { %v5014_v15 = vpop.eup %5013 }
 0xb99   : > { %v5016_v47 = vpop.eup %5015  ;;  %v2324_v31 = vmul.f32 0.5, %v5014_v15  ;;  %v4662_v53 = vpop.f32.mrb[52].mxu0  ;;  %v2310_v15 = vadd.f32 0.5, %v2306_v26 }
 0xb9a   : > { %v5018_v0 = vpop.eup %5017  ;;  %v2322_v36 = vmul.f32 0.5, %v5016_v47  ;;  %v2292_v10 = vadd.f32 %v4662_v53, %v6647_v33  ;;  %v2283_v37 = vpop.f32.mrb[53].mxu0  ;;  %v2313_v33 = vadd.f32 0.5, %v2309_v16 }
 0xb9b   : > { %v5020_v28 = vpop.eup %5019  ;;  %v2328_v27 = vadd.f32 0.5, %v2324_v31  ;;  %v2325_v41 = vmul.f32 0.5, %v5018_v0  ;;  %v2284_v60 = vadd.f32 %v2283_v37, %v6630_v3  ;;  %v4663_v63 = vpop.f32.mrb[54].mxu0  ;;  %v2311_v37 = vadd.f32 0.5, %v2307_v43 }
 0xb9c   : > { %v2326_v24 = vadd.f32 0.5, %v2322_v36  ;;  %v2323_v6 = vmul.f32 0.5, %v5020_v28  ;;  %v2336_v30 = vmul.f32 0.5, %v2292_v10  ;;  %v2295_v2 = vadd.f32 %v4663_v63, %v5760_v22  ;;  %v2286_v49 = vpop.f32.mrb[55].mxu0 }
 0xb9d   : > { %v2329_v4 = vadd.f32 0.5, %v2325_v41  ;;  %v2334_v52 = vmul.f32 0.5, %v2284_v60  ;;  %v2287_v47 = vadd.f32 %v2286_v49, %v5754_v29  ;;  %v2352_v3 = vmul.f32 %v2328_v27, %v5896_v51 }
 0xb9e   : > { %v5022_v53 = vpop.eup %5021  ;;  %v2327_v9 = vadd.f32 0.5, %v2323_v6  ;;  %5029 = vtanh.f32 %v2336_v30  ;;  %v2337_v7 = vmul.f32 0.5, %v2295_v2  ;;  %v2350_v22 = vmul.f32 %v2326_v24, %v5899_v42 }
 0xb9f   : > { %v5024_v31 = vpop.eup %5023  ;;  %v2356_v0 = vmul.f32 %v5022_v53, %v2312_v59  ;;  %5031 = vtanh.f32 %v2334_v52  ;;  %v2335_v36 = vmul.f32 0.5, %v2287_v47  ;;  %v2353_v29 = vmul.f32 %v2329_v4, %v5902_v40 }
 0xba0   : > { %v5026_v10 = vpop.eup %5025  ;;  %v2354_v26 = vmul.f32 %v5024_v31, %v2310_v15  ;;  %5033 = vtanh.f32 %v2337_v7  ;;  %v2351_v60 = vmul.f32 %v2327_v9, %v5905_v32 }
 0xba1   : > { %v5028_v28 = vpop.eup %5027  ;;  %v2360_v41 = vadd.f32 %v2356_v0, %v2352_v3  ;;  %v2357_v16 = vmul.f32 %v5026_v10, %v2313_v33  ;;  %5035 = vtanh.f32 %v2335_v36 }
 0xba2   : > { %v2358_v63 = vadd.f32 %v2354_v26, %v2350_v22  ;;  %v2355_v6 = vmul.f32 %v5028_v28, %v2311_v37 }
 0xba3   : > { %5037 = vtanh.f32 %v2360_v41  ;;  %v2361_v51 = vadd.f32 %v2357_v16, %v2353_v29 }
 0xba4   : > { %5039 = vtanh.f32 %v2358_v63  ;;  %v2359_v59 = vadd.f32 %v2355_v6, %v2351_v60 }
 0xba5   : > { %5041 = vtanh.f32 %v2361_v51 }
 0xba6   : > { %5043 = vtanh.f32 %v2359_v59 }
 0xba8   : > { %v5030_v43 = vpop.eup %5029 }
 0xba9   : > { %v5032_v42 = vpop.eup %5031  ;;  %v2344_v27 = vmul.f32 0.5, %v5030_v43 }
 0xbaa   : > { %v5034_v24 = vpop.eup %5033  ;;  %v2342_v30 = vmul.f32 0.5, %v5032_v42 }
 0xbab   : > { %v5036_v2 = vpop.eup %5035  ;;  %v2348_v40 = vadd.f32 0.5, %v2344_v27  ;;  %v2345_v49 = vmul.f32 0.5, %v5034_v24 }
 0xbac   : > { %v2346_v15 = vadd.f32 0.5, %v2342_v30  ;;  %v2343_v4 = vmul.f32 0.5, %v5036_v2 }
 0xbad   : > { %v5038_v52 = vpop.eup %5037  ;;  %v2349_v9 = vadd.f32 0.5, %v2345_v49 }
 0xbae   : > { %v5040_v32 = vpop.eup %5039  ;;  %v2368_v47 = vmul.f32 %v5038_v52, %v2348_v40  ;;  %v2347_v53 = vadd.f32 0.5, %v2343_v4 }
 0xbaf   : > { %v5042_v33 = vpop.eup %5041  ;;  %v2366_v7 = vmul.f32 %v5040_v32, %v2346_v15 }
 0xbb0   : > { %v5044_v31 = vpop.eup %5043  ;;  %v2369_v3 = vmul.f32 %v5042_v33, %v2349_v9  ;;  %v2372_v37 = vmul.f32 %v2368_v47, %v5787_v48 }
 0xbb1   : > { %v2367_v0 = vmul.f32 %v5044_v31, %v2347_v53  ;;  %v2370_v36 = vmul.f32 %v2366_v7, %v5777_v5 }
 0xbb2   : > { %v2373_v26 = vmul.f32 %v2369_v3, %v5790_v8 }
 0xbb3   : > { %v2371_v10 = vmul.f32 %v2367_v0, %v5779_v54 }
 0xbb5   : > { %v2374_v22 = vadd.f32 %v2371_v10, %v2370_v36 }
 0xbb7   : > { %v2375_v28 = vadd.f32 %v2374_v22, %v2372_v37 }
 0xbb9   : > { %v2376_v29 = vadd.f32 %v2375_v28, %v2373_v26 }
 0xbbb   : > { %v2377_v41 = vrot.slane %v2376_v29, 4 }
 0xbbd   : > { %v2378_v16 = vadd.f32 %v2377_v41, %v2376_v29 }
 0xbbf   : > { %v2379_v60 = vrot.slane %v2378_v16, 2 }
 0xbc1   : > { %v2380_v63 = vadd.f32 %v2379_v60, %v2378_v16 }
 0xbc3   : > { %v2381_v6 = vrot.slane %v2380_v63, 1 }
 0xbc5   : > { %v2382_v51 = vadd.f32 %v2381_v6, %v2380_v63 }
 0xbc7   : > { %v2383_v59 = vadd.f32 %v2382_v51, %v5799_v61 }
 0xbc9   : > { %v2384_v43 = vand.u32 2147483647, %v2383_v59 }
 0xbcb   : > { %v2385_v5 = vadd.f32 %v2384_v43, %v5919_v34 }
 0xbcd   : > { %v2386_v54 = vmul.f32 %v5922_v23, %v2385_v5 }
 0xbcf   : > { %v6015_v48 = vadd.f32 %v5927_v35, %v2386_v54 }
 0xbd1   : > { %v2388_v8 = vpack.c.bf16 %v6015_v48, %v6015_v48  ;;  %v2615_v42 = vadd.f32 %v6015_v48, %v5930_v12 }
 0xbd3   : > { %v2390_v27 = vand.u32 %v2388_v8, %v5466_v11  ;;  %v6022_v24 = vmul.f32 0.5, %v2615_v42 }
 0xbd5   : > { %4664 = vmatprep.subr.bf16.mxu1 %v2390_v27  ;;  %v2617_v61 = vpack.c.bf16 %v6022_v24, %v6022_v24 }
 0xbd6   : > { %4665 = vmatpush3.bf16.msra.mxu1 %v2390_v27 }
 0xbd7   : > { %v2619_v34 = vand.u32 %v2617_v61, %v5466_v11 }
 0xbd9   : > { %4667 = vmatmul.mubr.msk.bf16.vlgmr.msra.gmra.mrb[40].mxu1 %vm970_vm2, %v5475_v20  ;;  %4694 = vmatprep.subr.bf16.mxu0 %v2619_v34 }
 0xbda   : > { %4695 = vmatpush3.bf16.msra.mxu0 %v2619_v34  ;;  %4674 = vmatprep.mubr.msk.bf16.mxu1 %vm1059_vm3, %v5563_v55 }
 0xbdd   : > { %4697 = vmatmul.mubr.msk.bf16.vlgmr.msra.gmra.mrb[56].mxu0 %vm970_vm2, %v5475_v20 }
 0xbde   : > { %4712 = vmatprep.mubr.msk.bf16.mxu0 %vm1059_vm3, %v5565_v56 }
 0xcac   : > { %v4668_v23 = vpop.f32.mrb[40].mxu1 }
 0xcad   : > { %v2435_v35 = vadd.f32 %v4668_v23, %v5571_v57  ;;  %v2426_v30 = vpop.f32.mrb[41].mxu1 }
 0xcae   : > { %v2427_v2 = vadd.f32 %v2426_v30, %v5573_v58  ;;  %v4669_v40 = vpop.f32.mrb[42].mxu1 }
 0xcaf   : > { %v2438_v49 = vadd.f32 %v4669_v40, %v5576_v62  ;;  %v2429_v15 = vpop.f32.mrb[43].mxu1  ;;  %v2443_v9 = vmax.f32 %v2435_v35, 0.0 }
 0xcb0   : > { %v2430_v4 = vadd.f32 %v2429_v15, %v5579_v1  ;;  %v4698_v52 = vpop.f32.mrb[56].mxu0  ;;  %v2441_v33 = vmax.f32 %v2427_v2, 0.0 }
 0xcb1   : > { %v2444_v32 = vmax.f32 %v2438_v49, 0.0  ;;  %v2664_v47 = vadd.f32 %v4698_v52, %v5571_v57  ;;  %v2655_v53 = vpop.f32.mrb[57].mxu0 }
 0xcb2   : > { %v2442_v7 = vmax.f32 %v2430_v4, 0.0  ;;  %v2656_v31 = vadd.f32 %v2655_v53, %v5573_v58  ;;  %v4699_v3 = vpop.f32.mrb[58].mxu0 }
 0xcb3   : > { %v2446_v0 = vpack.c.bf16 %v2444_v32, %v2443_v9  ;;  %v2667_v36 = vadd.f32 %v4699_v3, %v5576_v62  ;;  %v2658_v10 = vpop.f32.mrb[59].mxu0  ;;  %v2672_v26 = vmax.f32 %v2664_v47, 0.0  ;;  %v6648_v3 = vld [vmem:[#allocation41_spill] sm:$0xff] }
 0xcb4   : > { %v2445_v37 = vpack.c.bf16 %v2442_v7, %v2441_v33  ;;  %v2659_v22 = vadd.f32 %v2658_v10, %v5579_v1  ;;  %v2670_v29 = vmax.f32 %v2656_v31, 0.0 }
 0xcb5   : > { %v2673_v28 = vmax.f32 %v2667_v36, 0.0  ;;  %v6649_v36 = vld [vmem:[#allocation40_spill] sm:$0xff] }
 0xcb6   : > { %v2671_v41 = vmax.f32 %v2659_v22, 0.0  ;;  %4670 = vmatprep.subr.bf16.mxu1 %v2445_v37  ;;  %v6650_v22 = vld [vmem:[#allocation42_spill] sm:$0xff] }
 0xcb7   : > { %v2675_v16 = vpack.c.bf16 %v2673_v28, %v2672_v26  ;;  %4671 = vmatpush3.bf16.msra.mxu1 %v2445_v37  ;;  %v6651_v26 = vld [vmem:[#allocation43_spill] sm:$0xff] }
 0xcb8   : > { %v2674_v60 = vpack.c.bf16 %v2671_v41, %v2670_v29  ;;  %4672 = vmatprep.subr.bf16.mxu1 %v2446_v0  ;;  %v6652_v28 = vmin.f32 %v6650_v22, %v6651_v26 }
 0xcbb   : > { %4673 = vmatpush3.bf16.msra.mxu1 %v2446_v0  ;;  %v6072_v0 = vadd.f32 %v5985_v14, %v6648_v3 }
 0xcbd   : > { %v2196_v10 = vrot.slane %v6072_v0, %v6649_v36  ;;  %v2198_v29 = vmin.f32 %v6652_v28, %v6072_v0  ;;  %vm2826_vm11 = vcmp.lt.f32.partialorder %v6072_v0, 0.0 }
 0xcbe   : > { %4675 = vmatmul.mubr.msk.bf16.vlgmr.msra.gmra.mrb[44].mxu1 %vm1059_vm3, %v5585_v17 }
 0xcbf   : > { %4682 = vmatprep.mubr.msk.bf16.mxu1 %vm1059_vm3, %v5565_v56 }
 0xd91   : > { %v4676_v63 = vpop.f32.mrb[44].mxu1 }
 0xd92   : > { %v2490_v6 = vadd.f32 %v4676_v63, %v5593_v21  ;;  %v2481_v51 = vpop.f32.mrb[45].mxu1 }
 0xd93   : > { %v2482_v59 = vadd.f32 %v2481_v51, %v5589_v18  ;;  %v4677_v43 = vpop.f32.mrb[46].mxu1 }
 0xd94   : > { %v2493_v5 = vadd.f32 %v4677_v43, %v5596_v25  ;;  %v2484_v54 = vpop.f32.mrb[47].mxu1  ;;  %v2498_v42 = vmax.f32 %v2490_v6, 0.0 }
 0xd95   : > { %v2485_v8 = vadd.f32 %v2484_v54, %v5591_v19  ;;  %v2496_v61 = vmax.f32 %v2482_v59, 0.0  ;;  %v6654_v59 = vld [vmem:[#allocation44_spill] sm:$0xff] }
 0xd96   : > { %v2499_v27 = vmax.f32 %v2493_v5, 0.0 }
 0xd97   : > { %v2497_v34 = vmax.f32 %v2485_v8, 0.0 }
 0xd98   : > { %v2501_v23 = vpack.c.bf16 %v2499_v27, %v2498_v42 }
 0xd99   : > { %v2500_v35 = vpack.c.bf16 %v2497_v34, %v2496_v61 }
 0xd9b   : > { %4678 = vmatprep.subr.bf16.mxu1 %v2500_v35 }
 0xd9c   : > { %4679 = vmatpush3.bf16.msra.mxu1 %v2500_v35 }
 0xd9d   : > { %4680 = vmatprep.subr.bf16.mxu1 %v2501_v23 }
 0xda0   : > { %4681 = vmatpush3.bf16.msra.mxu1 %v2501_v23 }
 0xda1   : > { %4686 = vmatprep.subr.bf16.mxu1 %v6615_v38 }
 0xda3   : > { %4683 = vmatmul.mubr.msk.bf16.vlgmr.msra.gmra.mrb[48].mxu1 %vm1059_vm3, %v5603_v39 }
 0xda4   : > { %4690 = vmatprep.mubr.msk.bf16.mxu1 %vm5262_vm4, %v6615_v38 }
 0xe76   : > { %v4684_v30 = vpop.f32.mrb[48].mxu1 }
 0xe77   : > { %v2545_v2 = vadd.f32 %v4684_v30, %v5624_v46  ;;  %v2536_v40 = vpop.f32.mrb[49].mxu1 }
 0xe78   : > { %v2537_v49 = vadd.f32 %v2536_v40, %v5620_v44  ;;  %v4685_v15 = vpop.f32.mrb[50].mxu1 }
 0xe79   : > { %v2548_v4 = vadd.f32 %v4685_v15, %v5627_v50  ;;  %v2539_v52 = vpop.f32.mrb[51].mxu1  ;;  %v2553_v32 = vmax.f32 %v2545_v2, 0.0 }
 0xe7a   : > { %v2540_v9 = vadd.f32 %v2539_v52, %v5622_v45  ;;  %v2551_v53 = vmax.f32 %v2537_v49, 0.0 }
 0xe7b   : > { %v2554_v47 = vmax.f32 %v2548_v4, 0.0 }
 0xe7c   : > { %v2552_v33 = vmax.f32 %v2540_v9, 0.0 }
 0xe7d   : > { %v2556_v7 = vpack.c.bf16 %v2554_v47, %v2553_v32 }
 0xe7e   : > { %v2555_v31 = vpack.c.bf16 %v2552_v33, %v2551_v53 }
 0xe80   : > { %4687 = vmatpush3.bf16.msra.mxu1 %v2555_v31 }
 0xe81   : > { %4688 = vmatprep.subr.bf16.mxu1 %v6615_v38 }
 0xe84   : > { %4689 = vmatpush3.bf16.msra.mxu1 %v2556_v7  ;;  %v6655_v7 = vld [vmem:[#allocation20_spill] sm:$0xff] }
 0xe85   : > { %4700 = vmatprep.subr.bf16.mxu1 %v2674_v60 }
 0xe87   : > { %4691 = vmatmul.mubr.msk.bf16.vlgmr.msra.gmra.mrb[52].mxu1 %vm1059_vm3, %v5649_v13 }
 0xe88   : > { %4701 = vmatpush3.bf16.msra.mxu1 %v2674_v60  ;;  %4704 = vmatprep.mubr.msk.bf16.mxu1 %vm1059_vm3, %v5563_v55  ;;  %v6653_v60 = vld [vmem:[#allocation39_spill] sm:$0xff] }
 0xe89   : > { %4702 = vmatprep.subr.bf16.mxu1 %v2675_v16  ;;  %vm2192_vm8 = vcmp.eq.s32.totalorder %v6653_v60, 2  ;;  %vm2597_vm9 = vcmp.eq.s32.totalorder %v6653_v60, 3 }
 0xe8a   : > { %v2197_v43 = vsel %vm2192_vm8, %v2196_v10, %v6654_v59 }
 0xe8c   : > { %4703 = vmatpush3.bf16.msra.mxu1 %v2675_v16 }
 0xe8d   : > { %4716 = vmatprep.subr.bf16.mxu1 %v6615_v38 }
 0xe8f   : > { %4705 = vmatmul.mubr.msk.bf16.vlgmr.msra.gmra.mrb[56].mxu1 %vm1059_vm3, %v5585_v17 }
 0xe90   : > { %4720 = vmatprep.mubr.msk.bf16.mxu1 %vm5262_vm4, %v6615_v38 }
 0xf5a   : > { %v2591_v37 = vpop.f32.mrb[52].mxu1 }
 0xf5b   : > { %v2592_v41 = vadd.f32 %v2591_v37, %v6648_v3  ;;  %v4692_v16 = vpop.f32.mrb[53].mxu1 }
 0xf5c   : > { %v2594_v14 = vpop.f32.mrb[54].mxu1 }
 0xf5d   : > { %v2601_v63 = vrot.slane %v2592_v41, %v6649_v36  ;;  %v2603_v6 = vmin.f32 %v2198_v29, %v2592_v41  ;;  %v4693_v51 = vpop.f32.mrb[55].mxu1 }
 0xf5f   : > { %vm2605_vm10 = vcmp.le.f32.partialorder %v2603_v6, 0.0  ;;  %v2609_v5 = vmul.f32 -1.0, %v2603_v6  ;;  %v2602_v54 = vsel %vm2597_vm9, %v2601_v63, %v2197_v43 }
 0xf60   : > { %v4292_v8 = vsel %vm2605_vm10, 1.0, %v6615_v38  ;;  %2604 = vst [vmem:[%s6090_s27] sm:$0xf] %v2602_v54 }
 0xf61   : > { %v2610_v42 = vmul.f32 0.5, %v2609_v5  ;;  %2608 = vst [vmem:[%s6569_s3] sm:$0x1] %v4292_v8  ;;  %s5059_s3 = scalar_lea.vmem %s3881_s24, 64 }
 0xf62   : > { %v4706_v27 = vpop.f32.mrb[56].mxu1  ;;  %p5060_p12 = scmp.ne.s32.totalorder %s3881_s24, %s5059_s3 }
 0xf63   : > { %5045 = vtanh.f32 %v2610_v42  ;;  %v2719_v61 = vadd.f32 %v4706_v27, %v5593_v21  ;;  %v2710_v34 = vpop.f32.mrb[57].mxu1 }
 0xf64   : > { %v2711_v23 = vadd.f32 %v2710_v34, %v5589_v18  ;;  %v4707_v35 = vpop.f32.mrb[58].mxu1  ;;  %p5061_p13 = pnand %p5060_p12, %p5413_p4 }
 0xf65   : > { %v2722_v30 = vadd.f32 %v4707_v35, %v5596_v25  ;;  %v2713_v2 = vpop.f32.mrb[59].mxu1  ;;  %v2727_v49 = vmax.f32 %v2719_v61, 0.0 }
 0xf66   : > { %v2714_v40 = vadd.f32 %v2713_v2, %v5591_v19  ;;  %v2725_v4 = vmax.f32 %v2711_v23, 0.0  ;;  %p5062_p0 = pneg %p5061_p13 }
 0xf67   : > { %v2728_v15 = vmax.f32 %v2722_v30, 0.0 }
 0xf68   : > { %v2726_v52 = vmax.f32 %v2714_v40, 0.0 }
 0xf69   : > { %v2730_v9 = vpack.c.bf16 %v2728_v15, %v2727_v49 }
 0xf6a   : > { %v2729_v32 = vpack.c.bf16 %v2726_v52, %v2725_v4 }
 0xf6c   : > { %4708 = vmatprep.subr.bf16.mxu0 %v2729_v32 }
 0xf6d   : > { %v5046_v47 = vpop.eup %5045  ;;  %4709 = vmatpush3.bf16.msra.mxu0 %v2729_v32 }
 0xf6e   : > { %4710 = vmatprep.subr.bf16.mxu0 %v2730_v9  ;;  %v2612_v53 = vmul.f32 0.5, %v5046_v47 }
 0xf70   : > { %v2613_v33 = vadd.f32 0.5, %v2612_v53 }
 0xf71   : > { %4711 = vmatpush3.bf16.msra.mxu0 %v2730_v9 }
 0xf72   : > { %2614 = vst [vmem:[%s6570_s0] sm:$0x1] %v2613_v33  ;;  %s5263_s0 = smov [#allocation8]  }
 0xf74   : > { %4713 = vmatmul.mubr.msk.bf16.vlgmr.msra.gmra.mrb[60].mxu0 %vm1059_vm3, %v5603_v39 }
 0xf75   : > { %4726 = vmatprep.mubr.msk.bf16.mxu0 %vm970_vm2, %v6655_v7 }
0x1047   : > { %v4714_v31 = vpop.f32.mrb[60].mxu0 }
0x1048   : > { %v2774_v10 = vadd.f32 %v4714_v31, %v5624_v46  ;;  %v2765_v37 = vpop.f32.mrb[61].mxu0 }
0x1049   : > { %v2766_v22 = vadd.f32 %v2765_v37, %v5620_v44  ;;  %v4715_v26 = vpop.f32.mrb[62].mxu0 }
0x104a   : > { %v2777_v28 = vadd.f32 %v4715_v26, %v5627_v50  ;;  %v2768_v29 = vpop.f32.mrb[63].mxu0  ;;  %v2782_v16 = vmax.f32 %v2774_v10, 0.0 }
0x104b   : > { %v2769_v41 = vadd.f32 %v2768_v29, %v5622_v45  ;;  %v2780_v14 = vmax.f32 %v2766_v22, 0.0 }
0x104c   : > { %v2783_v60 = vmax.f32 %v2777_v28, 0.0 }
0x104d   : > { %v2781_v63 = vmax.f32 %v2769_v41, 0.0 }
0x104e   : > { %v2785_v6 = vpack.c.bf16 %v2783_v60, %v2782_v16 }
0x104f   : > { %v2784_v51 = vpack.c.bf16 %v2781_v63, %v2780_v14 }
0x1051   : > { %4717 = vmatpush3.bf16.msra.mxu1 %v2784_v51 }
0x1052   : > { %4718 = vmatprep.subr.bf16.mxu1 %v6615_v38 }
0x1055   : > { %4719 = vmatpush3.bf16.msra.mxu1 %v2785_v6 }
0x1058   : > { %4721 = vmatmul.mubr.msk.bf16.vlgmr.msra.gmra.mrb[60].mxu1 %vm1059_vm3, %v5649_v13 }
0x1059   : > { %4734 = vmatprep.mubr.msk.bf16.mxu1 %vm1059_vm3, %v5563_v55 }
0x112b   : > { %v2820_v59 = vpop.f32.mrb[60].mxu1 }
0x112c   : > { %v2821_v43 = vadd.f32 %v2820_v59, %v6648_v3  ;;  %v4722_v5 = vpop.f32.mrb[61].mxu1 }
0x112d   : > { %v2823_v54 = vpop.f32.mrb[62].mxu1 }
0x112e   : > { %vm2827_vm12 = vcmp.gt.f32.partialorder %v2821_v43, 0.0  ;;  %v4723_v8 = vpop.f32.mrb[63].mxu1 }
0x112f   : > { %vm2828_vm13 = vmxor %vm2826_vm11, %vm2827_vm12 }
0x1130   : > { %v4300_v42 = vsel %vm2828_vm13, 1.0, %v6615_v38 }
0x1131   : > { %v2831_v27 = vsub.f32 1.0, %v4300_v42  ;;  %v2835_v61 = vrot.slane %v4300_v42, %v6649_v36  ;;  %v2846_v34 = vmul.f32 %v4300_v42, %v2821_v43 }
0x1133   : > { %v2840_v23 = vrot.slane %v2831_v27, %v6649_v36  ;;  %v2847_v35 = vmul.f32 %v2831_v27, %v6072_v0  ;;  %v2836_v30 = vmul.f32 %v2835_v61, %v6022_v24  ;;  %v2843_v40 = vmul.f32 %v2835_v61, %v6015_v48 }
0x1135   : > { %v2841_v2 = vmul.f32 %v2840_v23, %v5930_v12  ;;  %v2844_v49 = vmul.f32 %v2840_v23, %v6022_v24  ;;  %v6126_v15 = vadd.f32 %v2847_v35, %v2846_v34 }
0x1137   : > { %v6128_v4 = vadd.f32 %v2841_v2, %v2836_v30  ;;  %v6130_v52 = vadd.f32 %v2844_v49, %v2843_v40  ;;  %vm3060_vm14 = vcmp.lt.f32.partialorder %v6126_v15, 0.0 }
0x1139   : > { %v2849_v9 = vadd.f32 %v6130_v52, %v6128_v4 }
0x113b   : > { %v6134_v32 = vmul.f32 0.5, %v2849_v9 }
0x113d   : > { %v2851_v0 = vpack.c.bf16 %v6134_v32, %v6134_v32 }
0x113f   : > { %v2853_v12 = vand.u32 %v2851_v0, %v5466_v11 }
0x1141   : > { %4724 = vmatprep.subr.bf16.mxu0 %v2853_v12 }
0x1142   : > { %4725 = vmatpush3.bf16.msra.mxu0 %v2853_v12 }
0x1145   : > { %4727 = vmatmul.mubr.msk.bf16.vlgmr.msra.gmra.mrb[64].mxu0 %vm970_vm2, %v5475_v20 }
0x1146   : > { %4742 = vmatprep.mubr.msk.bf16.mxu0 %vm1059_vm3, %v5565_v56 }
0x1218   : > { %v4728_v48 = vpop.f32.mrb[64].mxu0 }
0x1219   : > { %v2898_v24 = vadd.f32 %v4728_v48, %v5571_v57  ;;  %v2889_v47 = vpop.f32.mrb[65].mxu0 }
0x121a   : > { %v2890_v53 = vadd.f32 %v2889_v47, %v5573_v58  ;;  %v4729_v33 = vpop.f32.mrb[66].mxu0 }
0x121b   : > { %v2901_v31 = vadd.f32 %v4729_v33, %v5576_v62  ;;  %v2892_v10 = vpop.f32.mrb[67].mxu0  ;;  %v2906_v22 = vmax.f32 %v2898_v24, 0.0 }
0x121c   : > { %v2893_v37 = vadd.f32 %v2892_v10, %v5579_v1  ;;  %v2904_v28 = vmax.f32 %v2890_v53, 0.0 }
0x121d   : > { %v2907_v26 = vmax.f32 %v2901_v31, 0.0 }
0x121e   : > { %v2905_v29 = vmax.f32 %v2893_v37, 0.0 }
0x121f   : > { %v2909_v41 = vpack.c.bf16 %v2907_v26, %v2906_v22 }
0x1220   : > { %v2908_v16 = vpack.c.bf16 %v2905_v29, %v2904_v28 }
0x1222   : > { %4730 = vmatprep.subr.bf16.mxu1 %v2908_v16 }
0x1223   : > { %4731 = vmatpush3.bf16.msra.mxu1 %v2908_v16 }
0x1224   : > { %4732 = vmatprep.subr.bf16.mxu1 %v2909_v41 }
0x1227   : > { %4733 = vmatpush3.bf16.msra.mxu1 %v2909_v41 }
0x1228   : > { %4746 = vmatprep.subr.bf16.mxu1 %v6615_v38 }
0x122a   : > { %4735 = vmatmul.mubr.msk.bf16.vlgmr.msra.gmra.mrb[64].mxu1 %vm1059_vm3, %v5585_v17 }
0x122b   : > { %4750 = vmatprep.mubr.msk.bf16.mxu1 %vm5262_vm4, %v6615_v38 }
0x12fd   : > { %v4736_v60 = vpop.f32.mrb[64].mxu1 }
0x12fe   : > { %v2953_v14 = vadd.f32 %v4736_v60, %v5593_v21  ;;  %v2944_v63 = vpop.f32.mrb[65].mxu1 }
0x12ff   : > { %v2945_v6 = vadd.f32 %v2944_v63, %v5589_v18  ;;  %v4737_v51 = vpop.f32.mrb[66].mxu1 }
0x1300   : > { %v2956_v59 = vadd.f32 %v4737_v51, %v5596_v25  ;;  %v2947_v43 = vpop.f32.mrb[67].mxu1  ;;  %v2961_v54 = vmax.f32 %v2953_v14, 0.0 }
0x1301   : > { %v2948_v5 = vadd.f32 %v2947_v43, %v5591_v19  ;;  %v2959_v42 = vmax.f32 %v2945_v6, 0.0 }
0x1302   : > { %v2962_v8 = vmax.f32 %v2956_v59, 0.0 }
0x1303   : > { %v2960_v27 = vmax.f32 %v2948_v5, 0.0 }
0x1304   : > { %v2964_v61 = vpack.c.bf16 %v2962_v8, %v2961_v54 }
0x1305   : > { %v2963_v34 = vpack.c.bf16 %v2960_v27, %v2959_v42 }
0x1307   : > { %4738 = vmatprep.subr.bf16.mxu0 %v2963_v34 }
0x1308   : > { %4739 = vmatpush3.bf16.msra.mxu0 %v2963_v34 }
0x1309   : > { %4740 = vmatprep.subr.bf16.mxu0 %v2964_v61 }
0x130c   : > { %4741 = vmatpush3.bf16.msra.mxu0 %v2964_v61 }
0x130f   : > { %4743 = vmatmul.mubr.msk.bf16.vlgmr.msra.gmra.mrb[68].mxu0 %vm1059_vm3, %v5603_v39 }
0x1310   : > { %4756 = vmatprep.mubr.msk.bf16.mxu0 %vm970_vm2, %v6655_v7 }
0x13e2   : > { %v4744_v23 = vpop.f32.mrb[68].mxu0 }
0x13e3   : > { %v3008_v35 = vadd.f32 %v4744_v23, %v5624_v46  ;;  %v2999_v30 = vpop.f32.mrb[69].mxu0 }
0x13e4   : > { %v3000_v2 = vadd.f32 %v2999_v30, %v5620_v44  ;;  %v4745_v40 = vpop.f32.mrb[70].mxu0 }
0x13e5   : > { %v3011_v49 = vadd.f32 %v4745_v40, %v5627_v50  ;;  %v3002_v9 = vpop.f32.mrb[71].mxu0  ;;  %v3016_v12 = vmax.f32 %v3008_v35, 0.0 }
0x13e6   : > { %v3003_v0 = vadd.f32 %v3002_v9, %v5622_v45  ;;  %v3014_v24 = vmax.f32 %v3000_v2, 0.0 }
0x13e7   : > { %v3017_v48 = vmax.f32 %v3011_v49, 0.0 }
0x13e8   : > { %v3015_v47 = vmax.f32 %v3003_v0, 0.0 }
0x13e9   : > { %v3019_v53 = vpack.c.bf16 %v3017_v48, %v3016_v12 }
0x13ea   : > { %v3018_v33 = vpack.c.bf16 %v3015_v47, %v3014_v24 }
0x13ec   : > { %4747 = vmatpush3.bf16.msra.mxu1 %v3018_v33 }
0x13ed   : > { %4748 = vmatprep.subr.bf16.mxu1 %v6615_v38 }
0x13f0   : > { %4749 = vmatpush3.bf16.msra.mxu1 %v3019_v53 }
0x13f3   : > { %4751 = vmatmul.mubr.msk.bf16.vlgmr.msra.gmra.mrb[68].mxu1 %vm1059_vm3, %v5649_v13 }
0x13f4   : > { %4764 = vmatprep.mubr.msk.bf16.mxu1 %vm1059_vm3, %v5563_v55 }
0x14c6   : > { %v3054_v31 = vpop.f32.mrb[68].mxu1 }
0x14c7   : > { %v3055_v10 = vadd.f32 %v3054_v31, %v6648_v3  ;;  %v4752_v37 = vpop.f32.mrb[69].mxu1 }
0x14c8   : > { %v3057_v22 = vpop.f32.mrb[70].mxu1 }
0x14c9   : > { %vm3061_vm15 = vcmp.gt.f32.partialorder %v3055_v10, 0.0  ;;  %v4753_v26 = vpop.f32.mrb[71].mxu1 }
0x14ca   : > { %vm3062_vm0 = vmxor %vm3060_vm14, %vm3061_vm15 }
0x14cb   : > { %v4308_v28 = vsel %vm3062_vm0, 1.0, %v6615_v38 }
0x14cc   : > { %v3065_v29 = vsub.f32 1.0, %v4308_v28  ;;  %v3069_v41 = vrot.slane %v4308_v28, %v6649_v36  ;;  %v3080_v16 = vmul.f32 %v4308_v28, %v3055_v10 }
0x14ce   : > { %v3074_v60 = vrot.slane %v3065_v29, %v6649_v36  ;;  %v3081_v14 = vmul.f32 %v3065_v29, %v6126_v15  ;;  %v3070_v63 = vmul.f32 %v3069_v41, %v6134_v32  ;;  %v3077_v51 = vmul.f32 %v3069_v41, %v6130_v52 }
0x14d0   : > { %v3075_v6 = vmul.f32 %v3074_v60, %v6128_v4  ;;  %v3078_v59 = vmul.f32 %v3074_v60, %v6134_v32  ;;  %v6179_v43 = vadd.f32 %v3081_v14, %v3080_v16 }
0x14d2   : > { %v6181_v5 = vadd.f32 %v3075_v6, %v3070_v63  ;;  %v6183_v54 = vadd.f32 %v3078_v59, %v3077_v51  ;;  %vm3294_vm1 = vcmp.lt.f32.partialorder %v6179_v43, 0.0 }
0x14d4   : > { %v3083_v8 = vadd.f32 %v6183_v54, %v6181_v5 }
0x14d6   : > { %v6187_v42 = vmul.f32 0.5, %v3083_v8 }
0x14d8   : > { %v3085_v15 = vpack.c.bf16 %v6187_v42, %v6187_v42 }
0x14da   : > { %v3087_v4 = vand.u32 %v3085_v15, %v5466_v11 }
0x14dc   : > { %4754 = vmatprep.subr.bf16.mxu0 %v3087_v4 }
0x14dd   : > { %4755 = vmatpush3.bf16.msra.mxu0 %v3087_v4 }
0x14e0   : > { %4757 = vmatmul.mubr.msk.bf16.vlgmr.msra.gmra.mrb[72].mxu0 %vm970_vm2, %v5475_v20 }
0x14e1   : > { %4772 = vmatprep.mubr.msk.bf16.mxu0 %vm1059_vm3, %v5565_v56 }
0x15b3   : > { %v4758_v52 = vpop.f32.mrb[72].mxu0 }
0x15b4   : > { %v3132_v32 = vadd.f32 %v4758_v52, %v5571_v57  ;;  %v3123_v27 = vpop.f32.mrb[73].mxu0 }
0x15b5   : > { %v3124_v61 = vadd.f32 %v3123_v27, %v5573_v58  ;;  %v4759_v34 = vpop.f32.mrb[74].mxu0 }
0x15b6   : > { %v3135_v23 = vadd.f32 %v4759_v34, %v5576_v62  ;;  %v3126_v35 = vpop.f32.mrb[75].mxu0  ;;  %v3140_v2 = vmax.f32 %v3132_v32, 0.0 }
0x15b7   : > { %v3127_v30 = vadd.f32 %v3126_v35, %v5579_v1  ;;  %v3138_v49 = vmax.f32 %v3124_v61, 0.0 }
0x15b8   : > { %v3141_v40 = vmax.f32 %v3135_v23, 0.0 }
0x15b9   : > { %v3139_v9 = vmax.f32 %v3127_v30, 0.0 }
0x15ba   : > { %v3143_v0 = vpack.c.bf16 %v3141_v40, %v3140_v2 }
0x15bb   : > { %v3142_v12 = vpack.c.bf16 %v3139_v9, %v3138_v49 }
0x15bd   : > { %4760 = vmatprep.subr.bf16.mxu1 %v3142_v12 }
0x15be   : > { %4761 = vmatpush3.bf16.msra.mxu1 %v3142_v12 }
0x15bf   : > { %4762 = vmatprep.subr.bf16.mxu1 %v3143_v0 }
0x15c2   : > { %4763 = vmatpush3.bf16.msra.mxu1 %v3143_v0 }
0x15c3   : > { %4776 = vmatprep.subr.bf16.mxu1 %v6615_v38 }
0x15c5   : > { %4765 = vmatmul.mubr.msk.bf16.vlgmr.msra.gmra.mrb[72].mxu1 %vm1059_vm3, %v5585_v17 }
0x15c6   : > { %4780 = vmatprep.mubr.msk.bf16.mxu1 %vm5262_vm4, %v6615_v38 }
0x1698   : > { %v4766_v48 = vpop.f32.mrb[72].mxu1 }
0x1699   : > { %v3187_v24 = vadd.f32 %v4766_v48, %v5593_v21  ;;  %v3178_v47 = vpop.f32.mrb[73].mxu1 }
0x169a   : > { %v3179_v53 = vadd.f32 %v3178_v47, %v5589_v18  ;;  %v4767_v33 = vpop.f32.mrb[74].mxu1 }
0x169b   : > { %v3190_v31 = vadd.f32 %v4767_v33, %v5596_v25  ;;  %v3181_v10 = vpop.f32.mrb[75].mxu1  ;;  %v3195_v22 = vmax.f32 %v3187_v24, 0.0 }
0x169c   : > { %v3182_v37 = vadd.f32 %v3181_v10, %v5591_v19  ;;  %v3193_v28 = vmax.f32 %v3179_v53, 0.0 }
0x169d   : > { %v3196_v26 = vmax.f32 %v3190_v31, 0.0 }
0x169e   : > { %v3194_v29 = vmax.f32 %v3182_v37, 0.0 }
0x169f   : > { %v3198_v41 = vpack.c.bf16 %v3196_v26, %v3195_v22 }
0x16a0   : > { %v3197_v16 = vpack.c.bf16 %v3194_v29, %v3193_v28 }
0x16a2   : > { %4768 = vmatprep.subr.bf16.mxu0 %v3197_v16 }
0x16a3   : > { %4769 = vmatpush3.bf16.msra.mxu0 %v3197_v16 }
0x16a4   : > { %4770 = vmatprep.subr.bf16.mxu0 %v3198_v41 }
0x16a7   : > { %4771 = vmatpush3.bf16.msra.mxu0 %v3198_v41 }
0x16aa   : > { %4773 = vmatmul.mubr.msk.bf16.vlgmr.msra.gmra.mrb[76].mxu0 %vm1059_vm3, %v5603_v39 }
0x16ab   : > { %4786 = vmatprep.mubr.msk.bf16.mxu0 %vm970_vm2, %v6655_v7 }
0x177d   : > { %v4774_v60 = vpop.f32.mrb[76].mxu0 }
0x177e   : > { %v3242_v14 = vadd.f32 %v4774_v60, %v5624_v46  ;;  %v3233_v63 = vpop.f32.mrb[77].mxu0 }
0x177f   : > { %v3234_v6 = vadd.f32 %v3233_v63, %v5620_v44  ;;  %v4775_v51 = vpop.f32.mrb[78].mxu0 }
0x1780   : > { %v3245_v59 = vadd.f32 %v4775_v51, %v5627_v50  ;;  %v3236_v8 = vpop.f32.mrb[79].mxu0  ;;  %v3250_v4 = vmax.f32 %v3242_v14, 0.0 }
0x1781   : > { %v3237_v15 = vadd.f32 %v3236_v8, %v5622_v45  ;;  %v3248_v32 = vmax.f32 %v3234_v6, 0.0 }
0x1782   : > { %v3251_v52 = vmax.f32 %v3245_v59, 0.0 }
0x1783   : > { %v3249_v27 = vmax.f32 %v3237_v15, 0.0 }
0x1784   : > { %v3253_v61 = vpack.c.bf16 %v3251_v52, %v3250_v4 }
0x1785   : > { %v3252_v34 = vpack.c.bf16 %v3249_v27, %v3248_v32 }
0x1787   : > { %4777 = vmatpush3.bf16.msra.mxu1 %v3252_v34 }
0x1788   : > { %4778 = vmatprep.subr.bf16.mxu1 %v6615_v38 }
0x178b   : > { %4779 = vmatpush3.bf16.msra.mxu1 %v3253_v61 }
0x178e   : > { %4781 = vmatmul.mubr.msk.bf16.vlgmr.msra.gmra.mrb[76].mxu1 %vm1059_vm3, %v5649_v13 }
0x178f   : > { %4794 = vmatprep.mubr.msk.bf16.mxu1 %vm1059_vm3, %v5563_v55 }
0x1861   : > { %v3288_v23 = vpop.f32.mrb[76].mxu1 }
0x1862   : > { %v3289_v35 = vadd.f32 %v3288_v23, %v6648_v3  ;;  %v4782_v30 = vpop.f32.mrb[77].mxu1 }
0x1863   : > { %v3291_v2 = vpop.f32.mrb[78].mxu1 }
0x1864   : > { %vm3295_vm5 = vcmp.gt.f32.partialorder %v3289_v35, 0.0  ;;  %v4783_v40 = vpop.f32.mrb[79].mxu1 }
0x1865   : > { %vm3296_vm6 = vmxor %vm3294_vm1, %vm3295_vm5 }
0x1866   : > { %v4316_v49 = vsel %vm3296_vm6, 1.0, %v6615_v38 }
0x1867   : > { %v3299_v9 = vsub.f32 1.0, %v4316_v49  ;;  %v3303_v0 = vrot.slane %v4316_v49, %v6649_v36  ;;  %v3314_v12 = vmul.f32 %v4316_v49, %v3289_v35 }
0x1869   : > { %v3308_v48 = vrot.slane %v3299_v9, %v6649_v36  ;;  %v3315_v24 = vmul.f32 %v3299_v9, %v6179_v43  ;;  %v3304_v47 = vmul.f32 %v3303_v0, %v6187_v42  ;;  %v3311_v33 = vmul.f32 %v3303_v0, %v6183_v54 }
0x186b   : > { %v3309_v53 = vmul.f32 %v3308_v48, %v6181_v5  ;;  %v3312_v31 = vmul.f32 %v3308_v48, %v6187_v42  ;;  %v6232_v10 = vadd.f32 %v3315_v24, %v3314_v12 }
0x186d   : > { %v6234_v37 = vadd.f32 %v3309_v53, %v3304_v47  ;;  %v6236_v22 = vadd.f32 %v3312_v31, %v3311_v33  ;;  %vm3528_vm8 = vcmp.lt.f32.partialorder %v6232_v10, 0.0 }
0x186f   : > { %v3317_v26 = vadd.f32 %v6236_v22, %v6234_v37 }
0x1871   : > { %v6240_v28 = vmul.f32 0.5, %v3317_v26 }
0x1873   : > { %v3319_v43 = vpack.c.bf16 %v6240_v28, %v6240_v28 }
0x1875   : > { %v3321_v5 = vand.u32 %v3319_v43, %v5466_v11 }
0x1877   : > { %4784 = vmatprep.subr.bf16.mxu0 %v3321_v5 }
0x1878   : > { %4785 = vmatpush3.bf16.msra.mxu0 %v3321_v5 }
0x187b   : > { %4787 = vmatmul.mubr.msk.bf16.vlgmr.msra.gmra.mrb[80].mxu0 %vm970_vm2, %v5475_v20 }
0x187c   : > { %4802 = vmatprep.mubr.msk.bf16.mxu0 %vm1059_vm3, %v5565_v56 }
0x194e   : > { %v4788_v54 = vpop.f32.mrb[80].mxu0 }
0x194f   : > { %v3366_v42 = vadd.f32 %v4788_v54, %v5571_v57  ;;  %v3357_v29 = vpop.f32.mrb[81].mxu0 }
0x1950   : > { %v3358_v41 = vadd.f32 %v3357_v29, %v5573_v58  ;;  %v4789_v16 = vpop.f32.mrb[82].mxu0 }
0x1951   : > { %v3369_v60 = vadd.f32 %v4789_v16, %v5576_v62  ;;  %v3360_v14 = vpop.f32.mrb[83].mxu0  ;;  %v3374_v6 = vmax.f32 %v3366_v42, 0.0 }
0x1952   : > { %v3361_v63 = vadd.f32 %v3360_v14, %v5579_v1  ;;  %v3372_v59 = vmax.f32 %v3358_v41, 0.0 }
0x1953   : > { %v3375_v51 = vmax.f32 %v3369_v60, 0.0 }
0x1954   : > { %v3373_v8 = vmax.f32 %v3361_v63, 0.0 }
0x1955   : > { %v3377_v15 = vpack.c.bf16 %v3375_v51, %v3374_v6 }
0x1956   : > { %v3376_v4 = vpack.c.bf16 %v3373_v8, %v3372_v59 }
0x1958   : > { %4790 = vmatprep.subr.bf16.mxu1 %v3376_v4 }
0x1959   : > { %4791 = vmatpush3.bf16.msra.mxu1 %v3376_v4 }
0x195a   : > { %4792 = vmatprep.subr.bf16.mxu1 %v3377_v15 }
0x195d   : > { %4793 = vmatpush3.bf16.msra.mxu1 %v3377_v15 }
0x195e   : > { %4806 = vmatprep.subr.bf16.mxu1 %v6615_v38 }
0x1960   : > { %4795 = vmatmul.mubr.msk.bf16.vlgmr.msra.gmra.mrb[80].mxu1 %vm1059_vm3, %v5585_v17 }
0x1961   : > { %4810 = vmatprep.mubr.msk.bf16.mxu1 %vm5262_vm4, %v6615_v38 }
0x1a33   : > { %v4796_v52 = vpop.f32.mrb[80].mxu1 }
0x1a34   : > { %v3421_v32 = vadd.f32 %v4796_v52, %v5593_v21  ;;  %v3412_v27 = vpop.f32.mrb[81].mxu1 }
0x1a35   : > { %v3413_v61 = vadd.f32 %v3412_v27, %v5589_v18  ;;  %v4797_v34 = vpop.f32.mrb[82].mxu1 }
0x1a36   : > { %v3424_v23 = vadd.f32 %v4797_v34, %v5596_v25  ;;  %v3415_v35 = vpop.f32.mrb[83].mxu1  ;;  %v3429_v2 = vmax.f32 %v3421_v32, 0.0 }
0x1a37   : > { %v3416_v30 = vadd.f32 %v3415_v35, %v5591_v19  ;;  %v3427_v49 = vmax.f32 %v3413_v61, 0.0 }
0x1a38   : > { %v3430_v40 = vmax.f32 %v3424_v23, 0.0 }
0x1a39   : > { %v3428_v9 = vmax.f32 %v3416_v30, 0.0 }
0x1a3a   : > { %v3432_v0 = vpack.c.bf16 %v3430_v40, %v3429_v2 }
0x1a3b   : > { %v3431_v12 = vpack.c.bf16 %v3428_v9, %v3427_v49 }
0x1a3d   : > { %4798 = vmatprep.subr.bf16.mxu0 %v3431_v12 }
0x1a3e   : > { %4799 = vmatpush3.bf16.msra.mxu0 %v3431_v12 }
0x1a3f   : > { %4800 = vmatprep.subr.bf16.mxu0 %v3432_v0 }
0x1a42   : > { %4801 = vmatpush3.bf16.msra.mxu0 %v3432_v0 }
0x1a45   : > { %4803 = vmatmul.mubr.msk.bf16.vlgmr.msra.gmra.mrb[84].mxu0 %vm1059_vm3, %v5603_v39 }
0x1a46   : > { %4816 = vmatprep.mubr.msk.bf16.mxu0 %vm970_vm2, %v6655_v7  ;;  %v5057_v7 = vld [vmem:[%s5446_s28] sm:$0x7]  ;;  %s6656_s28 = sadd.s32 4294967295, %s5257_s23  }
0x1a47   : > { %v3779_v60 = vmul.f32 %v5057_v7, %v5057_v7  ;;  %s6320_s1 = sand.u32 1, %s6656_s28   ;;  %s5063_s28 = sshll.u32 %s5263_s0, 4  ;;  %s5064_s28 = int_to_ptr.vmem [resolvable:$false] %s5063_s28 }
0x1a48   : > { %s3817_s5 = scalar_lea.sflag [#allocation9], %s6320_s1  ;;  %p5066_p1 = scmp.lt.s32.totalorder %s3881_s24, %s5064_s28 }
0x1a49   : > { %v3780_v14 = vsel %vm3764_vm7, %v3779_v60, 0.0 }
0x1a4a   : > { %v3781_v63 = vrot.slane %v3780_v14, 4 }
0x1a4c   : > { %v3782_v6 = vadd.f32 %v3781_v63, %v3780_v14 }
0x1a4e   : > { %v3783_v51 = vrot.slane %v3782_v6, 2 }
0x1a50   : > { %v3784_v4 = vadd.f32 %v3783_v51, %v3782_v6 }
0x1a52   : > { %v3785_v27 = vrot.slane %v3784_v4, 1 }
0x1a54   : > { %v3786_v35 = vadd.f32 %v3785_v27, %v3784_v4 }
0x1a56   : > { %5047 = vrsqrt.f32 %v3786_v35  ;;  %vm3789_vm11 = vcmp.eq.f32.partialorder %v3786_v35, inf  ;;  %vm3791_vm12 = vcmp.eq.f32.partialorder %v3786_v35, 0.0 }
0x1b18   : > { %v4804_v48 = vpop.f32.mrb[84].mxu0 }
0x1b19   : > { %v3476_v24 = vadd.f32 %v4804_v48, %v5624_v46  ;;  %v3467_v47 = vpop.f32.mrb[85].mxu0 }
0x1b1a   : > { %v3468_v53 = vadd.f32 %v3467_v47, %v5620_v44  ;;  %v4805_v33 = vpop.f32.mrb[86].mxu0 }
0x1b1b   : > { %v3479_v31 = vadd.f32 %v4805_v33, %v5627_v50  ;;  %v3470_v26 = vpop.f32.mrb[87].mxu0  ;;  %v3484_v5 = vmax.f32 %v3476_v24, 0.0  ;;  %v5058_v24 = vld [vmem:[%s5440_s25] sm:$0x7]  ;;  %s6571_s25 = scalar_lea.vmem [#allocation3], %s6075_s29 }
0x1b1c   : > { %v3471_v43 = vadd.f32 %v3470_v26, %v5622_v45  ;;  %v3482_v42 = vmax.f32 %v3468_v53, 0.0 }
0x1b1d   : > { %v3485_v54 = vmax.f32 %v3479_v31, 0.0 }
0x1b1e   : > { %v3483_v29 = vmax.f32 %v3471_v43, 0.0 }
0x1b1f   : > { %v3487_v41 = vpack.c.bf16 %v3485_v54, %v3484_v5  ;;  %v3792_v5 = vand.u32 2147483648, %v3786_v35 }
0x1b20   : > { %v3486_v16 = vpack.c.bf16 %v3483_v29, %v3482_v42 }
0x1b22   : > { %4807 = vmatpush3.bf16.msra.mxu1 %v3486_v16 }
0x1b23   : > { %4808 = vmatprep.subr.bf16.mxu1 %v6615_v38 }
0x1b26   : > { %4809 = vmatpush3.bf16.msra.mxu1 %v3487_v41 }
0x1b29   : > { %4811 = vmatmul.mubr.msk.bf16.vlgmr.msra.gmra.mrb[84].mxu1 %vm1059_vm3, %v5649_v13 }
0x1b2a   : > { %4824 = vmatprep.mubr.msk.bf16.mxu1 %vm1059_vm3, %v5563_v55 }
0x1bfc   : > { %v3522_v59 = vpop.f32.mrb[84].mxu1 }
0x1bfd   : > { %v3523_v8 = vadd.f32 %v3522_v59, %v6648_v3  ;;  %v4812_v15 = vpop.f32.mrb[85].mxu1 }
0x1bfe   : > { %v3525_v52 = vpop.f32.mrb[86].mxu1 }
0x1bff   : > { %vm3529_vm9 = vcmp.gt.f32.partialorder %v3523_v8, 0.0  ;;  %v4813_v32 = vpop.f32.mrb[87].mxu1 }
0x1c00   : > { %vm3530_vm10 = vmxor %vm3528_vm8, %vm3529_vm9 }
0x1c01   : > { %v4324_v55 = vsel %vm3530_vm10, 1.0, %v6615_v38 }
0x1c02   : > { %v3533_v61 = vsub.f32 1.0, %v4324_v55  ;;  %v3537_v34 = vrot.slane %v4324_v55, %v6649_v36 }
0x1c04   : > { %v3542_v23 = vrot.slane %v3533_v61, %v6649_v36  ;;  %v3538_v30 = vmul.f32 %v3537_v34, %v6240_v28  ;;  %v3545_v40 = vmul.f32 %v3537_v34, %v6236_v22 }
0x1c06   : > { %v3543_v2 = vmul.f32 %v3542_v23, %v6234_v37  ;;  %v3546_v10 = vmul.f32 %v3542_v23, %v6240_v28  ;;  %v5048_v37 = vpop.eup %5047 }
0x1c07   : > { %v3788_v26 = vmul.f32 %v5048_v37, %v3786_v35 }
0x1c08   : > { %v3544_v49 = vadd.f32 %v3543_v2, %v3538_v30  ;;  %v3547_v9 = vadd.f32 %v3546_v10, %v3545_v40 }
0x1c09   : > { %v3790_v54 = vsel %vm3789_vm11, %v3786_v35, %v3788_v26 }
0x1c0a   : > { %v3548_v0 = vadd.f32 %v3547_v9, %v3544_v49  ;;  %v3793_v29 = vsel %vm3791_vm12, %v3792_v5, %v3790_v54 }
0x1c0c   : > { %v3549_v12 = vmul.f32 0.5, %v3548_v0 }
0x1c0e   : > { %v3550_v48 = vpack.c.bf16 %v3549_v12, %v3549_v12  ;;  %v3762_v47 = vsub.f32 %v3549_v12, %v5058_v24 }
0x1c10   : > { %v3552_v53 = vand.u32 %v3550_v48, %v5466_v11  ;;  %v3763_v36 = vmul.f32 %v3762_v47, %v3762_v47 }
0x1c12   : > { %4814 = vmatprep.subr.bf16.mxu0 %v3552_v53  ;;  %v3765_v33 = vsel %vm3764_vm7, %v3763_v36, 0.0 }
0x1c13   : > { %v3766_v31 = vrot.slane %v3765_v33, 4  ;;  %4815 = vmatpush3.bf16.msra.mxu0 %v3552_v53 }
0x1c15   : > { %v3767_v22 = vadd.f32 %v3766_v31, %v3765_v33 }
0x1c16   : > { %4817 = vmatmul.mubr.msk.bf16.vlgmr.msra.gmra.mrb[88].mxu0 %vm970_vm2, %v5475_v20 }
0x1c17   : > { %v3768_v28 = vrot.slane %v3767_v22, 2  ;;  %4832 = vmatprep.mubr.msk.bf16.mxu0 %vm1059_vm3, %v5565_v56 }
0x1c19   : > { %v3769_v43 = vadd.f32 %v3768_v28, %v3767_v22 }
0x1c1b   : > { %v3770_v11 = vrot.slane %v3769_v43, 1 }
0x1c1d   : > { %v3771_v42 = vadd.f32 %v3770_v11, %v3769_v43 }
0x1c1f   : > { %5049 = vrsqrt.f32 %v3771_v42  ;;  %vm3774_vm2 = vcmp.eq.f32.partialorder %v3771_v42, inf  ;;  %v3777_v7 = vand.u32 2147483648, %v3771_v42  ;;  %vm3776_vm13 = vcmp.eq.f32.partialorder %v3771_v42, 0.0 }
0x1c20   : > { %5051 = vrcp.f32 %v3793_v29 }
0x1c29   : > { %v5050_v41 = vpop.eup %5049 }
0x1c2a   : > { %v3773_v16 = vmul.f32 %v5050_v41, %v3771_v42  ;;  %v5052_v20 = vpop.eup %5051 }
0x1c2c   : > { %v3775_v60 = vsel %vm3774_vm2, %v3771_v42, %v3773_v16 }
0x1c2d   : > { %v3778_v56 = vsel %vm3776_vm13, %v3777_v7, %v3775_v60 }
0x1c2e   : > { %v3795_v14 = vmul.f32 %v5052_v20, %v3778_v56 }
0x1c30   : > { %3796 = vst [vmem:[%s6571_s25] sm:$0x1] %v3795_v14  ;;  %s5065_s25 = scalar_lea.vmem %s5064_s28, 128 }
0x1c31   : > { %p5067_p2 = scmp.lt.s32.totalorder %s5065_s25, %s5059_s3 }
0x1c33   : > { %p5068_p3 = por %p5067_p2, %p5066_p1 }
0x1c35   : > { %p5069_p5 = pnand %p5068_p3, %p5062_p0 }
0x1ce9   : > { %v4818_v63 = vpop.f32.mrb[88].mxu0 }
0x1cea   : > { %v3597_v6 = vadd.f32 %v4818_v63, %v5571_v57  ;;  %v3588_v51 = vpop.f32.mrb[89].mxu0 }
0x1ceb   : > { %v3589_v59 = vadd.f32 %v3588_v51, %v5573_v58  ;;  %v4819_v8 = vpop.f32.mrb[90].mxu0 }
0x1cec   : > { %v3600_v15 = vadd.f32 %v4819_v8, %v5576_v62  ;;  %v3591_v4 = vpop.f32.mrb[91].mxu0  ;;  %v3605_v32 = vmax.f32 %v3597_v6, 0.0 }
0x1ced   : > { %v3592_v52 = vadd.f32 %v3591_v4, %v5579_v1  ;;  %v3603_v27 = vmax.f32 %v3589_v59, 0.0 }
0x1cee   : > { %v3606_v55 = vmax.f32 %v3600_v15, 0.0 }
0x1cef   : > { %v3604_v61 = vmax.f32 %v3592_v52, 0.0 }
0x1cf0   : > { %v3608_v34 = vpack.c.bf16 %v3606_v55, %v3605_v32 }
0x1cf1   : > { %v3607_v23 = vpack.c.bf16 %v3604_v61, %v3603_v27 }
0x1cf3   : > { %4820 = vmatprep.subr.bf16.mxu1 %v3607_v23 }
0x1cf4   : > { %4821 = vmatpush3.bf16.msra.mxu1 %v3607_v23 }
0x1cf5   : > { %4822 = vmatprep.subr.bf16.mxu1 %v3608_v34 }
0x1cf8   : > { %4823 = vmatpush3.bf16.msra.mxu1 %v3608_v34 }
0x1cf9   : > { %4836 = vmatprep.subr.bf16.mxu1 %v6615_v38 }
0x1cfb   : > { %4825 = vmatmul.mubr.msk.bf16.vlgmr.msra.gmra.mrb[88].mxu1 %vm1059_vm3, %v5585_v17 }
0x1cfc   : > { %4840 = vmatprep.mubr.msk.bf16.mxu1 %vm5262_vm4, %v6615_v38 }
0x1dce   : > { %v4826_v57 = vpop.f32.mrb[88].mxu1 }
0x1dcf   : > { %v3652_v58 = vadd.f32 %v4826_v57, %v5593_v21  ;;  %v3643_v62 = vpop.f32.mrb[89].mxu1 }
0x1dd0   : > { %v3644_v1 = vadd.f32 %v3643_v62, %v5589_v18  ;;  %v4827_v35 = vpop.f32.mrb[90].mxu1 }
0x1dd1   : > { %v3655_v30 = vadd.f32 %v4827_v35, %v5596_v25  ;;  %v3646_v2 = vpop.f32.mrb[91].mxu1  ;;  %v3660_v10 = vmax.f32 %v3652_v58, 0.0 }
0x1dd2   : > { %v3647_v40 = vadd.f32 %v3646_v2, %v5591_v19  ;;  %v3658_v9 = vmax.f32 %v3644_v1, 0.0 }
0x1dd3   : > { %v3661_v49 = vmax.f32 %v3655_v30, 0.0 }
0x1dd4   : > { %v3659_v0 = vmax.f32 %v3647_v40, 0.0 }
0x1dd5   : > { %v3663_v17 = vpack.c.bf16 %v3661_v49, %v3660_v10 }
0x1dd6   : > { %v3662_v12 = vpack.c.bf16 %v3659_v0, %v3658_v9 }
0x1dd8   : > { %4828 = vmatprep.subr.bf16.mxu0 %v3662_v12 }
0x1dd9   : > { %4829 = vmatpush3.bf16.msra.mxu0 %v3662_v12 }
0x1dda   : > { %4830 = vmatprep.subr.bf16.mxu0 %v3663_v17 }
0x1ddd   : > { %4831 = vmatpush3.bf16.msra.mxu0 %v3663_v17 }
0x1de0   : > { %4833 = vmatmul.mubr.msk.bf16.vlgmr.msra.gmra.mrb[92].mxu0 %vm1059_vm3, %v5603_v39 }
0x1eb3   : > { %v4834_v18 = vpop.f32.mrb[92].mxu0 }
0x1eb4   : > { %v3707_v21 = vadd.f32 %v4834_v18, %v5624_v46  ;;  %v3698_v25 = vpop.f32.mrb[93].mxu0 }
0x1eb5   : > { %v3699_v19 = vadd.f32 %v3698_v25, %v5620_v44  ;;  %v4835_v48 = vpop.f32.mrb[94].mxu0 }
0x1eb6   : > { %v3710_v24 = vadd.f32 %v4835_v48, %v5627_v50  ;;  %v3701_v47 = vpop.f32.mrb[95].mxu0  ;;  %v3715_v36 = vmax.f32 %v3707_v21, 0.0 }
0x1eb7   : > { %v3702_v53 = vadd.f32 %v3701_v47, %v5622_v45  ;;  %v3713_v31 = vmax.f32 %v3699_v19, 0.0 }
0x1eb8   : > { %v3716_v33 = vmax.f32 %v3710_v24, 0.0 }
0x1eb9   : > { %v3714_v39 = vmax.f32 %v3702_v53, 0.0 }
0x1eba   : > { %v3718_v37 = vpack.c.bf16 %v3716_v33, %v3715_v36 }
0x1ebb   : > { %v3717_v46 = vpack.c.bf16 %v3714_v39, %v3713_v31 }
0x1ebd   : > { %4837 = vmatpush3.bf16.msra.mxu1 %v3717_v46 }
0x1ebe   : > { %4838 = vmatprep.subr.bf16.mxu1 %v6615_v38 }
0x1ec1   : > { %4839 = vmatpush3.bf16.msra.mxu1 %v3718_v37 }
0x1ec4   : > { %4841 = vmatmul.mubr.msk.bf16.vlgmr.msra.gmra.mrb[92].mxu1 %vm1059_vm3, %v5649_v13 }
0x1ec5   : > { %5072 = shalt.err (!%p5069_p5)
}
0x1ec6   : > { %s5073_s22 = scalar_lea.hbm %s6329_s13, 64  ;;  %s5077_s0 = scalar_lea.hbm %s6518_s18, 128 }
0x1ec7   : > { %p5074_p6 = scmp.ne.s32.totalorder %s6329_s13, %s5073_s22  ;;  %p5078_p10 = scmp.lt.u32.totalorder %s6329_s13, %s6518_s18 }
0x1ec8   : > { %p5079_p11 = scmp.lt.u32.totalorder %s5077_s0, %s5073_s22  ;;  %p5081_p13 = scmp.lt.u32.totalorder %s5073_s22, %s6329_s13 }
0x1ec9   : > { %p5075_p7 = pnand %p5074_p6, %p5413_p4 }
0x1eca   : > { %p5080_p12 = por %p5079_p11, %p5078_p10 }
0x1ecb   : > { %p5076_p9 = pneg %p5075_p7 }
0x1ecc   : > { %p5082_p0 = por %p5081_p13, %p5080_p12 }
0x1ece   : > { %p5083_p1 = pnand %p5082_p0, %p5076_p9 }
0x1ed0   : > { %5086 = shalt.err (!%p5083_p1)
}
0x1ed1   : > { %4847 = dma.vmem_to_hbm [thread:$0]  (%p5413_p4), %s3881_s24, 64, %s6329_s13, %s3817_s5  }
0x1ed2   : > { %s6356_s28 = scalar_lea.hbm %s6515_s15, %s6323_s2  ;;  %s6657_s27 = scalar_lea.vmem [#allocation3], %s6075_s29 }
0x1ed3   : > { %s3838_s22 = sshll.u32 %s6657_s27, 4  ;;  %s3805_s14 = scalar_lea.sflag [#allocation4], %s6075_s29  ;;  %s3839_s22 = int_to_ptr.vmem [resolvable:$true] %s3838_s22 }
0x1ed4   : > { %s5087_s0 = scalar_lea.vmem %s3839_s22, 16  ;;  %s5264_s20 = smov [#allocation3]  }
0x1ed5   : > { %p5088_p2 = scmp.ne.s32.totalorder %s3839_s22, %s5087_s0  ;;  %s5091_s17 = sshll.u32 %s5264_s20, 4  ;;  %s5092_s17 = int_to_ptr.vmem [resolvable:$false] %s5091_s17 }
0x1ed6   : > { %s5093_s4 = scalar_lea.vmem %s5092_s17, 32  ;;  %p5094_p6 = scmp.lt.s32.totalorder %s3839_s22, %s5092_s17 }
0x1ed7   : > { %p5089_p3 = pnand %p5088_p2, %p5413_p4  ;;  %p5095_p7 = scmp.lt.s32.totalorder %s5093_s4, %s5087_s0 }
0x1ed9   : > { %p5090_p5 = pneg %p5089_p3  ;;  %p5096_p9 = por %p5095_p7, %p5094_p6 }
0x1edb   : > { %p5097_p10 = pnand %p5096_p9, %p5090_p5 }
0x1edd   : > { %5100 = shalt.err (!%p5097_p10)
}
0x1ede   : > { %s5101_s13 = scalar_lea.hbm %s6356_s28, 16  ;;  %s5105_s25 = scalar_lea.hbm %s6515_s15, 32 }
0x1edf   : > { %p5102_p11 = scmp.ne.s32.totalorder %s6356_s28, %s5101_s13  ;;  %p5106_p0 = scmp.lt.u32.totalorder %s6356_s28, %s6515_s15 }
0x1ee0   : > { %p5107_p1 = scmp.lt.u32.totalorder %s5105_s25, %s5101_s13  ;;  %p5109_p3 = scmp.lt.u32.totalorder %s5101_s13, %s6356_s28 }
0x1ee1   : > { %p5103_p12 = pnand %p5102_p11, %p5413_p4 }
0x1ee2   : > { %p5108_p2 = por %p5107_p1, %p5106_p0 }
0x1ee3   : > { %p5104_p13 = pneg %p5103_p12 }
0x1ee4   : > { %p5110_p5 = por %p5109_p3, %p5108_p2 }
0x1ee6   : > { %p5111_p6 = pnand %p5110_p5, %p5104_p13 }
0x1ee8   : > { %5114 = shalt.err (!%p5111_p6)
}
0x1ee9   : > { %4844 = dma.vmem_to_hbm [thread:$0]  (%p5413_p4), %s3839_s22, 16, %s6356_s28, %s3805_s14  }
0x1eea   : > { %s6382_s17 = scalar_lea.hbm %s6519_s19, %s6323_s2  ;;  %s6658_s24 = scalar_lea.vmem [#allocation10], %s6075_s29 }
0x1eeb   : > { %s3894_s3 = sshll.u32 %s6658_s24, 4  ;;  %s5265_s13 = smov [#allocation10]   ;;  %s3895_s3 = int_to_ptr.vmem [resolvable:$true] %s3894_s3 }
0x1eec   : > { %s5115_s25 = scalar_lea.vmem %s3895_s3, 16  ;;  %s5119_s27 = sshll.u32 %s5265_s13, 4  ;;  %s5120_s27 = int_to_ptr.vmem [resolvable:$false] %s5119_s27 }
0x1eed   : > { %p5116_p7 = scmp.ne.s32.totalorder %s3895_s3, %s5115_s25  ;;  %s5121_s20 = scalar_lea.vmem %s5120_s27, 32 }
0x1eee   : > { %p5122_p11 = scmp.lt.s32.totalorder %s3895_s3, %s5120_s27  ;;  %p5123_p12 = scmp.lt.s32.totalorder %s5121_s20, %s5115_s25 }
0x1eef   : > { %p5117_p9 = pnand %p5116_p7, %p5413_p4 }
0x1ef0   : > { %p5124_p13 = por %p5123_p12, %p5122_p11 }
0x1ef1   : > { %p5118_p10 = pneg %p5117_p9 }
0x1ef3   : > { %p5125_p0 = pnand %p5124_p13, %p5118_p10 }
0x1ef5   : > { %5128 = shalt.err (!%p5125_p0)
}
0x1ef6   : > { %s5129_s28 = scalar_lea.hbm %s6382_s17, 16  ;;  %s5133_s4 = scalar_lea.hbm %s6519_s19, 32 }
0x1ef7   : > { %p5130_p1 = scmp.ne.s32.totalorder %s6382_s17, %s5129_s28  ;;  %p5134_p5 = scmp.lt.u32.totalorder %s6382_s17, %s6519_s19 }
0x1ef8   : > { %p5135_p6 = scmp.lt.u32.totalorder %s5133_s4, %s5129_s28  ;;  %p5137_p9 = scmp.lt.u32.totalorder %s5129_s28, %s6382_s17 }
0x1ef9   : > { %p5131_p2 = pnand %p5130_p1, %p5413_p4 }
0x1efa   : > { %p5136_p7 = por %p5135_p6, %p5134_p5 }
0x1efb   : > { %p5132_p3 = pneg %p5131_p2 }
0x1efc   : > { %p5138_p10 = por %p5137_p9, %p5136_p7 }
0x1efe   : > { %p5139_p11 = pnand %p5138_p10, %p5132_p3 }
0x1f00   : > { %5142 = shalt.err (!%p5139_p11)
}
0x1f01   : > { %4848 = dma.vmem_to_hbm [thread:$0]  (%p5413_p4), %s3895_s3, 16, %s6382_s17, %s3817_s5  }
0x1f02   : > { %s785_s25 = scalar_lea.vmem [#allocation5], %s6075_s29  ;;  %s6659_s27 = scalar_lea.vmem [#allocation7], %s6075_s29 }
0x1f03   : > { %s3852_s13 = sshll.u32 %s785_s25, 4  ;;  %s3866_s20 = sshll.u32 %s6659_s27, 4  ;;  %s6415_s13 = int_to_ptr.vmem [resolvable:$true] %s3852_s13  ;;  %s6423_s20 = int_to_ptr.vmem [resolvable:$true] %s3866_s20 }
0x1f04   : > { %s6413_s14 = scalar_lea.hbm %s6516_s16, %s6323_s2  ;;  %s6660_s29 = sld [smem:[#allocation52_spill]] }
0x1f05   : > { %s3809_s4 = scalar_lea.sflag [#allocation6], %s6320_s1  ;;  %s5143_s0 = scalar_lea.vmem %s6415_s13, 16 }
0x1f06   : > { %p5144_p12 = scmp.ne.s32.totalorder %s6415_s13, %s5143_s0  ;;  %s5266_s24 = smov [#allocation5]  }
0x1f07   : > { %s5147_s27 = sshll.u32 %s5266_s24, 4  ;;  %s5148_s27 = int_to_ptr.vmem [resolvable:$false] %s5147_s27 }
0x1f08   : > { %p5145_p13 = pnand %p5144_p12, %p5413_p4  ;;  %s5149_s28 = scalar_lea.vmem %s5148_s27, 32 }
0x1f09   : > { %p5150_p1 = scmp.lt.s32.totalorder %s6415_s13, %s5148_s27  ;;  %p5151_p2 = scmp.lt.s32.totalorder %s5149_s28, %s5143_s0 }
0x1f0a   : > { %s6421_s3 = scalar_lea.hbm %s6660_s29, %s6323_s2  ;;  %p5146_p0 = pneg %p5145_p13 }
0x1f0b   : > { %p5152_p3 = por %p5151_p2, %p5150_p1 }
0x1f0d   : > { %p5153_p5 = pnand %p5152_p3, %p5146_p0 }
0x1f97   : > { %v3753_v44 = vpop.f32.mrb[92].mxu1 }
0x1f98   : > { %v3754_v45 = vadd.f32 %v3753_v44, %v6648_v3  ;;  %v4842_v50 = vpop.f32.mrb[93].mxu1 }
0x1f99   : > { %v3756_v13 = vpop.f32.mrb[94].mxu1 }
0x1f9a   : > { %3759 = vst [vmem:[%s785_s25] sm:$0x1] %v3754_v45  ;;  %5053 = vtanh.f32 %v3754_v45  ;;  %v4843_v38 = vpop.f32.mrb[95].mxu1 }
0x1f9b   : > { %5156 = shalt.err (!%p5153_p5)
}
0x1f9c   : > { %s5157_s2 = scalar_lea.hbm %s6413_s14, 16  ;;  %s5161_s5 = scalar_lea.hbm %s6516_s16, 32 }
0x1f9d   : > { %p5158_p6 = scmp.ne.s32.totalorder %s6413_s14, %s5157_s2  ;;  %p5162_p10 = scmp.lt.u32.totalorder %s6413_s14, %s6516_s16 }
0x1f9e   : > { %p5163_p11 = scmp.lt.u32.totalorder %s5161_s5, %s5157_s2  ;;  %p5165_p13 = scmp.lt.u32.totalorder %s5157_s2, %s6413_s14 }
0x1f9f   : > { %p5159_p7 = pnand %p5158_p6, %p5413_p4 }
0x1fa0   : > { %p5164_p12 = por %p5163_p11, %p5162_p10 }
0x1fa1   : > { %p5160_p9 = pneg %p5159_p7 }
0x1fa2   : > { %p5166_p0 = por %p5165_p13, %p5164_p12 }
0x1fa4   : > { %p5167_p1 = pnand %p5166_p0, %p5160_p9 }
0x1fa6   : > { %5170 = shalt.err (!%p5167_p1)
}
0x1fa7   : > { %4845 = dma.vmem_to_hbm [thread:$0]  (%p5413_p4), %s6415_s13, 16, %s6413_s14, %s3809_s4  }
0x1fa8   : > { %s5171_s0 = scalar_lea.vmem %s6423_s20, 16  ;;  %s5267_s27 = smov [#allocation7]  }
0x1fa9   : > { %p5172_p2 = scmp.ne.s32.totalorder %s6423_s20, %s5171_s0  ;;  %s5175_s28 = sshll.u32 %s5267_s27, 4  ;;  %s5176_s28 = int_to_ptr.vmem [resolvable:$false] %s5175_s28 }
0x1faa   : > { %s5177_s2 = scalar_lea.vmem %s5176_s28, 32  ;;  %p5178_p6 = scmp.lt.s32.totalorder %s6423_s20, %s5176_s28 }
0x1fab   : > { %p5173_p3 = pnand %p5172_p2, %p5413_p4  ;;  %p5179_p7 = scmp.lt.s32.totalorder %s5177_s2, %s5171_s0 }
0x1fad   : > { %p5174_p5 = pneg %p5173_p3  ;;  %p5180_p9 = por %p5179_p7, %p5178_p6 }
0x1faf   : > { %p5181_p10 = pnand %p5180_p9, %p5174_p5 }
0x1fb1   : > { %5184 = shalt.err (!%p5181_p10)
}
0x1fb2   : > { %s5185_s13 = scalar_lea.hbm %s6421_s3, 16  ;;  %s5189_s22 = scalar_lea.hbm %s6660_s29, 32 }
0x1fb3   : > { %p5186_p11 = scmp.ne.s32.totalorder %s6421_s3, %s5185_s13  ;;  %p5190_p0 = scmp.lt.u32.totalorder %s6421_s3, %s6660_s29 }
0x1fb4   : > { %p5191_p1 = scmp.lt.u32.totalorder %s5189_s22, %s5185_s13  ;;  %p5193_p3 = scmp.lt.u32.totalorder %s5185_s13, %s6421_s3 }
0x1fb5   : > { %p5187_p12 = pnand %p5186_p11, %p5413_p4 }
0x1fb6   : > { %p5192_p2 = por %p5191_p1, %p5190_p0 }
0x1fb7   : > { %p5188_p13 = pneg %p5187_p12 }
0x1fb8   : > { %p5194_p5 = por %p5193_p3, %p5192_p2 }
0x1fba   : > { %p5195_p6 = pnand %p5194_p5, %p5188_p13 }
0x1fbc   : > { %5198 = shalt.err (!%p5195_p6)
}
0x1fbd   : > { %4846 = dma.vmem_to_hbm [thread:$0]  (%p5413_p4), %s6423_s20, 16, %s6421_s3, %s3809_s4   ;;  %v5054_v3 = vpop.eup %5053 }
0x1fbe   : > { %s6661_s27 = sld [smem:[#allocation51_spill]] }
0x1fc4   : > { %s863_s28 = scalar_lea.vmem %s6661_s27, %s5432_s30 }
0x1fc5   : > { %3761 = vst [vmem:[%s863_s28 - $0x1] sm:$0xe] %v5054_v3 }
0x1fc6 PF: > { %s6662_s2 = sld [smem:[#allocation14_spill]]  ;;  %p4870_p7 = scmp.ge.s32.totalorder %s5257_s23, 2 }
0x1fc8   : > { %p4855_p9 = pnand %p4870_p7, %p5422_p8 }
0x1fcc   : > { %s3916_s14 = sand.u32 1, %s6662_s2  }
0x1fcd   : > { %s3917_s26 = scalar_lea.sflag [#allocation4], %s3916_s14 }
0x1fce   : > { %5224 = dma.done.wait (!%p4855_p9), %s3917_s26, 16  }
0x1fcf   : > { %5226 = vsyncadd (!%p4855_p9), %s3917_s26, 4294967280  ;;  %s6664_s1 = sadd.s32 4294967294, %s5257_s23  }
0x1fd0   : > { %s3924_s20 = sand.u32 1, %s6664_s1  }
0x1fd1   : > { %s3925_s3 = scalar_lea.sflag [#allocation6], %s3924_s20 }
0x1fd2   : > { %5228 = dma.done.wait (!%p4855_p9), %s3925_s3, 32  }
0x1fd3   : > { %5230 = vsyncadd (!%p4855_p9), %s3925_s3, 4294967264  ;;  %s3941_s30 = scalar_lea.sflag [#allocation9], %s3924_s20 }
0x1fd4   : > { %5232 = dma.done.wait (!%p4855_p9), %s3941_s30, 80  }
0x1fd5   : > { %5234 = vsyncadd (!%p4855_p9), %s3941_s30, 4294967216  ;;  %s41_s23 = sadd.s32 1, %s5257_s23   ;;  %s6665_s4 = sld [smem:[#allocation15_spill]] }
0x1fd6   : > { %p38_p4 = scmp.ge.s32.totalorder %s41_s23, 4   ;;  %s6666_s1 = sld [smem:[#allocation19_spill]] }
0x1fd7   : > { %s6667_s22 = sld [smem:[#allocation16_spill]]  ;;  %s6668_s2 = sld [smem:[#allocation17_spill]] }
0x1fd8   : > { %s6669_s20 = smov %s5241_s21  ;;  %40 = sbr.rel (!%p38_p4) target bundleno = 17 (0x11), region = 214 }
0x1fdb   : > { %s6670_s21 = smov %s6665_s4 }
0x1fdf   :  { %3954 = vsyncpa [#allocation4], 1 }
0x1fe0   :  { %3956 = vsyncpa [#allocation4 + $0x1], 1 }
0x1fe1   :  { %3957 = vsyncpa [#allocation6], 1 }
0x1fe2   :  { %3959 = vsyncpa [#allocation6 + $0x1], 1 }
0x1fe3   :  { %3960 = vsyncpa [#allocation9], 1 }
0x1fe4   :  { %3962 = vsyncpa [#allocation9 + $0x1], 1 }

</bundles_post_ra>
